<compile_context>
chip_gen: v7x
topology: tpu7x:2x2x1
jax: 0.10.0
libtpu: 0.0.40
codegen_flags: <defaults>
</compile_context>

<pallas_src>
import functools

import jax
import jax.numpy as jnp
import numpy as np
from jax import lax
from jax.experimental import pallas as pl
from jax.experimental.pallas import tpu as pltpu


# ------------------------------ fused forward kernel ------------------------------
def fused_classifier_kernel(tok_ref, emb_ref, h0_ref, c0_ref, *refs):
    """Single-kernel forward pass.

    tok_ref : SMEM (batch, seq) int32 token ids
    emb_ref : VMEM (vocab, 1, emb) embedding table
    h0/c0   : VMEM (n_layers, batch, hidden) initial states
    refs    : [w_ih_l, w_hh_l, b_l] * n_layers  (weights pre-transposed to (in, 4H); b = b_ih+b_hh)
              w_fc1, b_fc1, w_fc2, b_fc2, w_fc3(padded to 128 cols), b_fc3(padded)
              sig_ref (batch, 128), hN_ref, cN_ref (n_layers, batch, hidden)
              x_sc (seq*batch, emb), hseq_sc (seq*batch, hidden), xw_sc (seq*batch, 4*hidden)
    """
    batch, seq = tok_ref.shape
    n_layers, _, hidden = h0_ref.shape

    layer_refs = refs[: 3 * n_layers]
    wf1_ref, bf1_ref, wf2_ref, bf2_ref, wf3_ref, bf3_ref = refs[3 * n_layers: 3 * n_layers + 6]
    sig_ref, hN_ref, cN_ref = refs[3 * n_layers + 6: 3 * n_layers + 9]
    x_sc, hseq_sc, xw_sc = refs[3 * n_layers + 9:]

    # ---- 1) Embedding gather: scalar token ids (SMEM) index VMEM table rows. ----
    # Time-major flat layout: row = t * batch + b.
    for t in range(seq):
        for b in range(batch):
            tok = tok_ref[b, t]
            x_sc[pl.ds(t * batch + b, 1), :] = emb_ref[tok]          # (1, emb)

    # ---- 2) Stacked LSTM layers. ----
    in_buf = x_sc
    h_last = None
    for l in range(n_layers):
        wih_ref = layer_refs[3 * l]
        whh_ref = layer_refs[3 * l + 1]
        b_ref = layer_refs[3 * l + 2]

        # Hoisted input projection + bias for ALL timesteps: one big MXU matmul.
        xw_sc[...] = (jnp.dot(in_buf[...], wih_ref[...],
                              preferred_element_type=jnp.float32)
                      + b_ref[...])                                  # (seq*batch, 4H)

        # Recurrence: h/c stay in vregs; only h @ W_hh is on the serial chain.
        h = h0_ref[l]                                                # (batch, hidden)
        c = c0_ref[l]
        last_layer = (l == n_layers - 1)
        for t in range(seq):
            gates = xw_sc[pl.ds(t * batch, batch), :] + jnp.dot(
                h, whh_ref[...], preferred_element_type=jnp.float32)  # (batch, 4H)
            # hidden is a multiple of 128 -> lane-aligned gate slices (PyTorch order i,f,g,o).
            i_g = jax.nn.sigmoid(gates[:, 0 * hidden:1 * hidden])
            f_g = jax.nn.sigmoid(gates[:, 1 * hidden:2 * hidden])
            g_g = jnp.tanh(gates[:, 2 * hidden:3 * hidden])
            o_g = jax.nn.sigmoid(gates[:, 3 * hidden:4 * hidden])
            c = f_g * c + i_g * g_g
            h = o_g * jnp.tanh(c)
            if not last_layer:
                hseq_sc[pl.ds(t * batch, batch), :] = h
        hN_ref[l] = h
        cN_ref[l] = c
        h_last = h
        in_buf = hseq_sc  # inter-layer dropout = identity in eval mode

    # ---- 3) MLP head on the final timestep only (dropouts identity in eval). ----
    h1 = jnp.dot(h_last, wf1_ref[...], preferred_element_type=jnp.float32) + bf1_ref[...]
    h2 = jnp.dot(h1, wf2_ref[...], preferred_element_type=jnp.float32) + bf2_ref[...]
    h3 = jnp.dot(h2, wf3_ref[...], preferred_element_type=jnp.float32) + bf3_ref[...]
    sig_ref[...] = jax.nn.sigmoid(h3)                                # (batch, 128) lane-dense


# --------------------------------- python wrapper ---------------------------------
def classifier_forward(params, x_tokens, hidden, *, output_size):
    """Mirrors Classifier.forward. x_tokens: (batch, seq) int32; hidden = (h0, c0),
    each (n_layers, batch, hidden_dim). Returns (sig_out[:, -1], (h_n, c_n))."""
    h0, c0 = hidden
    batch, seq = x_tokens.shape
    n_layers, _, hidden_dim = h0.shape
    emb_dim = params["embedding"].shape[1]
    lane = 128

    # Embedding table as (vocab, 1, emb) so the dynamic gather indexes a leading (non-tiled) dim.
    emb3 = params["embedding"].astype(jnp.float32)[:, None, :]

    # Zero-pad fc3 to 128 output columns -> lane-dense output store; extra columns unused.
    w3, b3 = params["w_fc3"], params["b_fc3"]
    pad_cols = lane - w3.shape[1]
    w3p = jnp.pad(w3, ((0, 0), (0, pad_cols)))
    b3p = jnp.pad(b3, ((0, 0), (0, pad_cols)))

    layer_params = []
    for l in range(n_layers):
        layer_params += [params[f"w_ih_{l}"], params[f"w_hh_{l}"], params[f"b_{l}"]]

    inputs = [x_tokens, emb3, h0, c0, *layer_params,
              params["w_fc1"], params["b_fc1"],
              params["w_fc2"], params["b_fc2"], w3p, b3p]

    smem = pl.BlockSpec(memory_space=pltpu.MemorySpace.SMEM)
    vmem = pl.BlockSpec(memory_space=pltpu.MemorySpace.VMEM)

    out_shape = (
        jax.ShapeDtypeStruct((batch, lane), jnp.float32),                      # sigmoid slab
        jax.ShapeDtypeStruct((n_layers, batch, hidden_dim), jnp.float32),      # h_n
        jax.ShapeDtypeStruct((n_layers, batch, hidden_dim), jnp.float32),      # c_n
    )

    sig_slab, h_n, c_n = pl.pallas_call(
        fused_classifier_kernel,
        out_shape=out_shape,
        in_specs=[smem] + [vmem] * (len(inputs) - 1),
        out_specs=(vmem, vmem, vmem),
        scratch_shapes=[
            pltpu.VMEM((seq * batch, emb_dim), jnp.float32),        # gathered embeddings
            pltpu.VMEM((seq * batch, hidden_dim), jnp.float32),     # inter-layer hidden sequence
            pltpu.VMEM((seq * batch, 4 * hidden_dim), jnp.float32),  # hoisted input projection
        ],
    )(*inputs)

    # view(batch, -1)[:, -1] == last output unit of the last timestep.
    sig_out = sig_slab[:, output_size - 1]
    return sig_out, (h_n, c_n)


# --------------------------- pure-JAX reference (check) ---------------------------
def reference_forward(params, x_tokens, hidden):
    h0_all, c0_all = hidden
    batch, seq = x_tokens.shape
    n_layers, _, hidden_dim = h0_all.shape

    emb = jnp.take(params["embedding"], x_tokens, axis=0).astype(jnp.float32)  # (B, S, E)
    layer_in = jnp.transpose(emb, (1, 0, 2))                                   # (S, B, E)
    h_finals, c_finals = [], []
    for l in range(n_layers):
        wih, whh, b = params[f"w_ih_{l}"], params[f"w_hh_{l}"], params[f"b_{l}"]

        def step(carry, x_t):
            h, c = carry
            gates = x_t @ wih + h @ whh + b[0]
            i = jax.nn.sigmoid(gates[:, :hidden_dim])
            f = jax.nn.sigmoid(gates[:, hidden_dim:2 * hidden_dim])
            g = jnp.tanh(gates[:, 2 * hidden_dim:3 * hidden_dim])
            o = jax.nn.sigmoid(gates[:, 3 * hidden_dim:])
            c_new = f * c + i * g
            h_new = o * jnp.tanh(c_new)
            return (h_new, c_new), h_new

        (h_f, c_f), outs = lax.scan(step, (h0_all[l], c0_all[l]), layer_in)
        h_finals.append(h_f)
        c_finals.append(c_f)
        layer_in = outs

    # Full PyTorch path: all rows through fc chain, then view(batch, -1)[:, -1].
    lstm_out = jnp.transpose(layer_in, (1, 0, 2)).reshape(-1, hidden_dim)
    h1 = lstm_out @ params["w_fc1"] + params["b_fc1"][0]
    h2 = h1 @ params["w_fc2"] + params["b_fc2"][0]
    h3 = h2 @ params["w_fc3"] + params["b_fc3"][0]
    sig = jax.nn.sigmoid(h3).reshape(batch, -1)
    return sig[:, -1], jnp.stack(h_finals, axis=0), jnp.stack(c_finals, axis=0)


# ------------------------------------ params ------------------------------------
def make_params(key, vocab_size, output_size, embedding_dim, hidden_dim, n_layers):
    params = {}
    keys = jax.random.split(key, 4 + 4 * n_layers + 6)
    ki = iter(keys)

    def init(shape, scale=0.1):
        return (scale * jax.random.normal(next(ki), shape)).astype(jnp.float32)

    params["embedding"] = init((vocab_size, embedding_dim), scale=1.0)
    for l in range(n_layers):
        in_dim = embedding_dim if l == 0 else hidden_dim
        params[f"w_ih_{l}"] = init((in_dim, 4 * hidden_dim))       # pre-transposed (in, 4H)
        params[f"w_hh_{l}"] = init((hidden_dim, 4 * hidden_dim))   # pre-transposed (H, 4H)
        params[f"b_{l}"] = init((1, 4 * hidden_dim))               # b_ih + b_hh combined
    params["w_fc1"] = init((hidden_dim, 64))
    params["b_fc1"] = init((1, 64))
    params["w_fc2"] = init((64, 16))
    params["b_fc2"] = init((1, 16))
    params["w_fc3"] = init((16, output_size))
    params["b_fc3"] = init((1, output_size))
    return params


# ------------------------------------- main -------------------------------------
if __name__ == "__main__":
    # Small shapes; hidden/emb chosen as 128 so gates & activations are lane-aligned.
    vocab_size, output_size = 32, 1
    embedding_dim, hidden_dim, n_layers = 128, 128, 2
    batch, seq = 8, 8

    key = jax.random.PRNGKey(0)
    k_params, k_tokens, k_h, k_c = jax.random.split(key, 4)
    params = make_params(k_params, vocab_size, output_size,
                         embedding_dim, hidden_dim, n_layers)

    x_tokens = jax.random.randint(k_tokens, (batch, seq), 0, vocab_size, dtype=jnp.int32)
    # Non-zero initial states to exercise the h0/c0 path (init_hidden() would be zeros).
    hidden = (0.1 * jax.random.normal(k_h, (n_layers, batch, hidden_dim), jnp.float32),
              0.1 * jax.random.normal(k_c, (n_layers, batch, hidden_dim), jnp.float32))

    fwd = jax.jit(functools.partial(classifier_forward, params, output_size=output_size))
    sig_out, (h_n, c_n) = fwd(x_tokens, hidden)
    jax.block_until_ready((sig_out, h_n, c_n))

    ref_sig, ref_h, ref_c = reference_forward(params, x_tokens, hidden)
    np.testing.assert_allclose(np.asarray(sig_out), np.asarray(ref_sig), rtol=1e-3, atol=1e-3)
    np.testing.assert_allclose(np.asarray(h_n), np.asarray(ref_h), rtol=1e-3, atol=1e-3)
    np.testing.assert_allclose(np.asarray(c_n), np.asarray(ref_c), rtol=1e-3, atol=1e-3)
    assert sig_out.shape == (batch,)
    assert h_n.shape == (n_layers, batch, hidden_dim)
    assert c_n.shape == (n_layers, batch, hidden_dim)

    print("KERNEL_OK")
</pallas_src>

<mosaic_0001>
module attributes {stable_mosaic.version = 11 : i64} {
  func.func @fused_classifier_kernel(%arg0: memref<8x8xi32, #tpu.memory_space<smem>>, %arg1: memref<32x1x128xf32, #tpu.memory_space<vmem>>, %arg2: memref<2x8x128xf32, #tpu.memory_space<vmem>>, %arg3: memref<2x8x128xf32, #tpu.memory_space<vmem>>, %arg4: memref<128x512xf32, #tpu.memory_space<vmem>>, %arg5: memref<128x512xf32, #tpu.memory_space<vmem>>, %arg6: memref<1x512xf32, #tpu.memory_space<vmem>>, %arg7: memref<128x512xf32, #tpu.memory_space<vmem>>, %arg8: memref<128x512xf32, #tpu.memory_space<vmem>>, %arg9: memref<1x512xf32, #tpu.memory_space<vmem>>, %arg10: memref<128x64xf32, #tpu.memory_space<vmem>>, %arg11: memref<1x64xf32, #tpu.memory_space<vmem>>, %arg12: memref<64x16xf32, #tpu.memory_space<vmem>>, %arg13: memref<1x16xf32, #tpu.memory_space<vmem>>, %arg14: memref<16x128xf32, #tpu.memory_space<vmem>>, %arg15: memref<1x128xf32, #tpu.memory_space<vmem>>, %arg16: memref<8x128xf32, #tpu.memory_space<vmem>>, %arg17: memref<2x8x128xf32, #tpu.memory_space<vmem>>, %arg18: memref<2x8x128xf32, #tpu.memory_space<vmem>>, %arg19: memref<64x128xf32, #tpu.memory_space<vmem>>, %arg20: memref<64x128xf32, #tpu.memory_space<vmem>>, %arg21: memref<64x512xf32, #tpu.memory_space<vmem>>) attributes {dimension_semantics = [], scalar_prefetch = 0 : i64, scratch_operands = 3 : i64, tpu.core_type = #tpu.core_type<tc>} {
    %c0 = arith.constant 0 : index
    %c0_0 = arith.constant 0 : index
    %0 = memref.load %arg0[%c0, %c0_0] : memref<8x8xi32, #tpu.memory_space<smem>>
    %1 = arith.index_cast %0 : i32 to index
    %c0_1 = arith.constant 0 : index
    %c0_2 = arith.constant 0 : index
    %2 = vector.load %arg1[%1, %c0_1, %c0_2] : memref<32x1x128xf32, #tpu.memory_space<vmem>>, vector<1x1x128xf32>
    %3 = vector.shape_cast %2 : vector<1x1x128xf32> to vector<1x128xf32>
    %c0_3 = arith.constant 0 : index
    %c0_4 = arith.constant 0 : index
    %4 = vector.load %arg19[%c0_3, %c0_4] : memref<64x128xf32, #tpu.memory_space<vmem>>, vector<1x128xf32>
    tpu.vector_store %arg19[%c0_3, %c0_4], %3 {strides = array<i32>} : memref<64x128xf32, #tpu.memory_space<vmem>>, vector<1x128xf32>,
    %c1 = arith.constant 1 : index
    %c0_5 = arith.constant 0 : index
    %5 = memref.load %arg0[%c1, %c0_5] : memref<8x8xi32, #tpu.memory_space<smem>>
    %6 = arith.index_cast %5 : i32 to index
    %c0_6 = arith.constant 0 : index
    %c0_7 = arith.constant 0 : index
    %7 = vector.load %arg1[%6, %c0_6, %c0_7] : memref<32x1x128xf32, #tpu.memory_space<vmem>>, vector<1x1x128xf32>
    %8 = vector.shape_cast %7 : vector<1x1x128xf32> to vector<1x128xf32>
    %c1_8 = arith.constant 1 : index
    %c0_9 = arith.constant 0 : index
    %9 = vector.load %arg19[%c1_8, %c0_9] : memref<64x128xf32, #tpu.memory_space<vmem>>, vector<1x128xf32>
    tpu.vector_store %arg19[%c1_8, %c0_9], %8 {strides = array<i32>} : memref<64x128xf32, #tpu.memory_space<vmem>>, vector<1x128xf32>,
    %c2 = arith.constant 2 : index
    %c0_10 = arith.constant 0 : index
    %10 = memref.load %arg0[%c2, %c0_10] : memref<8x8xi32, #tpu.memory_space<smem>>
    %11 = arith.index_cast %10 : i32 to index
    %c0_11 = arith.constant 0 : index
    %c0_12 = arith.constant 0 : index
    %12 = vector.load %arg1[%11, %c0_11, %c0_12] : memref<32x1x128xf32, #tpu.memory_space<vmem>>, vector<1x1x128xf32>
    %13 = vector.shape_cast %12 : vector<1x1x128xf32> to vector<1x128xf32>
    %c2_13 = arith.constant 2 : index
    %c0_14 = arith.constant 0 : index
    %14 = vector.load %arg19[%c2_13, %c0_14] : memref<64x128xf32, #tpu.memory_space<vmem>>, vector<1x128xf32>
    tpu.vector_store %arg19[%c2_13, %c0_14], %13 {strides = array<i32>} : memref<64x128xf32, #tpu.memory_space<vmem>>, vector<1x128xf32>,
    %c3 = arith.constant 3 : index
    %c0_15 = arith.constant 0 : index
    %15 = memref.load %arg0[%c3, %c0_15] : memref<8x8xi32, #tpu.memory_space<smem>>
    %16 = arith.index_cast %15 : i32 to index
    %c0_16 = arith.constant 0 : index
    %c0_17 = arith.constant 0 : index
    %17 = vector.load %arg1[%16, %c0_16, %c0_17] : memref<32x1x128xf32, #tpu.memory_space<vmem>>, vector<1x1x128xf32>
    %18 = vector.shape_cast %17 : vector<1x1x128xf32> to vector<1x128xf32>
    %c3_18 = arith.constant 3 : index
    %c0_19 = arith.constant 0 : index
    %19 = vector.load %arg19[%c3_18, %c0_19] : memref<64x128xf32, #tpu.memory_space<vmem>>, vector<1x128xf32>
    tpu.vector_store %arg19[%c3_18, %c0_19], %18 {strides = array<i32>} : memref<64x128xf32, #tpu.memory_space<vmem>>, vector<1x128xf32>,
    %c4 = arith.constant 4 : index
    %c0_20 = arith.constant 0 : index
    %20 = memref.load %arg0[%c4, %c0_20] : memref<8x8xi32, #tpu.memory_space<smem>>
    %21 = arith.index_cast %20 : i32 to index
    %c0_21 = arith.constant 0 : index
    %c0_22 = arith.constant 0 : index
    %22 = vector.load %arg1[%21, %c0_21, %c0_22] : memref<32x1x128xf32, #tpu.memory_space<vmem>>, vector<1x1x128xf32>
    %23 = vector.shape_cast %22 : vector<1x1x128xf32> to vector<1x128xf32>
    %c4_23 = arith.constant 4 : index
    %c0_24 = arith.constant 0 : index
    %24 = vector.load %arg19[%c4_23, %c0_24] : memref<64x128xf32, #tpu.memory_space<vmem>>, vector<1x128xf32>
    tpu.vector_store %arg19[%c4_23, %c0_24], %23 {strides = array<i32>} : memref<64x128xf32, #tpu.memory_space<vmem>>, vector<1x128xf32>,
    %c5 = arith.constant 5 : index
    %c0_25 = arith.constant 0 : index
    %25 = memref.load %arg0[%c5, %c0_25] : memref<8x8xi32, #tpu.memory_space<smem>>
    %26 = arith.index_cast %25 : i32 to index
    %c0_26 = arith.constant 0 : index
    %c0_27 = arith.constant 0 : index
    %27 = vector.load %arg1[%26, %c0_26, %c0_27] : memref<32x1x128xf32, #tpu.memory_space<vmem>>, vector<1x1x128xf32>
    %28 = vector.shape_cast %27 : vector<1x1x128xf32> to vector<1x128xf32>
    %c5_28 = arith.constant 5 : index
    %c0_29 = arith.constant 0 : index
    %29 = vector.load %arg19[%c5_28, %c0_29] : memref<64x128xf32, #tpu.memory_space<vmem>>, vector<1x128xf32>
    tpu.vector_store %arg19[%c5_28, %c0_29], %28 {strides = array<i32>} : memref<64x128xf32, #tpu.memory_space<vmem>>, vector<1x128xf32>,
    %c6 = arith.constant 6 : index
    %c0_30 = arith.constant 0 : index
    %30 = memref.load %arg0[%c6, %c0_30] : memref<8x8xi32, #tpu.memory_space<smem>>
    %31 = arith.index_cast %30 : i32 to index
    %c0_31 = arith.constant 0 : index
    %c0_32 = arith.constant 0 : index
    %32 = vector.load %arg1[%31, %c0_31, %c0_32] : memref<32x1x128xf32, #tpu.memory_space<vmem>>, vector<1x1x128xf32>
    %33 = vector.shape_cast %32 : vector<1x1x128xf32> to vector<1x128xf32>
    %c6_33 = arith.constant 6 : index
    %c0_34 = arith.constant 0 : index
    %34 = vector.load %arg19[%c6_33, %c0_34] : memref<64x128xf32, #tpu.memory_space<vmem>>, vector<1x128xf32>
    tpu.vector_store %arg19[%c6_33, %c0_34], %33 {strides = array<i32>} : memref<64x128xf32, #tpu.memory_space<vmem>>, vector<1x128xf32>,
    %c7 = arith.constant 7 : index
    %c0_35 = arith.constant 0 : index
    %35 = memref.load %arg0[%c7, %c0_35] : memref<8x8xi32, #tpu.memory_space<smem>>
    %36 = arith.index_cast %35 : i32 to index
    %c0_36 = arith.constant 0 : index
    %c0_37 = arith.constant 0 : index
    %37 = vector.load %arg1[%36, %c0_36, %c0_37] : memref<32x1x128xf32, #tpu.memory_space<vmem>>, vector<1x1x128xf32>
    %38 = vector.shape_cast %37 : vector<1x1x128xf32> to vector<1x128xf32>
    %c7_38 = arith.constant 7 : index
    %c0_39 = arith.constant 0 : index
    %39 = vector.load %arg19[%c7_38, %c0_39] : memref<64x128xf32, #tpu.memory_space<vmem>>, vector<1x128xf32>
    tpu.vector_store %arg19[%c7_38, %c0_39], %38 {strides = array<i32>} : memref<64x128xf32, #tpu.memory_space<vmem>>, vector<1x128xf32>,
    %c0_40 = arith.constant 0 : index
    %c1_41 = arith.constant 1 : index
    %40 = memref.load %arg0[%c0_40, %c1_41] : memref<8x8xi32, #tpu.memory_space<smem>>
    %41 = arith.index_cast %40 : i32 to index
    %c0_42 = arith.constant 0 : index
    %c0_43 = arith.constant 0 : index
    %42 = vector.load %arg1[%41, %c0_42, %c0_43] : memref<32x1x128xf32, #tpu.memory_space<vmem>>, vector<1x1x128xf32>
    %43 = vector.shape_cast %42 : vector<1x1x128xf32> to vector<1x128xf32>
    %c8 = arith.constant 8 : index
    %c0_44 = arith.constant 0 : index
    %44 = vector.load %arg19[%c8, %c0_44] : memref<64x128xf32, #tpu.memory_space<vmem>>, vector<1x128xf32>
    tpu.vector_store %arg19[%c8, %c0_44], %43 {strides = array<i32>} : memref<64x128xf32, #tpu.memory_space<vmem>>, vector<1x128xf32>,
    %c1_45 = arith.constant 1 : index
    %c1_46 = arith.constant 1 : index
    %45 = memref.load %arg0[%c1_45, %c1_46] : memref<8x8xi32, #tpu.memory_space<smem>>
    %46 = arith.index_cast %45 : i32 to index
    %c0_47 = arith.constant 0 : index
    %c0_48 = arith.constant 0 : index
    %47 = vector.load %arg1[%46, %c0_47, %c0_48] : memref<32x1x128xf32, #tpu.memory_space<vmem>>, vector<1x1x128xf32>
    %48 = vector.shape_cast %47 : vector<1x1x128xf32> to vector<1x128xf32>
    %c9 = arith.constant 9 : index
    %c0_49 = arith.constant 0 : index
    %49 = vector.load %arg19[%c9, %c0_49] : memref<64x128xf32, #tpu.memory_space<vmem>>, vector<1x128xf32>
    tpu.vector_store %arg19[%c9, %c0_49], %48 {strides = array<i32>} : memref<64x128xf32, #tpu.memory_space<vmem>>, vector<1x128xf32>,
    %c2_50 = arith.constant 2 : index
    %c1_51 = arith.constant 1 : index
    %50 = memref.load %arg0[%c2_50, %c1_51] : memref<8x8xi32, #tpu.memory_space<smem>>
    %51 = arith.index_cast %50 : i32 to index
    %c0_52 = arith.constant 0 : index
    %c0_53 = arith.constant 0 : index
    %52 = vector.load %arg1[%51, %c0_52, %c0_53] : memref<32x1x128xf32, #tpu.memory_space<vmem>>, vector<1x1x128xf32>
    %53 = vector.shape_cast %52 : vector<1x1x128xf32> to vector<1x128xf32>
    %c10 = arith.constant 10 : index
    %c0_54 = arith.constant 0 : index
    %54 = vector.load %arg19[%c10, %c0_54] : memref<64x128xf32, #tpu.memory_space<vmem>>, vector<1x128xf32>
    tpu.vector_store %arg19[%c10, %c0_54], %53 {strides = array<i32>} : memref<64x128xf32, #tpu.memory_space<vmem>>, vector<1x128xf32>,
    %c3_55 = arith.constant 3 : index
    %c1_56 = arith.constant 1 : index
    %55 = memref.load %arg0[%c3_55, %c1_56] : memref<8x8xi32, #tpu.memory_space<smem>>
    %56 = arith.index_cast %55 : i32 to index
    %c0_57 = arith.constant 0 : index
    %c0_58 = arith.constant 0 : index
    %57 = vector.load %arg1[%56, %c0_57, %c0_58] : memref<32x1x128xf32, #tpu.memory_space<vmem>>, vector<1x1x128xf32>
    %58 = vector.shape_cast %57 : vector<1x1x128xf32> to vector<1x128xf32>
    %c11 = arith.constant 11 : index
    %c0_59 = arith.constant 0 : index
    %59 = vector.load %arg19[%c11, %c0_59] : memref<64x128xf32, #tpu.memory_space<vmem>>, vector<1x128xf32>
    tpu.vector_store %arg19[%c11, %c0_59], %58 {strides = array<i32>} : memref<64x128xf32, #tpu.memory_space<vmem>>, vector<1x128xf32>,
    %c4_60 = arith.constant 4 : index
    %c1_61 = arith.constant 1 : index
    %60 = memref.load %arg0[%c4_60, %c1_61] : memref<8x8xi32, #tpu.memory_space<smem>>
    %61 = arith.index_cast %60 : i32 to index
    %c0_62 = arith.constant 0 : index
    %c0_63 = arith.constant 0 : index
    %62 = vector.load %arg1[%61, %c0_62, %c0_63] : memref<32x1x128xf32, #tpu.memory_space<vmem>>, vector<1x1x128xf32>
    %63 = vector.shape_cast %62 : vector<1x1x128xf32> to vector<1x128xf32>
    %c12 = arith.constant 12 : index
    %c0_64 = arith.constant 0 : index
    %64 = vector.load %arg19[%c12, %c0_64] : memref<64x128xf32, #tpu.memory_space<vmem>>, vector<1x128xf32>
    tpu.vector_store %arg19[%c12, %c0_64], %63 {strides = array<i32>} : memref<64x128xf32, #tpu.memory_space<vmem>>, vector<1x128xf32>,
    %c5_65 = arith.constant 5 : index
    %c1_66 = arith.constant 1 : index
    %65 = memref.load %arg0[%c5_65, %c1_66] : memref<8x8xi32, #tpu.memory_space<smem>>
    %66 = arith.index_cast %65 : i32 to index
    %c0_67 = arith.constant 0 : index
    %c0_68 = arith.constant 0 : index
    %67 = vector.load %arg1[%66, %c0_67, %c0_68] : memref<32x1x128xf32, #tpu.memory_space<vmem>>, vector<1x1x128xf32>
    %68 = vector.shape_cast %67 : vector<1x1x128xf32> to vector<1x128xf32>
    %c13 = arith.constant 13 : index
    %c0_69 = arith.constant 0 : index
    %69 = vector.load %arg19[%c13, %c0_69] : memref<64x128xf32, #tpu.memory_space<vmem>>, vector<1x128xf32>
    tpu.vector_store %arg19[%c13, %c0_69], %68 {strides = array<i32>} : memref<64x128xf32, #tpu.memory_space<vmem>>, vector<1x128xf32>,
    %c6_70 = arith.constant 6 : index
    %c1_71 = arith.constant 1 : index
    %70 = memref.load %arg0[%c6_70, %c1_71] : memref<8x8xi32, #tpu.memory_space<smem>>
    %71 = arith.index_cast %70 : i32 to index
    %c0_72 = arith.constant 0 : index
    %c0_73 = arith.constant 0 : index
    %72 = vector.load %arg1[%71, %c0_72, %c0_73] : memref<32x1x128xf32, #tpu.memory_space<vmem>>, vector<1x1x128xf32>
    %73 = vector.shape_cast %72 : vector<1x1x128xf32> to vector<1x128xf32>
    %c14 = arith.constant 14 : index
    %c0_74 = arith.constant 0 : index
    %74 = vector.load %arg19[%c14, %c0_74] : memref<64x128xf32, #tpu.memory_space<vmem>>, vector<1x128xf32>
    tpu.vector_store %arg19[%c14, %c0_74], %73 {strides = array<i32>} : memref<64x128xf32, #tpu.memory_space<vmem>>, vector<1x128xf32>,
    %c7_75 = arith.constant 7 : index
    %c1_76 = arith.constant 1 : index
    %75 = memref.load %arg0[%c7_75, %c1_76] : memref<8x8xi32, #tpu.memory_space<smem>>
    %76 = arith.index_cast %75 : i32 to index
    %c0_77 = arith.constant 0 : index
    %c0_78 = arith.constant 0 : index
    %77 = vector.load %arg1[%76, %c0_77, %c0_78] : memref<32x1x128xf32, #tpu.memory_space<vmem>>, vector<1x1x128xf32>
    %78 = vector.shape_cast %77 : vector<1x1x128xf32> to vector<1x128xf32>
    %c15 = arith.constant 15 : index
    %c0_79 = arith.constant 0 : index
    %79 = vector.load %arg19[%c15, %c0_79] : memref<64x128xf32, #tpu.memory_space<vmem>>, vector<1x128xf32>
    tpu.vector_store %arg19[%c15, %c0_79], %78 {strides = array<i32>} : memref<64x128xf32, #tpu.memory_space<vmem>>, vector<1x128xf32>,
    %c0_80 = arith.constant 0 : index
    %c2_81 = arith.constant 2 : index
    %80 = memref.load %arg0[%c0_80, %c2_81] : memref<8x8xi32, #tpu.memory_space<smem>>
    %81 = arith.index_cast %80 : i32 to index
    %c0_82 = arith.constant 0 : index
    %c0_83 = arith.constant 0 : index
    %82 = vector.load %arg1[%81, %c0_82, %c0_83] : memref<32x1x128xf32, #tpu.memory_space<vmem>>, vector<1x1x128xf32>
    %83 = vector.shape_cast %82 : vector<1x1x128xf32> to vector<1x128xf32>
    %c16 = arith.constant 16 : index
    %c0_84 = arith.constant 0 : index
    %84 = vector.load %arg19[%c16, %c0_84] : memref<64x128xf32, #tpu.memory_space<vmem>>, vector<1x128xf32>
    tpu.vector_store %arg19[%c16, %c0_84], %83 {strides = array<i32>} : memref<64x128xf32, #tpu.memory_space<vmem>>, vector<1x128xf32>,
    %c1_85 = arith.constant 1 : index
    %c2_86 = arith.constant 2 : index
    %85 = memref.load %arg0[%c1_85, %c2_86] : memref<8x8xi32, #tpu.memory_space<smem>>
    %86 = arith.index_cast %85 : i32 to index
    %c0_87 = arith.constant 0 : index
    %c0_88 = arith.constant 0 : index
    %87 = vector.load %arg1[%86, %c0_87, %c0_88] : memref<32x1x128xf32, #tpu.memory_space<vmem>>, vector<1x1x128xf32>
    %88 = vector.shape_cast %87 : vector<1x1x128xf32> to vector<1x128xf32>
    %c17 = arith.constant 17 : index
    %c0_89 = arith.constant 0 : index
    %89 = vector.load %arg19[%c17, %c0_89] : memref<64x128xf32, #tpu.memory_space<vmem>>, vector<1x128xf32>
    tpu.vector_store %arg19[%c17, %c0_89], %88 {strides = array<i32>} : memref<64x128xf32, #tpu.memory_space<vmem>>, vector<1x128xf32>,
    %c2_90 = arith.constant 2 : index
    %c2_91 = arith.constant 2 : index
    %90 = memref.load %arg0[%c2_90, %c2_91] : memref<8x8xi32, #tpu.memory_space<smem>>
    %91 = arith.index_cast %90 : i32 to index
    %c0_92 = arith.constant 0 : index
    %c0_93 = arith.constant 0 : index
    %92 = vector.load %arg1[%91, %c0_92, %c0_93] : memref<32x1x128xf32, #tpu.memory_space<vmem>>, vector<1x1x128xf32>
    %93 = vector.shape_cast %92 : vector<1x1x128xf32> to vector<1x128xf32>
    %c18 = arith.constant 18 : index
    %c0_94 = arith.constant 0 : index
    %94 = vector.load %arg19[%c18, %c0_94] : memref<64x128xf32, #tpu.memory_space<vmem>>, vector<1x128xf32>
    tpu.vector_store %arg19[%c18, %c0_94], %93 {strides = array<i32>} : memref<64x128xf32, #tpu.memory_space<vmem>>, vector<1x128xf32>,
    %c3_95 = arith.constant 3 : index
    %c2_96 = arith.constant 2 : index
    %95 = memref.load %arg0[%c3_95, %c2_96] : memref<8x8xi32, #tpu.memory_space<smem>>
    %96 = arith.index_cast %95 : i32 to index
    %c0_97 = arith.constant 0 : index
    %c0_98 = arith.constant 0 : index
    %97 = vector.load %arg1[%96, %c0_97, %c0_98] : memref<32x1x128xf32, #tpu.memory_space<vmem>>, vector<1x1x128xf32>
    %98 = vector.shape_cast %97 : vector<1x1x128xf32> to vector<1x128xf32>
    %c19 = arith.constant 19 : index
    %c0_99 = arith.constant 0 : index
    %99 = vector.load %arg19[%c19, %c0_99] : memref<64x128xf32, #tpu.memory_space<vmem>>, vector<1x128xf32>
    tpu.vector_store %arg19[%c19, %c0_99], %98 {strides = array<i32>} : memref<64x128xf32, #tpu.memory_space<vmem>>, vector<1x128xf32>,
    %c4_100 = arith.constant 4 : index
    %c2_101 = arith.constant 2 : index
    %100 = memref.load %arg0[%c4_100, %c2_101] : memref<8x8xi32, #tpu.memory_space<smem>>
    %101 = arith.index_cast %100 : i32 to index
    %c0_102 = arith.constant 0 : index
    %c0_103 = arith.constant 0 : index
    %102 = vector.load %arg1[%101, %c0_102, %c0_103] : memref<32x1x128xf32, #tpu.memory_space<vmem>>, vector<1x1x128xf32>
    %103 = vector.shape_cast %102 : vector<1x1x128xf32> to vector<1x128xf32>
    %c20 = arith.constant 20 : index
    %c0_104 = arith.constant 0 : index
    %104 = vector.load %arg19[%c20, %c0_104] : memref<64x128xf32, #tpu.memory_space<vmem>>, vector<1x128xf32>
    tpu.vector_store %arg19[%c20, %c0_104], %103 {strides = array<i32>} : memref<64x128xf32, #tpu.memory_space<vmem>>, vector<1x128xf32>,
    %c5_105 = arith.constant 5 : index
    %c2_106 = arith.constant 2 : index
    %105 = memref.load %arg0[%c5_105, %c2_106] : memref<8x8xi32, #tpu.memory_space<smem>>
    %106 = arith.index_cast %105 : i32 to index
    %c0_107 = arith.constant 0 : index
    %c0_108 = arith.constant 0 : index
    %107 = vector.load %arg1[%106, %c0_107, %c0_108] : memref<32x1x128xf32, #tpu.memory_space<vmem>>, vector<1x1x128xf32>
    %108 = vector.shape_cast %107 : vector<1x1x128xf32> to vector<1x128xf32>
    %c21 = arith.constant 21 : index
    %c0_109 = arith.constant 0 : index
    %109 = vector.load %arg19[%c21, %c0_109] : memref<64x128xf32, #tpu.memory_space<vmem>>, vector<1x128xf32>
    tpu.vector_store %arg19[%c21, %c0_109], %108 {strides = array<i32>} : memref<64x128xf32, #tpu.memory_space<vmem>>, vector<1x128xf32>,
    %c6_110 = arith.constant 6 : index
    %c2_111 = arith.constant 2 : index
    %110 = memref.load %arg0[%c6_110, %c2_111] : memref<8x8xi32, #tpu.memory_space<smem>>
    %111 = arith.index_cast %110 : i32 to index
    %c0_112 = arith.constant 0 : index
    %c0_113 = arith.constant 0 : index
    %112 = vector.load %arg1[%111, %c0_112, %c0_113] : memref<32x1x128xf32, #tpu.memory_space<vmem>>, vector<1x1x128xf32>
    %113 = vector.shape_cast %112 : vector<1x1x128xf32> to vector<1x128xf32>
    %c22 = arith.constant 22 : index
    %c0_114 = arith.constant 0 : index
    %114 = vector.load %arg19[%c22, %c0_114] : memref<64x128xf32, #tpu.memory_space<vmem>>, vector<1x128xf32>
    tpu.vector_store %arg19[%c22, %c0_114], %113 {strides = array<i32>} : memref<64x128xf32, #tpu.memory_space<vmem>>, vector<1x128xf32>,
    %c7_115 = arith.constant 7 : index
    %c2_116 = arith.constant 2 : index
    %115 = memref.load %arg0[%c7_115, %c2_116] : memref<8x8xi32, #tpu.memory_space<smem>>
    %116 = arith.index_cast %115 : i32 to index
    %c0_117 = arith.constant 0 : index
    %c0_118 = arith.constant 0 : index
    %117 = vector.load %arg1[%116, %c0_117, %c0_118] : memref<32x1x128xf32, #tpu.memory_space<vmem>>, vector<1x1x128xf32>
    %118 = vector.shape_cast %117 : vector<1x1x128xf32> to vector<1x128xf32>
    %c23 = arith.constant 23 : index
    %c0_119 = arith.constant 0 : index
    %119 = vector.load %arg19[%c23, %c0_119] : memref<64x128xf32, #tpu.memory_space<vmem>>, vector<1x128xf32>
    tpu.vector_store %arg19[%c23, %c0_119], %118 {strides = array<i32>} : memref<64x128xf32, #tpu.memory_space<vmem>>, vector<1x128xf32>,
    %c0_120 = arith.constant 0 : index
    %c3_121 = arith.constant 3 : index
    %120 = memref.load %arg0[%c0_120, %c3_121] : memref<8x8xi32, #tpu.memory_space<smem>>
    %121 = arith.index_cast %120 : i32 to index
    %c0_122 = arith.constant 0 : index
    %c0_123 = arith.constant 0 : index
    %122 = vector.load %arg1[%121, %c0_122, %c0_123] : memref<32x1x128xf32, #tpu.memory_space<vmem>>, vector<1x1x128xf32>
    %123 = vector.shape_cast %122 : vector<1x1x128xf32> to vector<1x128xf32>
    %c24 = arith.constant 24 : index
    %c0_124 = arith.constant 0 : index
    %124 = vector.load %arg19[%c24, %c0_124] : memref<64x128xf32, #tpu.memory_space<vmem>>, vector<1x128xf32>
    tpu.vector_store %arg19[%c24, %c0_124], %123 {strides = array<i32>} : memref<64x128xf32, #tpu.memory_space<vmem>>, vector<1x128xf32>,
    %c1_125 = arith.constant 1 : index
    %c3_126 = arith.constant 3 : index
    %125 = memref.load %arg0[%c1_125, %c3_126] : memref<8x8xi32, #tpu.memory_space<smem>>
    %126 = arith.index_cast %125 : i32 to index
    %c0_127 = arith.constant 0 : index
    %c0_128 = arith.constant 0 : index
    %127 = vector.load %arg1[%126, %c0_127, %c0_128] : memref<32x1x128xf32, #tpu.memory_space<vmem>>, vector<1x1x128xf32>
    %128 = vector.shape_cast %127 : vector<1x1x128xf32> to vector<1x128xf32>
    %c25 = arith.constant 25 : index
    %c0_129 = arith.constant 0 : index
    %129 = vector.load %arg19[%c25, %c0_129] : memref<64x128xf32, #tpu.memory_space<vmem>>, vector<1x128xf32>
    tpu.vector_store %arg19[%c25, %c0_129], %128 {strides = array<i32>} : memref<64x128xf32, #tpu.memory_space<vmem>>, vector<1x128xf32>,
    %c2_130 = arith.constant 2 : index
    %c3_131 = arith.constant 3 : index
    %130 = memref.load %arg0[%c2_130, %c3_131] : memref<8x8xi32, #tpu.memory_space<smem>>
    %131 = arith.index_cast %130 : i32 to index
    %c0_132 = arith.constant 0 : index
    %c0_133 = arith.constant 0 : index
    %132 = vector.load %arg1[%131, %c0_132, %c0_133] : memref<32x1x128xf32, #tpu.memory_space<vmem>>, vector<1x1x128xf32>
    %133 = vector.shape_cast %132 : vector<1x1x128xf32> to vector<1x128xf32>
    %c26 = arith.constant 26 : index
    %c0_134 = arith.constant 0 : index
    %134 = vector.load %arg19[%c26, %c0_134] : memref<64x128xf32, #tpu.memory_space<vmem>>, vector<1x128xf32>
    tpu.vector_store %arg19[%c26, %c0_134], %133 {strides = array<i32>} : memref<64x128xf32, #tpu.memory_space<vmem>>, vector<1x128xf32>,
    %c3_135 = arith.constant 3 : index
    %c3_136 = arith.constant 3 : index
    %135 = memref.load %arg0[%c3_135, %c3_136] : memref<8x8xi32, #tpu.memory_space<smem>>
    %136 = arith.index_cast %135 : i32 to index
    %c0_137 = arith.constant 0 : index
    %c0_138 = arith.constant 0 : index
    %137 = vector.load %arg1[%136, %c0_137, %c0_138] : memref<32x1x128xf32, #tpu.memory_space<vmem>>, vector<1x1x128xf32>
    %138 = vector.shape_cast %137 : vector<1x1x128xf32> to vector<1x128xf32>
    %c27 = arith.constant 27 : index
    %c0_139 = arith.constant 0 : index
    %139 = vector.load %arg19[%c27, %c0_139] : memref<64x128xf32, #tpu.memory_space<vmem>>, vector<1x128xf32>
    tpu.vector_store %arg19[%c27, %c0_139], %138 {strides = array<i32>} : memref<64x128xf32, #tpu.memory_space<vmem>>, vector<1x128xf32>,
    %c4_140 = arith.constant 4 : index
    %c3_141 = arith.constant 3 : index
    %140 = memref.load %arg0[%c4_140, %c3_141] : memref<8x8xi32, #tpu.memory_space<smem>>
    %141 = arith.index_cast %140 : i32 to index
    %c0_142 = arith.constant 0 : index
    %c0_143 = arith.constant 0 : index
    %142 = vector.load %arg1[%141, %c0_142, %c0_143] : memref<32x1x128xf32, #tpu.memory_space<vmem>>, vector<1x1x128xf32>
    %143 = vector.shape_cast %142 : vector<1x1x128xf32> to vector<1x128xf32>
    %c28 = arith.constant 28 : index
    %c0_144 = arith.constant 0 : index
    %144 = vector.load %arg19[%c28, %c0_144] : memref<64x128xf32, #tpu.memory_space<vmem>>, vector<1x128xf32>
    tpu.vector_store %arg19[%c28, %c0_144], %143 {strides = array<i32>} : memref<64x128xf32, #tpu.memory_space<vmem>>, vector<1x128xf32>,
    %c5_145 = arith.constant 5 : index
    %c3_146 = arith.constant 3 : index
    %145 = memref.load %arg0[%c5_145, %c3_146] : memref<8x8xi32, #tpu.memory_space<smem>>
    %146 = arith.index_cast %145 : i32 to index
    %c0_147 = arith.constant 0 : index
    %c0_148 = arith.constant 0 : index
    %147 = vector.load %arg1[%146, %c0_147, %c0_148] : memref<32x1x128xf32, #tpu.memory_space<vmem>>, vector<1x1x128xf32>
    %148 = vector.shape_cast %147 : vector<1x1x128xf32> to vector<1x128xf32>
    %c29 = arith.constant 29 : index
    %c0_149 = arith.constant 0 : index
    %149 = vector.load %arg19[%c29, %c0_149] : memref<64x128xf32, #tpu.memory_space<vmem>>, vector<1x128xf32>
    tpu.vector_store %arg19[%c29, %c0_149], %148 {strides = array<i32>} : memref<64x128xf32, #tpu.memory_space<vmem>>, vector<1x128xf32>,
    %c6_150 = arith.constant 6 : index
    %c3_151 = arith.constant 3 : index
    %150 = memref.load %arg0[%c6_150, %c3_151] : memref<8x8xi32, #tpu.memory_space<smem>>
    %151 = arith.index_cast %150 : i32 to index
    %c0_152 = arith.constant 0 : index
    %c0_153 = arith.constant 0 : index
    %152 = vector.load %arg1[%151, %c0_152, %c0_153] : memref<32x1x128xf32, #tpu.memory_space<vmem>>, vector<1x1x128xf32>
    %153 = vector.shape_cast %152 : vector<1x1x128xf32> to vector<1x128xf32>
    %c30 = arith.constant 30 : index
    %c0_154 = arith.constant 0 : index
    %154 = vector.load %arg19[%c30, %c0_154] : memref<64x128xf32, #tpu.memory_space<vmem>>, vector<1x128xf32>
    tpu.vector_store %arg19[%c30, %c0_154], %153 {strides = array<i32>} : memref<64x128xf32, #tpu.memory_space<vmem>>, vector<1x128xf32>,
    %c7_155 = arith.constant 7 : index
    %c3_156 = arith.constant 3 : index
    %155 = memref.load %arg0[%c7_155, %c3_156] : memref<8x8xi32, #tpu.memory_space<smem>>
    %156 = arith.index_cast %155 : i32 to index
    %c0_157 = arith.constant 0 : index
    %c0_158 = arith.constant 0 : index
    %157 = vector.load %arg1[%156, %c0_157, %c0_158] : memref<32x1x128xf32, #tpu.memory_space<vmem>>, vector<1x1x128xf32>
    %158 = vector.shape_cast %157 : vector<1x1x128xf32> to vector<1x128xf32>
    %c31 = arith.constant 31 : index
    %c0_159 = arith.constant 0 : index
    %159 = vector.load %arg19[%c31, %c0_159] : memref<64x128xf32, #tpu.memory_space<vmem>>, vector<1x128xf32>
    tpu.vector_store %arg19[%c31, %c0_159], %158 {strides = array<i32>} : memref<64x128xf32, #tpu.memory_space<vmem>>, vector<1x128xf32>,
    %c0_160 = arith.constant 0 : index
    %c4_161 = arith.constant 4 : index
    %160 = memref.load %arg0[%c0_160, %c4_161] : memref<8x8xi32, #tpu.memory_space<smem>>
    %161 = arith.index_cast %160 : i32 to index
    %c0_162 = arith.constant 0 : index
    %c0_163 = arith.constant 0 : index
    %162 = vector.load %arg1[%161, %c0_162, %c0_163] : memref<32x1x128xf32, #tpu.memory_space<vmem>>, vector<1x1x128xf32>
    %163 = vector.shape_cast %162 : vector<1x1x128xf32> to vector<1x128xf32>
    %c32 = arith.constant 32 : index
    %c0_164 = arith.constant 0 : index
    %164 = vector.load %arg19[%c32, %c0_164] : memref<64x128xf32, #tpu.memory_space<vmem>>, vector<1x128xf32>
    tpu.vector_store %arg19[%c32, %c0_164], %163 {strides = array<i32>} : memref<64x128xf32, #tpu.memory_space<vmem>>, vector<1x128xf32>,
    %c1_165 = arith.constant 1 : index
    %c4_166 = arith.constant 4 : index
    %165 = memref.load %arg0[%c1_165, %c4_166] : memref<8x8xi32, #tpu.memory_space<smem>>
    %166 = arith.index_cast %165 : i32 to index
    %c0_167 = arith.constant 0 : index
    %c0_168 = arith.constant 0 : index
    %167 = vector.load %arg1[%166, %c0_167, %c0_168] : memref<32x1x128xf32, #tpu.memory_space<vmem>>, vector<1x1x128xf32>
    %168 = vector.shape_cast %167 : vector<1x1x128xf32> to vector<1x128xf32>
    %c33 = arith.constant 33 : index
    %c0_169 = arith.constant 0 : index
    %169 = vector.load %arg19[%c33, %c0_169] : memref<64x128xf32, #tpu.memory_space<vmem>>, vector<1x128xf32>
    tpu.vector_store %arg19[%c33, %c0_169], %168 {strides = array<i32>} : memref<64x128xf32, #tpu.memory_space<vmem>>, vector<1x128xf32>,
    %c2_170 = arith.constant 2 : index
    %c4_171 = arith.constant 4 : index
    %170 = memref.load %arg0[%c2_170, %c4_171] : memref<8x8xi32, #tpu.memory_space<smem>>
    %171 = arith.index_cast %170 : i32 to index
    %c0_172 = arith.constant 0 : index
    %c0_173 = arith.constant 0 : index
    %172 = vector.load %arg1[%171, %c0_172, %c0_173] : memref<32x1x128xf32, #tpu.memory_space<vmem>>, vector<1x1x128xf32>
    %173 = vector.shape_cast %172 : vector<1x1x128xf32> to vector<1x128xf32>
    %c34 = arith.constant 34 : index
    %c0_174 = arith.constant 0 : index
    %174 = vector.load %arg19[%c34, %c0_174] : memref<64x128xf32, #tpu.memory_space<vmem>>, vector<1x128xf32>
    tpu.vector_store %arg19[%c34, %c0_174], %173 {strides = array<i32>} : memref<64x128xf32, #tpu.memory_space<vmem>>, vector<1x128xf32>,
    %c3_175 = arith.constant 3 : index
    %c4_176 = arith.constant 4 : index
    %175 = memref.load %arg0[%c3_175, %c4_176] : memref<8x8xi32, #tpu.memory_space<smem>>
    %176 = arith.index_cast %175 : i32 to index
    %c0_177 = arith.constant 0 : index
    %c0_178 = arith.constant 0 : index
    %177 = vector.load %arg1[%176, %c0_177, %c0_178] : memref<32x1x128xf32, #tpu.memory_space<vmem>>, vector<1x1x128xf32>
    %178 = vector.shape_cast %177 : vector<1x1x128xf32> to vector<1x128xf32>
    %c35 = arith.constant 35 : index
    %c0_179 = arith.constant 0 : index
    %179 = vector.load %arg19[%c35, %c0_179] : memref<64x128xf32, #tpu.memory_space<vmem>>, vector<1x128xf32>
    tpu.vector_store %arg19[%c35, %c0_179], %178 {strides = array<i32>} : memref<64x128xf32, #tpu.memory_space<vmem>>, vector<1x128xf32>,
    %c4_180 = arith.constant 4 : index
    %c4_181 = arith.constant 4 : index
    %180 = memref.load %arg0[%c4_180, %c4_181] : memref<8x8xi32, #tpu.memory_space<smem>>
    %181 = arith.index_cast %180 : i32 to index
    %c0_182 = arith.constant 0 : index
    %c0_183 = arith.constant 0 : index
    %182 = vector.load %arg1[%181, %c0_182, %c0_183] : memref<32x1x128xf32, #tpu.memory_space<vmem>>, vector<1x1x128xf32>
    %183 = vector.shape_cast %182 : vector<1x1x128xf32> to vector<1x128xf32>
    %c36 = arith.constant 36 : index
    %c0_184 = arith.constant 0 : index
    %184 = vector.load %arg19[%c36, %c0_184] : memref<64x128xf32, #tpu.memory_space<vmem>>, vector<1x128xf32>
    tpu.vector_store %arg19[%c36, %c0_184], %183 {strides = array<i32>} : memref<64x128xf32, #tpu.memory_space<vmem>>, vector<1x128xf32>,
    %c5_185 = arith.constant 5 : index
    %c4_186 = arith.constant 4 : index
    %185 = memref.load %arg0[%c5_185, %c4_186] : memref<8x8xi32, #tpu.memory_space<smem>>
    %186 = arith.index_cast %185 : i32 to index
    %c0_187 = arith.constant 0 : index
    %c0_188 = arith.constant 0 : index
    %187 = vector.load %arg1[%186, %c0_187, %c0_188] : memref<32x1x128xf32, #tpu.memory_space<vmem>>, vector<1x1x128xf32>
    %188 = vector.shape_cast %187 : vector<1x1x128xf32> to vector<1x128xf32>
    %c37 = arith.constant 37 : index
    %c0_189 = arith.constant 0 : index
    %189 = vector.load %arg19[%c37, %c0_189] : memref<64x128xf32, #tpu.memory_space<vmem>>, vector<1x128xf32>
    tpu.vector_store %arg19[%c37, %c0_189], %188 {strides = array<i32>} : memref<64x128xf32, #tpu.memory_space<vmem>>, vector<1x128xf32>,
    %c6_190 = arith.constant 6 : index
    %c4_191 = arith.constant 4 : index
    %190 = memref.load %arg0[%c6_190, %c4_191] : memref<8x8xi32, #tpu.memory_space<smem>>
    %191 = arith.index_cast %190 : i32 to index
    %c0_192 = arith.constant 0 : index
    %c0_193 = arith.constant 0 : index
    %192 = vector.load %arg1[%191, %c0_192, %c0_193] : memref<32x1x128xf32, #tpu.memory_space<vmem>>, vector<1x1x128xf32>
    %193 = vector.shape_cast %192 : vector<1x1x128xf32> to vector<1x128xf32>
    %c38 = arith.constant 38 : index
    %c0_194 = arith.constant 0 : index
    %194 = vector.load %arg19[%c38, %c0_194] : memref<64x128xf32, #tpu.memory_space<vmem>>, vector<1x128xf32>
    tpu.vector_store %arg19[%c38, %c0_194], %193 {strides = array<i32>} : memref<64x128xf32, #tpu.memory_space<vmem>>, vector<1x128xf32>,
    %c7_195 = arith.constant 7 : index
    %c4_196 = arith.constant 4 : index
    %195 = memref.load %arg0[%c7_195, %c4_196] : memref<8x8xi32, #tpu.memory_space<smem>>
    %196 = arith.index_cast %195 : i32 to index
    %c0_197 = arith.constant 0 : index
    %c0_198 = arith.constant 0 : index
    %197 = vector.load %arg1[%196, %c0_197, %c0_198] : memref<32x1x128xf32, #tpu.memory_space<vmem>>, vector<1x1x128xf32>
    %198 = vector.shape_cast %197 : vector<1x1x128xf32> to vector<1x128xf32>
    %c39 = arith.constant 39 : index
    %c0_199 = arith.constant 0 : index
    %199 = vector.load %arg19[%c39, %c0_199] : memref<64x128xf32, #tpu.memory_space<vmem>>, vector<1x128xf32>
    tpu.vector_store %arg19[%c39, %c0_199], %198 {strides = array<i32>} : memref<64x128xf32, #tpu.memory_space<vmem>>, vector<1x128xf32>,
    %c0_200 = arith.constant 0 : index
    %c5_201 = arith.constant 5 : index
    %200 = memref.load %arg0[%c0_200, %c5_201] : memref<8x8xi32, #tpu.memory_space<smem>>
    %201 = arith.index_cast %200 : i32 to index
    %c0_202 = arith.constant 0 : index
    %c0_203 = arith.constant 0 : index
    %202 = vector.load %arg1[%201, %c0_202, %c0_203] : memref<32x1x128xf32, #tpu.memory_space<vmem>>, vector<1x1x128xf32>
    %203 = vector.shape_cast %202 : vector<1x1x128xf32> to vector<1x128xf32>
    %c40 = arith.constant 40 : index
    %c0_204 = arith.constant 0 : index
    %204 = vector.load %arg19[%c40, %c0_204] : memref<64x128xf32, #tpu.memory_space<vmem>>, vector<1x128xf32>
    tpu.vector_store %arg19[%c40, %c0_204], %203 {strides = array<i32>} : memref<64x128xf32, #tpu.memory_space<vmem>>, vector<1x128xf32>,
    %c1_205 = arith.constant 1 : index
    %c5_206 = arith.constant 5 : index
    %205 = memref.load %arg0[%c1_205, %c5_206] : memref<8x8xi32, #tpu.memory_space<smem>>
    %206 = arith.index_cast %205 : i32 to index
    %c0_207 = arith.constant 0 : index
    %c0_208 = arith.constant 0 : index
    %207 = vector.load %arg1[%206, %c0_207, %c0_208] : memref<32x1x128xf32, #tpu.memory_space<vmem>>, vector<1x1x128xf32>
    %208 = vector.shape_cast %207 : vector<1x1x128xf32> to vector<1x128xf32>
    %c41 = arith.constant 41 : index
    %c0_209 = arith.constant 0 : index
    %209 = vector.load %arg19[%c41, %c0_209] : memref<64x128xf32, #tpu.memory_space<vmem>>, vector<1x128xf32>
    tpu.vector_store %arg19[%c41, %c0_209], %208 {strides = array<i32>} : memref<64x128xf32, #tpu.memory_space<vmem>>, vector<1x128xf32>,
    %c2_210 = arith.constant 2 : index
    %c5_211 = arith.constant 5 : index
    %210 = memref.load %arg0[%c2_210, %c5_211] : memref<8x8xi32, #tpu.memory_space<smem>>
    %211 = arith.index_cast %210 : i32 to index
    %c0_212 = arith.constant 0 : index
    %c0_213 = arith.constant 0 : index
    %212 = vector.load %arg1[%211, %c0_212, %c0_213] : memref<32x1x128xf32, #tpu.memory_space<vmem>>, vector<1x1x128xf32>
    %213 = vector.shape_cast %212 : vector<1x1x128xf32> to vector<1x128xf32>
    %c42 = arith.constant 42 : index
    %c0_214 = arith.constant 0 : index
    %214 = vector.load %arg19[%c42, %c0_214] : memref<64x128xf32, #tpu.memory_space<vmem>>, vector<1x128xf32>
    tpu.vector_store %arg19[%c42, %c0_214], %213 {strides = array<i32>} : memref<64x128xf32, #tpu.memory_space<vmem>>, vector<1x128xf32>,
    %c3_215 = arith.constant 3 : index
    %c5_216 = arith.constant 5 : index
    %215 = memref.load %arg0[%c3_215, %c5_216] : memref<8x8xi32, #tpu.memory_space<smem>>
    %216 = arith.index_cast %215 : i32 to index
    %c0_217 = arith.constant 0 : index
    %c0_218 = arith.constant 0 : index
    %217 = vector.load %arg1[%216, %c0_217, %c0_218] : memref<32x1x128xf32, #tpu.memory_space<vmem>>, vector<1x1x128xf32>
    %218 = vector.shape_cast %217 : vector<1x1x128xf32> to vector<1x128xf32>
    %c43 = arith.constant 43 : index
    %c0_219 = arith.constant 0 : index
    %219 = vector.load %arg19[%c43, %c0_219] : memref<64x128xf32, #tpu.memory_space<vmem>>, vector<1x128xf32>
    tpu.vector_store %arg19[%c43, %c0_219], %218 {strides = array<i32>} : memref<64x128xf32, #tpu.memory_space<vmem>>, vector<1x128xf32>,
    %c4_220 = arith.constant 4 : index
    %c5_221 = arith.constant 5 : index
    %220 = memref.load %arg0[%c4_220, %c5_221] : memref<8x8xi32, #tpu.memory_space<smem>>
    %221 = arith.index_cast %220 : i32 to index
    %c0_222 = arith.constant 0 : index
    %c0_223 = arith.constant 0 : index
    %222 = vector.load %arg1[%221, %c0_222, %c0_223] : memref<32x1x128xf32, #tpu.memory_space<vmem>>, vector<1x1x128xf32>
    %223 = vector.shape_cast %222 : vector<1x1x128xf32> to vector<1x128xf32>
    %c44 = arith.constant 44 : index
    %c0_224 = arith.constant 0 : index
    %224 = vector.load %arg19[%c44, %c0_224] : memref<64x128xf32, #tpu.memory_space<vmem>>, vector<1x128xf32>
    tpu.vector_store %arg19[%c44, %c0_224], %223 {strides = array<i32>} : memref<64x128xf32, #tpu.memory_space<vmem>>, vector<1x128xf32>,
    %c5_225 = arith.constant 5 : index
    %c5_226 = arith.constant 5 : index
    %225 = memref.load %arg0[%c5_225, %c5_226] : memref<8x8xi32, #tpu.memory_space<smem>>
    %226 = arith.index_cast %225 : i32 to index
    %c0_227 = arith.constant 0 : index
    %c0_228 = arith.constant 0 : index
    %227 = vector.load %arg1[%226, %c0_227, %c0_228] : memref<32x1x128xf32, #tpu.memory_space<vmem>>, vector<1x1x128xf32>
    %228 = vector.shape_cast %227 : vector<1x1x128xf32> to vector<1x128xf32>
    %c45 = arith.constant 45 : index
    %c0_229 = arith.constant 0 : index
    %229 = vector.load %arg19[%c45, %c0_229] : memref<64x128xf32, #tpu.memory_space<vmem>>, vector<1x128xf32>
    tpu.vector_store %arg19[%c45, %c0_229], %228 {strides = array<i32>} : memref<64x128xf32, #tpu.memory_space<vmem>>, vector<1x128xf32>,
    %c6_230 = arith.constant 6 : index
    %c5_231 = arith.constant 5 : index
    %230 = memref.load %arg0[%c6_230, %c5_231] : memref<8x8xi32, #tpu.memory_space<smem>>
    %231 = arith.index_cast %230 : i32 to index
    %c0_232 = arith.constant 0 : index
    %c0_233 = arith.constant 0 : index
    %232 = vector.load %arg1[%231, %c0_232, %c0_233] : memref<32x1x128xf32, #tpu.memory_space<vmem>>, vector<1x1x128xf32>
    %233 = vector.shape_cast %232 : vector<1x1x128xf32> to vector<1x128xf32>
    %c46 = arith.constant 46 : index
    %c0_234 = arith.constant 0 : index
    %234 = vector.load %arg19[%c46, %c0_234] : memref<64x128xf32, #tpu.memory_space<vmem>>, vector<1x128xf32>
    tpu.vector_store %arg19[%c46, %c0_234], %233 {strides = array<i32>} : memref<64x128xf32, #tpu.memory_space<vmem>>, vector<1x128xf32>,
    %c7_235 = arith.constant 7 : index
    %c5_236 = arith.constant 5 : index
    %235 = memref.load %arg0[%c7_235, %c5_236] : memref<8x8xi32, #tpu.memory_space<smem>>
    %236 = arith.index_cast %235 : i32 to index
    %c0_237 = arith.constant 0 : index
    %c0_238 = arith.constant 0 : index
    %237 = vector.load %arg1[%236, %c0_237, %c0_238] : memref<32x1x128xf32, #tpu.memory_space<vmem>>, vector<1x1x128xf32>
    %238 = vector.shape_cast %237 : vector<1x1x128xf32> to vector<1x128xf32>
    %c47 = arith.constant 47 : index
    %c0_239 = arith.constant 0 : index
    %239 = vector.load %arg19[%c47, %c0_239] : memref<64x128xf32, #tpu.memory_space<vmem>>, vector<1x128xf32>
    tpu.vector_store %arg19[%c47, %c0_239], %238 {strides = array<i32>} : memref<64x128xf32, #tpu.memory_space<vmem>>, vector<1x128xf32>,
    %c0_240 = arith.constant 0 : index
    %c6_241 = arith.constant 6 : index
    %240 = memref.load %arg0[%c0_240, %c6_241] : memref<8x8xi32, #tpu.memory_space<smem>>
    %241 = arith.index_cast %240 : i32 to index
    %c0_242 = arith.constant 0 : index
    %c0_243 = arith.constant 0 : index
    %242 = vector.load %arg1[%241, %c0_242, %c0_243] : memref<32x1x128xf32, #tpu.memory_space<vmem>>, vector<1x1x128xf32>
    %243 = vector.shape_cast %242 : vector<1x1x128xf32> to vector<1x128xf32>
    %c48 = arith.constant 48 : index
    %c0_244 = arith.constant 0 : index
    %244 = vector.load %arg19[%c48, %c0_244] : memref<64x128xf32, #tpu.memory_space<vmem>>, vector<1x128xf32>
    tpu.vector_store %arg19[%c48, %c0_244], %243 {strides = array<i32>} : memref<64x128xf32, #tpu.memory_space<vmem>>, vector<1x128xf32>,
    %c1_245 = arith.constant 1 : index
    %c6_246 = arith.constant 6 : index
    %245 = memref.load %arg0[%c1_245, %c6_246] : memref<8x8xi32, #tpu.memory_space<smem>>
    %246 = arith.index_cast %245 : i32 to index
    %c0_247 = arith.constant 0 : index
    %c0_248 = arith.constant 0 : index
    %247 = vector.load %arg1[%246, %c0_247, %c0_248] : memref<32x1x128xf32, #tpu.memory_space<vmem>>, vector<1x1x128xf32>
    %248 = vector.shape_cast %247 : vector<1x1x128xf32> to vector<1x128xf32>
    %c49 = arith.constant 49 : index
    %c0_249 = arith.constant 0 : index
    %249 = vector.load %arg19[%c49, %c0_249] : memref<64x128xf32, #tpu.memory_space<vmem>>, vector<1x128xf32>
    tpu.vector_store %arg19[%c49, %c0_249], %248 {strides = array<i32>} : memref<64x128xf32, #tpu.memory_space<vmem>>, vector<1x128xf32>,
    %c2_250 = arith.constant 2 : index
    %c6_251 = arith.constant 6 : index
    %250 = memref.load %arg0[%c2_250, %c6_251] : memref<8x8xi32, #tpu.memory_space<smem>>
    %251 = arith.index_cast %250 : i32 to index
    %c0_252 = arith.constant 0 : index
    %c0_253 = arith.constant 0 : index
    %252 = vector.load %arg1[%251, %c0_252, %c0_253] : memref<32x1x128xf32, #tpu.memory_space<vmem>>, vector<1x1x128xf32>
    %253 = vector.shape_cast %252 : vector<1x1x128xf32> to vector<1x128xf32>
    %c50 = arith.constant 50 : index
    %c0_254 = arith.constant 0 : index
    %254 = vector.load %arg19[%c50, %c0_254] : memref<64x128xf32, #tpu.memory_space<vmem>>, vector<1x128xf32>
    tpu.vector_store %arg19[%c50, %c0_254], %253 {strides = array<i32>} : memref<64x128xf32, #tpu.memory_space<vmem>>, vector<1x128xf32>,
    %c3_255 = arith.constant 3 : index
    %c6_256 = arith.constant 6 : index
    %255 = memref.load %arg0[%c3_255, %c6_256] : memref<8x8xi32, #tpu.memory_space<smem>>
    %256 = arith.index_cast %255 : i32 to index
    %c0_257 = arith.constant 0 : index
    %c0_258 = arith.constant 0 : index
    %257 = vector.load %arg1[%256, %c0_257, %c0_258] : memref<32x1x128xf32, #tpu.memory_space<vmem>>, vector<1x1x128xf32>
    %258 = vector.shape_cast %257 : vector<1x1x128xf32> to vector<1x128xf32>
    %c51 = arith.constant 51 : index
    %c0_259 = arith.constant 0 : index
    %259 = vector.load %arg19[%c51, %c0_259] : memref<64x128xf32, #tpu.memory_space<vmem>>, vector<1x128xf32>
    tpu.vector_store %arg19[%c51, %c0_259], %258 {strides = array<i32>} : memref<64x128xf32, #tpu.memory_space<vmem>>, vector<1x128xf32>,
    %c4_260 = arith.constant 4 : index
    %c6_261 = arith.constant 6 : index
    %260 = memref.load %arg0[%c4_260, %c6_261] : memref<8x8xi32, #tpu.memory_space<smem>>
    %261 = arith.index_cast %260 : i32 to index
    %c0_262 = arith.constant 0 : index
    %c0_263 = arith.constant 0 : index
    %262 = vector.load %arg1[%261, %c0_262, %c0_263] : memref<32x1x128xf32, #tpu.memory_space<vmem>>, vector<1x1x128xf32>
    %263 = vector.shape_cast %262 : vector<1x1x128xf32> to vector<1x128xf32>
    %c52 = arith.constant 52 : index
    %c0_264 = arith.constant 0 : index
    %264 = vector.load %arg19[%c52, %c0_264] : memref<64x128xf32, #tpu.memory_space<vmem>>, vector<1x128xf32>
    tpu.vector_store %arg19[%c52, %c0_264], %263 {strides = array<i32>} : memref<64x128xf32, #tpu.memory_space<vmem>>, vector<1x128xf32>,
    %c5_265 = arith.constant 5 : index
    %c6_266 = arith.constant 6 : index
    %265 = memref.load %arg0[%c5_265, %c6_266] : memref<8x8xi32, #tpu.memory_space<smem>>
    %266 = arith.index_cast %265 : i32 to index
    %c0_267 = arith.constant 0 : index
    %c0_268 = arith.constant 0 : index
    %267 = vector.load %arg1[%266, %c0_267, %c0_268] : memref<32x1x128xf32, #tpu.memory_space<vmem>>, vector<1x1x128xf32>
    %268 = vector.shape_cast %267 : vector<1x1x128xf32> to vector<1x128xf32>
    %c53 = arith.constant 53 : index
    %c0_269 = arith.constant 0 : index
    %269 = vector.load %arg19[%c53, %c0_269] : memref<64x128xf32, #tpu.memory_space<vmem>>, vector<1x128xf32>
    tpu.vector_store %arg19[%c53, %c0_269], %268 {strides = array<i32>} : memref<64x128xf32, #tpu.memory_space<vmem>>, vector<1x128xf32>,
    %c6_270 = arith.constant 6 : index
    %c6_271 = arith.constant 6 : index
    %270 = memref.load %arg0[%c6_270, %c6_271] : memref<8x8xi32, #tpu.memory_space<smem>>
    %271 = arith.index_cast %270 : i32 to index
    %c0_272 = arith.constant 0 : index
    %c0_273 = arith.constant 0 : index
    %272 = vector.load %arg1[%271, %c0_272, %c0_273] : memref<32x1x128xf32, #tpu.memory_space<vmem>>, vector<1x1x128xf32>
    %273 = vector.shape_cast %272 : vector<1x1x128xf32> to vector<1x128xf32>
    %c54 = arith.constant 54 : index
    %c0_274 = arith.constant 0 : index
    %274 = vector.load %arg19[%c54, %c0_274] : memref<64x128xf32, #tpu.memory_space<vmem>>, vector<1x128xf32>
    tpu.vector_store %arg19[%c54, %c0_274], %273 {strides = array<i32>} : memref<64x128xf32, #tpu.memory_space<vmem>>, vector<1x128xf32>,
    %c7_275 = arith.constant 7 : index
    %c6_276 = arith.constant 6 : index
    %275 = memref.load %arg0[%c7_275, %c6_276] : memref<8x8xi32, #tpu.memory_space<smem>>
    %276 = arith.index_cast %275 : i32 to index
    %c0_277 = arith.constant 0 : index
    %c0_278 = arith.constant 0 : index
    %277 = vector.load %arg1[%276, %c0_277, %c0_278] : memref<32x1x128xf32, #tpu.memory_space<vmem>>, vector<1x1x128xf32>
    %278 = vector.shape_cast %277 : vector<1x1x128xf32> to vector<1x128xf32>
    %c55 = arith.constant 55 : index
    %c0_279 = arith.constant 0 : index
    %279 = vector.load %arg19[%c55, %c0_279] : memref<64x128xf32, #tpu.memory_space<vmem>>, vector<1x128xf32>
    tpu.vector_store %arg19[%c55, %c0_279], %278 {strides = array<i32>} : memref<64x128xf32, #tpu.memory_space<vmem>>, vector<1x128xf32>,
    %c0_280 = arith.constant 0 : index
    %c7_281 = arith.constant 7 : index
    %280 = memref.load %arg0[%c0_280, %c7_281] : memref<8x8xi32, #tpu.memory_space<smem>>
    %281 = arith.index_cast %280 : i32 to index
    %c0_282 = arith.constant 0 : index
    %c0_283 = arith.constant 0 : index
    %282 = vector.load %arg1[%281, %c0_282, %c0_283] : memref<32x1x128xf32, #tpu.memory_space<vmem>>, vector<1x1x128xf32>
    %283 = vector.shape_cast %282 : vector<1x1x128xf32> to vector<1x128xf32>
    %c56 = arith.constant 56 : index
    %c0_284 = arith.constant 0 : index
    %284 = vector.load %arg19[%c56, %c0_284] : memref<64x128xf32, #tpu.memory_space<vmem>>, vector<1x128xf32>
    tpu.vector_store %arg19[%c56, %c0_284], %283 {strides = array<i32>} : memref<64x128xf32, #tpu.memory_space<vmem>>, vector<1x128xf32>,
    %c1_285 = arith.constant 1 : index
    %c7_286 = arith.constant 7 : index
    %285 = memref.load %arg0[%c1_285, %c7_286] : memref<8x8xi32, #tpu.memory_space<smem>>
    %286 = arith.index_cast %285 : i32 to index
    %c0_287 = arith.constant 0 : index
    %c0_288 = arith.constant 0 : index
    %287 = vector.load %arg1[%286, %c0_287, %c0_288] : memref<32x1x128xf32, #tpu.memory_space<vmem>>, vector<1x1x128xf32>
    %288 = vector.shape_cast %287 : vector<1x1x128xf32> to vector<1x128xf32>
    %c57 = arith.constant 57 : index
    %c0_289 = arith.constant 0 : index
    %289 = vector.load %arg19[%c57, %c0_289] : memref<64x128xf32, #tpu.memory_space<vmem>>, vector<1x128xf32>
    tpu.vector_store %arg19[%c57, %c0_289], %288 {strides = array<i32>} : memref<64x128xf32, #tpu.memory_space<vmem>>, vector<1x128xf32>,
    %c2_290 = arith.constant 2 : index
    %c7_291 = arith.constant 7 : index
    %290 = memref.load %arg0[%c2_290, %c7_291] : memref<8x8xi32, #tpu.memory_space<smem>>
    %291 = arith.index_cast %290 : i32 to index
    %c0_292 = arith.constant 0 : index
    %c0_293 = arith.constant 0 : index
    %292 = vector.load %arg1[%291, %c0_292, %c0_293] : memref<32x1x128xf32, #tpu.memory_space<vmem>>, vector<1x1x128xf32>
    %293 = vector.shape_cast %292 : vector<1x1x128xf32> to vector<1x128xf32>
    %c58 = arith.constant 58 : index
    %c0_294 = arith.constant 0 : index
    %294 = vector.load %arg19[%c58, %c0_294] : memref<64x128xf32, #tpu.memory_space<vmem>>, vector<1x128xf32>
    tpu.vector_store %arg19[%c58, %c0_294], %293 {strides = array<i32>} : memref<64x128xf32, #tpu.memory_space<vmem>>, vector<1x128xf32>,
    %c3_295 = arith.constant 3 : index
    %c7_296 = arith.constant 7 : index
    %295 = memref.load %arg0[%c3_295, %c7_296] : memref<8x8xi32, #tpu.memory_space<smem>>
    %296 = arith.index_cast %295 : i32 to index
    %c0_297 = arith.constant 0 : index
    %c0_298 = arith.constant 0 : index
    %297 = vector.load %arg1[%296, %c0_297, %c0_298] : memref<32x1x128xf32, #tpu.memory_space<vmem>>, vector<1x1x128xf32>
    %298 = vector.shape_cast %297 : vector<1x1x128xf32> to vector<1x128xf32>
    %c59 = arith.constant 59 : index
    %c0_299 = arith.constant 0 : index
    %299 = vector.load %arg19[%c59, %c0_299] : memref<64x128xf32, #tpu.memory_space<vmem>>, vector<1x128xf32>
    tpu.vector_store %arg19[%c59, %c0_299], %298 {strides = array<i32>} : memref<64x128xf32, #tpu.memory_space<vmem>>, vector<1x128xf32>,
    %c4_300 = arith.constant 4 : index
    %c7_301 = arith.constant 7 : index
    %300 = memref.load %arg0[%c4_300, %c7_301] : memref<8x8xi32, #tpu.memory_space<smem>>
    %301 = arith.index_cast %300 : i32 to index
    %c0_302 = arith.constant 0 : index
    %c0_303 = arith.constant 0 : index
    %302 = vector.load %arg1[%301, %c0_302, %c0_303] : memref<32x1x128xf32, #tpu.memory_space<vmem>>, vector<1x1x128xf32>
    %303 = vector.shape_cast %302 : vector<1x1x128xf32> to vector<1x128xf32>
    %c60 = arith.constant 60 : index
    %c0_304 = arith.constant 0 : index
    %304 = vector.load %arg19[%c60, %c0_304] : memref<64x128xf32, #tpu.memory_space<vmem>>, vector<1x128xf32>
    tpu.vector_store %arg19[%c60, %c0_304], %303 {strides = array<i32>} : memref<64x128xf32, #tpu.memory_space<vmem>>, vector<1x128xf32>,
    %c5_305 = arith.constant 5 : index
    %c7_306 = arith.constant 7 : index
    %305 = memref.load %arg0[%c5_305, %c7_306] : memref<8x8xi32, #tpu.memory_space<smem>>
    %306 = arith.index_cast %305 : i32 to index
    %c0_307 = arith.constant 0 : index
    %c0_308 = arith.constant 0 : index
    %307 = vector.load %arg1[%306, %c0_307, %c0_308] : memref<32x1x128xf32, #tpu.memory_space<vmem>>, vector<1x1x128xf32>
    %308 = vector.shape_cast %307 : vector<1x1x128xf32> to vector<1x128xf32>
    %c61 = arith.constant 61 : index
    %c0_309 = arith.constant 0 : index
    %309 = vector.load %arg19[%c61, %c0_309] : memref<64x128xf32, #tpu.memory_space<vmem>>, vector<1x128xf32>
    tpu.vector_store %arg19[%c61, %c0_309], %308 {strides = array<i32>} : memref<64x128xf32, #tpu.memory_space<vmem>>, vector<1x128xf32>,
    %c6_310 = arith.constant 6 : index
    %c7_311 = arith.constant 7 : index
    %310 = memref.load %arg0[%c6_310, %c7_311] : memref<8x8xi32, #tpu.memory_space<smem>>
    %311 = arith.index_cast %310 : i32 to index
    %c0_312 = arith.constant 0 : index
    %c0_313 = arith.constant 0 : index
    %312 = vector.load %arg1[%311, %c0_312, %c0_313] : memref<32x1x128xf32, #tpu.memory_space<vmem>>, vector<1x1x128xf32>
    %313 = vector.shape_cast %312 : vector<1x1x128xf32> to vector<1x128xf32>
    %c62 = arith.constant 62 : index
    %c0_314 = arith.constant 0 : index
    %314 = vector.load %arg19[%c62, %c0_314] : memref<64x128xf32, #tpu.memory_space<vmem>>, vector<1x128xf32>
    tpu.vector_store %arg19[%c62, %c0_314], %313 {strides = array<i32>} : memref<64x128xf32, #tpu.memory_space<vmem>>, vector<1x128xf32>,
    %c7_315 = arith.constant 7 : index
    %c7_316 = arith.constant 7 : index
    %315 = memref.load %arg0[%c7_315, %c7_316] : memref<8x8xi32, #tpu.memory_space<smem>>
    %316 = arith.index_cast %315 : i32 to index
    %c0_317 = arith.constant 0 : index
    %c0_318 = arith.constant 0 : index
    %317 = vector.load %arg1[%316, %c0_317, %c0_318] : memref<32x1x128xf32, #tpu.memory_space<vmem>>, vector<1x1x128xf32>
    %318 = vector.shape_cast %317 : vector<1x1x128xf32> to vector<1x128xf32>
    %c63 = arith.constant 63 : index
    %c0_319 = arith.constant 0 : index
    %319 = vector.load %arg19[%c63, %c0_319] : memref<64x128xf32, #tpu.memory_space<vmem>>, vector<1x128xf32>
    tpu.vector_store %arg19[%c63, %c0_319], %318 {strides = array<i32>} : memref<64x128xf32, #tpu.memory_space<vmem>>, vector<1x128xf32>,
    %c0_320 = arith.constant 0 : index
    %c0_321 = arith.constant 0 : index
    %320 = vector.load %arg19[%c0_320, %c0_321] : memref<64x128xf32, #tpu.memory_space<vmem>>, vector<64x128xf32>
    %c0_322 = arith.constant 0 : index
    %c0_323 = arith.constant 0 : index
    %321 = vector.load %arg4[%c0_322, %c0_323] : memref<128x512xf32, #tpu.memory_space<vmem>>, vector<128x512xf32>
    %cst = arith.constant dense<0.000000e+00> : vector<64x512xf32>
    %322 = tpu.matmul %320, %321, %cst {dimension_numbers = #tpu.dot_dimension_numbers<[1], [0], [0], [1], [0, 0, 1, 1], [], []>} : vector<64x128xf32>, vector<128x512xf32>, vector<64x512xf32> -> vector<64x512xf32>
    %c0_324 = arith.constant 0 : index
    %c0_325 = arith.constant 0 : index
    %323 = vector.load %arg6[%c0_324, %c0_325] : memref<1x512xf32, #tpu.memory_space<vmem>>, vector<1x512xf32>
    %324 = vector.broadcast %323 : vector<1x512xf32> to vector<64x512xf32>
    %325 = arith.addf %322, %324 : vector<64x512xf32>
    %c0_326 = arith.constant 0 : index
    %c0_327 = arith.constant 0 : index
    %326 = vector.load %arg21[%c0_326, %c0_327] : memref<64x512xf32, #tpu.memory_space<vmem>>, vector<64x512xf32>
    tpu.vector_store %arg21[%c0_326, %c0_327], %325 {strides = array<i32>} : memref<64x512xf32, #tpu.memory_space<vmem>>, vector<64x512xf32>,
    %c0_328 = arith.constant 0 : index
    %c0_329 = arith.constant 0 : index
    %c0_330 = arith.constant 0 : index
    %327 = vector.load %arg2[%c0_328, %c0_329, %c0_330] : memref<2x8x128xf32, #tpu.memory_space<vmem>>, vector<1x8x128xf32>
    %328 = vector.shape_cast %327 : vector<1x8x128xf32> to vector<8x128xf32>
    %c0_331 = arith.constant 0 : index
    %c0_332 = arith.constant 0 : index
    %c0_333 = arith.constant 0 : index
    %329 = vector.load %arg3[%c0_331, %c0_332, %c0_333] : memref<2x8x128xf32, #tpu.memory_space<vmem>>, vector<1x8x128xf32>
    %330 = vector.shape_cast %329 : vector<1x8x128xf32> to vector<8x128xf32>
    %c0_334 = arith.constant 0 : index
    %c0_335 = arith.constant 0 : index
    %331 = vector.load %arg21[%c0_334, %c0_335] : memref<64x512xf32, #tpu.memory_space<vmem>>, vector<8x512xf32>
    %c0_336 = arith.constant 0 : index
    %c0_337 = arith.constant 0 : index
    %332 = vector.load %arg5[%c0_336, %c0_337] : memref<128x512xf32, #tpu.memory_space<vmem>>, vector<128x512xf32>
    %cst_338 = arith.constant dense<0.000000e+00> : vector<8x512xf32>
    %333 = tpu.matmul %328, %332, %cst_338 {dimension_numbers = #tpu.dot_dimension_numbers<[1], [0], [0], [1], [0, 0, 1, 1], [], []>} : vector<8x128xf32>, vector<128x512xf32>, vector<8x512xf32> -> vector<8x512xf32>
    %334 = arith.addf %331, %333 : vector<8x512xf32>
    %335 = vector.extract_strided_slice %334 {offsets = [0, 0], sizes = [8, 128], strides = [1, 1]} : vector<8x512xf32> to vector<8x128xf32>
    %336 = arith.negf %335 : vector<8x128xf32>
    %337 = math.exp %336 : vector<8x128xf32>
    %cst_339 = arith.constant 1.000000e+00 : f32
    %338 = vector.broadcast %cst_339 : f32 to vector<8x128xf32>
    %339 = arith.addf %338, %337 : vector<8x128xf32>
    %340 = arith.divf %338, %339 : vector<8x128xf32>
    %341 = vector.extract_strided_slice %334 {offsets = [0, 128], sizes = [8, 128], strides = [1, 1]} : vector<8x512xf32> to vector<8x128xf32>
    %342 = arith.negf %341 : vector<8x128xf32>
    %343 = math.exp %342 : vector<8x128xf32>
    %cst_340 = arith.constant 1.000000e+00 : f32
    %344 = vector.broadcast %cst_340 : f32 to vector<8x128xf32>
    %345 = arith.addf %344, %343 : vector<8x128xf32>
    %346 = arith.divf %344, %345 : vector<8x128xf32>
    %347 = vector.extract_strided_slice %334 {offsets = [0, 256], sizes = [8, 128], strides = [1, 1]} : vector<8x512xf32> to vector<8x128xf32>
    %348 = math.tanh %347 : vector<8x128xf32>
    %349 = vector.extract_strided_slice %334 {offsets = [0, 384], sizes = [8, 128], strides = [1, 1]} : vector<8x512xf32> to vector<8x128xf32>
    %350 = arith.negf %349 : vector<8x128xf32>
    %351 = math.exp %350 : vector<8x128xf32>
    %cst_341 = arith.constant 1.000000e+00 : f32
    %352 = vector.broadcast %cst_341 : f32 to vector<8x128xf32>
    %353 = arith.addf %352, %351 : vector<8x128xf32>
    %354 = arith.divf %352, %353 : vector<8x128xf32>
    %355 = arith.mulf %346, %330 : vector<8x128xf32>
    %356 = arith.mulf %340, %348 : vector<8x128xf32>
    %357 = arith.addf %355, %356 : vector<8x128xf32>
    %358 = math.tanh %357 : vector<8x128xf32>
    %359 = arith.mulf %354, %358 : vector<8x128xf32>
    %c0_342 = arith.constant 0 : index
    %c0_343 = arith.constant 0 : index
    %360 = vector.load %arg20[%c0_342, %c0_343] : memref<64x128xf32, #tpu.memory_space<vmem>>, vector<8x128xf32>
    tpu.vector_store %arg20[%c0_342, %c0_343], %359 {strides = array<i32>} : memref<64x128xf32, #tpu.memory_space<vmem>>, vector<8x128xf32>,
    %c8_344 = arith.constant 8 : index
    %c0_345 = arith.constant 0 : index
    %361 = vector.load %arg21[%c8_344, %c0_345] : memref<64x512xf32, #tpu.memory_space<vmem>>, vector<8x512xf32>
    %c0_346 = arith.constant 0 : index
    %c0_347 = arith.constant 0 : index
    %362 = vector.load %arg5[%c0_346, %c0_347] : memref<128x512xf32, #tpu.memory_space<vmem>>, vector<128x512xf32>
    %cst_348 = arith.constant dense<0.000000e+00> : vector<8x512xf32>
    %363 = tpu.matmul %359, %362, %cst_348 {dimension_numbers = #tpu.dot_dimension_numbers<[1], [0], [0], [1], [0, 0, 1, 1], [], []>} : vector<8x128xf32>, vector<128x512xf32>, vector<8x512xf32> -> vector<8x512xf32>
    %364 = arith.addf %361, %363 : vector<8x512xf32>
    %365 = vector.extract_strided_slice %364 {offsets = [0, 0], sizes = [8, 128], strides = [1, 1]} : vector<8x512xf32> to vector<8x128xf32>
    %366 = arith.negf %365 : vector<8x128xf32>
    %367 = math.exp %366 : vector<8x128xf32>
    %cst_349 = arith.constant 1.000000e+00 : f32
    %368 = vector.broadcast %cst_349 : f32 to vector<8x128xf32>
    %369 = arith.addf %368, %367 : vector<8x128xf32>
    %370 = arith.divf %368, %369 : vector<8x128xf32>
    %371 = vector.extract_strided_slice %364 {offsets = [0, 128], sizes = [8, 128], strides = [1, 1]} : vector<8x512xf32> to vector<8x128xf32>
    %372 = arith.negf %371 : vector<8x128xf32>
    %373 = math.exp %372 : vector<8x128xf32>
    %cst_350 = arith.constant 1.000000e+00 : f32
    %374 = vector.broadcast %cst_350 : f32 to vector<8x128xf32>
    %375 = arith.addf %374, %373 : vector<8x128xf32>
    %376 = arith.divf %374, %375 : vector<8x128xf32>
    %377 = vector.extract_strided_slice %364 {offsets = [0, 256], sizes = [8, 128], strides = [1, 1]} : vector<8x512xf32> to vector<8x128xf32>
    %378 = math.tanh %377 : vector<8x128xf32>
    %379 = vector.extract_strided_slice %364 {offsets = [0, 384], sizes = [8, 128], strides = [1, 1]} : vector<8x512xf32> to vector<8x128xf32>
    %380 = arith.negf %379 : vector<8x128xf32>
    %381 = math.exp %380 : vector<8x128xf32>
    %cst_351 = arith.constant 1.000000e+00 : f32
    %382 = vector.broadcast %cst_351 : f32 to vector<8x128xf32>
    %383 = arith.addf %382, %381 : vector<8x128xf32>
    %384 = arith.divf %382, %383 : vector<8x128xf32>
    %385 = arith.mulf %376, %357 : vector<8x128xf32>
    %386 = arith.mulf %370, %378 : vector<8x128xf32>
    %387 = arith.addf %385, %386 : vector<8x128xf32>
    %388 = math.tanh %387 : vector<8x128xf32>
    %389 = arith.mulf %384, %388 : vector<8x128xf32>
    %c8_352 = arith.constant 8 : index
    %c0_353 = arith.constant 0 : index
    %390 = vector.load %arg20[%c8_352, %c0_353] : memref<64x128xf32, #tpu.memory_space<vmem>>, vector<8x128xf32>
    tpu.vector_store %arg20[%c8_352, %c0_353], %389 {strides = array<i32>} : memref<64x128xf32, #tpu.memory_space<vmem>>, vector<8x128xf32>,
    %c16_354 = arith.constant 16 : index
    %c0_355 = arith.constant 0 : index
    %391 = vector.load %arg21[%c16_354, %c0_355] : memref<64x512xf32, #tpu.memory_space<vmem>>, vector<8x512xf32>
    %c0_356 = arith.constant 0 : index
    %c0_357 = arith.constant 0 : index
    %392 = vector.load %arg5[%c0_356, %c0_357] : memref<128x512xf32, #tpu.memory_space<vmem>>, vector<128x512xf32>
    %cst_358 = arith.constant dense<0.000000e+00> : vector<8x512xf32>
    %393 = tpu.matmul %389, %392, %cst_358 {dimension_numbers = #tpu.dot_dimension_numbers<[1], [0], [0], [1], [0, 0, 1, 1], [], []>} : vector<8x128xf32>, vector<128x512xf32>, vector<8x512xf32> -> vector<8x512xf32>
    %394 = arith.addf %391, %393 : vector<8x512xf32>
    %395 = vector.extract_strided_slice %394 {offsets = [0, 0], sizes = [8, 128], strides = [1, 1]} : vector<8x512xf32> to vector<8x128xf32>
    %396 = arith.negf %395 : vector<8x128xf32>
    %397 = math.exp %396 : vector<8x128xf32>
    %cst_359 = arith.constant 1.000000e+00 : f32
    %398 = vector.broadcast %cst_359 : f32 to vector<8x128xf32>
    %399 = arith.addf %398, %397 : vector<8x128xf32>
    %400 = arith.divf %398, %399 : vector<8x128xf32>
    %401 = vector.extract_strided_slice %394 {offsets = [0, 128], sizes = [8, 128], strides = [1, 1]} : vector<8x512xf32> to vector<8x128xf32>
    %402 = arith.negf %401 : vector<8x128xf32>
    %403 = math.exp %402 : vector<8x128xf32>
    %cst_360 = arith.constant 1.000000e+00 : f32
    %404 = vector.broadcast %cst_360 : f32 to vector<8x128xf32>
    %405 = arith.addf %404, %403 : vector<8x128xf32>
    %406 = arith.divf %404, %405 : vector<8x128xf32>
    %407 = vector.extract_strided_slice %394 {offsets = [0, 256], sizes = [8, 128], strides = [1, 1]} : vector<8x512xf32> to vector<8x128xf32>
    %408 = math.tanh %407 : vector<8x128xf32>
    %409 = vector.extract_strided_slice %394 {offsets = [0, 384], sizes = [8, 128], strides = [1, 1]} : vector<8x512xf32> to vector<8x128xf32>
    %410 = arith.negf %409 : vector<8x128xf32>
    %411 = math.exp %410 : vector<8x128xf32>
    %cst_361 = arith.constant 1.000000e+00 : f32
    %412 = vector.broadcast %cst_361 : f32 to vector<8x128xf32>
    %413 = arith.addf %412, %411 : vector<8x128xf32>
    %414 = arith.divf %412, %413 : vector<8x128xf32>
    %415 = arith.mulf %406, %387 : vector<8x128xf32>
    %416 = arith.mulf %400, %408 : vector<8x128xf32>
    %417 = arith.addf %415, %416 : vector<8x128xf32>
    %418 = math.tanh %417 : vector<8x128xf32>
    %419 = arith.mulf %414, %418 : vector<8x128xf32>
    %c16_362 = arith.constant 16 : index
    %c0_363 = arith.constant 0 : index
    %420 = vector.load %arg20[%c16_362, %c0_363] : memref<64x128xf32, #tpu.memory_space<vmem>>, vector<8x128xf32>
    tpu.vector_store %arg20[%c16_362, %c0_363], %419 {strides = array<i32>} : memref<64x128xf32, #tpu.memory_space<vmem>>, vector<8x128xf32>,
    %c24_364 = arith.constant 24 : index
    %c0_365 = arith.constant 0 : index
    %421 = vector.load %arg21[%c24_364, %c0_365] : memref<64x512xf32, #tpu.memory_space<vmem>>, vector<8x512xf32>
    %c0_366 = arith.constant 0 : index
    %c0_367 = arith.constant 0 : index
    %422 = vector.load %arg5[%c0_366, %c0_367] : memref<128x512xf32, #tpu.memory_space<vmem>>, vector<128x512xf32>
    %cst_368 = arith.constant dense<0.000000e+00> : vector<8x512xf32>
    %423 = tpu.matmul %419, %422, %cst_368 {dimension_numbers = #tpu.dot_dimension_numbers<[1], [0], [0], [1], [0, 0, 1, 1], [], []>} : vector<8x128xf32>, vector<128x512xf32>, vector<8x512xf32> -> vector<8x512xf32>
    %424 = arith.addf %421, %423 : vector<8x512xf32>
    %425 = vector.extract_strided_slice %424 {offsets = [0, 0], sizes = [8, 128], strides = [1, 1]} : vector<8x512xf32> to vector<8x128xf32>
    %426 = arith.negf %425 : vector<8x128xf32>
    %427 = math.exp %426 : vector<8x128xf32>
    %cst_369 = arith.constant 1.000000e+00 : f32
    %428 = vector.broadcast %cst_369 : f32 to vector<8x128xf32>
    %429 = arith.addf %428, %427 : vector<8x128xf32>
    %430 = arith.divf %428, %429 : vector<8x128xf32>
    %431 = vector.extract_strided_slice %424 {offsets = [0, 128], sizes = [8, 128], strides = [1, 1]} : vector<8x512xf32> to vector<8x128xf32>
    %432 = arith.negf %431 : vector<8x128xf32>
    %433 = math.exp %432 : vector<8x128xf32>
    %cst_370 = arith.constant 1.000000e+00 : f32
    %434 = vector.broadcast %cst_370 : f32 to vector<8x128xf32>
    %435 = arith.addf %434, %433 : vector<8x128xf32>
    %436 = arith.divf %434, %435 : vector<8x128xf32>
    %437 = vector.extract_strided_slice %424 {offsets = [0, 256], sizes = [8, 128], strides = [1, 1]} : vector<8x512xf32> to vector<8x128xf32>
    %438 = math.tanh %437 : vector<8x128xf32>
    %439 = vector.extract_strided_slice %424 {offsets = [0, 384], sizes = [8, 128], strides = [1, 1]} : vector<8x512xf32> to vector<8x128xf32>
    %440 = arith.negf %439 : vector<8x128xf32>
    %441 = math.exp %440 : vector<8x128xf32>
    %cst_371 = arith.constant 1.000000e+00 : f32
    %442 = vector.broadcast %cst_371 : f32 to vector<8x128xf32>
    %443 = arith.addf %442, %441 : vector<8x128xf32>
    %444 = arith.divf %442, %443 : vector<8x128xf32>
    %445 = arith.mulf %436, %417 : vector<8x128xf32>
    %446 = arith.mulf %430, %438 : vector<8x128xf32>
    %447 = arith.addf %445, %446 : vector<8x128xf32>
    %448 = math.tanh %447 : vector<8x128xf32>
    %449 = arith.mulf %444, %448 : vector<8x128xf32>
    %c24_372 = arith.constant 24 : index
    %c0_373 = arith.constant 0 : index
    %450 = vector.load %arg20[%c24_372, %c0_373] : memref<64x128xf32, #tpu.memory_space<vmem>>, vector<8x128xf32>
    tpu.vector_store %arg20[%c24_372, %c0_373], %449 {strides = array<i32>} : memref<64x128xf32, #tpu.memory_space<vmem>>, vector<8x128xf32>,
    %c32_374 = arith.constant 32 : index
    %c0_375 = arith.constant 0 : index
    %451 = vector.load %arg21[%c32_374, %c0_375] : memref<64x512xf32, #tpu.memory_space<vmem>>, vector<8x512xf32>
    %c0_376 = arith.constant 0 : index
    %c0_377 = arith.constant 0 : index
    %452 = vector.load %arg5[%c0_376, %c0_377] : memref<128x512xf32, #tpu.memory_space<vmem>>, vector<128x512xf32>
    %cst_378 = arith.constant dense<0.000000e+00> : vector<8x512xf32>
    %453 = tpu.matmul %449, %452, %cst_378 {dimension_numbers = #tpu.dot_dimension_numbers<[1], [0], [0], [1], [0, 0, 1, 1], [], []>} : vector<8x128xf32>, vector<128x512xf32>, vector<8x512xf32> -> vector<8x512xf32>
    %454 = arith.addf %451, %453 : vector<8x512xf32>
    %455 = vector.extract_strided_slice %454 {offsets = [0, 0], sizes = [8, 128], strides = [1, 1]} : vector<8x512xf32> to vector<8x128xf32>
    %456 = arith.negf %455 : vector<8x128xf32>
    %457 = math.exp %456 : vector<8x128xf32>
    %cst_379 = arith.constant 1.000000e+00 : f32
    %458 = vector.broadcast %cst_379 : f32 to vector<8x128xf32>
    %459 = arith.addf %458, %457 : vector<8x128xf32>
    %460 = arith.divf %458, %459 : vector<8x128xf32>
    %461 = vector.extract_strided_slice %454 {offsets = [0, 128], sizes = [8, 128], strides = [1, 1]} : vector<8x512xf32> to vector<8x128xf32>
    %462 = arith.negf %461 : vector<8x128xf32>
    %463 = math.exp %462 : vector<8x128xf32>
    %cst_380 = arith.constant 1.000000e+00 : f32
    %464 = vector.broadcast %cst_380 : f32 to vector<8x128xf32>
    %465 = arith.addf %464, %463 : vector<8x128xf32>
    %466 = arith.divf %464, %465 : vector<8x128xf32>
    %467 = vector.extract_strided_slice %454 {offsets = [0, 256], sizes = [8, 128], strides = [1, 1]} : vector<8x512xf32> to vector<8x128xf32>
    %468 = math.tanh %467 : vector<8x128xf32>
    %469 = vector.extract_strided_slice %454 {offsets = [0, 384], sizes = [8, 128], strides = [1, 1]} : vector<8x512xf32> to vector<8x128xf32>
    %470 = arith.negf %469 : vector<8x128xf32>
    %471 = math.exp %470 : vector<8x128xf32>
    %cst_381 = arith.constant 1.000000e+00 : f32
    %472 = vector.broadcast %cst_381 : f32 to vector<8x128xf32>
    %473 = arith.addf %472, %471 : vector<8x128xf32>
    %474 = arith.divf %472, %473 : vector<8x128xf32>
    %475 = arith.mulf %466, %447 : vector<8x128xf32>
    %476 = arith.mulf %460, %468 : vector<8x128xf32>
    %477 = arith.addf %475, %476 : vector<8x128xf32>
    %478 = math.tanh %477 : vector<8x128xf32>
    %479 = arith.mulf %474, %478 : vector<8x128xf32>
    %c32_382 = arith.constant 32 : index
    %c0_383 = arith.constant 0 : index
    %480 = vector.load %arg20[%c32_382, %c0_383] : memref<64x128xf32, #tpu.memory_space<vmem>>, vector<8x128xf32>
    tpu.vector_store %arg20[%c32_382, %c0_383], %479 {strides = array<i32>} : memref<64x128xf32, #tpu.memory_space<vmem>>, vector<8x128xf32>,
    %c40_384 = arith.constant 40 : index
    %c0_385 = arith.constant 0 : index
    %481 = vector.load %arg21[%c40_384, %c0_385] : memref<64x512xf32, #tpu.memory_space<vmem>>, vector<8x512xf32>
    %c0_386 = arith.constant 0 : index
    %c0_387 = arith.constant 0 : index
    %482 = vector.load %arg5[%c0_386, %c0_387] : memref<128x512xf32, #tpu.memory_space<vmem>>, vector<128x512xf32>
    %cst_388 = arith.constant dense<0.000000e+00> : vector<8x512xf32>
    %483 = tpu.matmul %479, %482, %cst_388 {dimension_numbers = #tpu.dot_dimension_numbers<[1], [0], [0], [1], [0, 0, 1, 1], [], []>} : vector<8x128xf32>, vector<128x512xf32>, vector<8x512xf32> -> vector<8x512xf32>
    %484 = arith.addf %481, %483 : vector<8x512xf32>
    %485 = vector.extract_strided_slice %484 {offsets = [0, 0], sizes = [8, 128], strides = [1, 1]} : vector<8x512xf32> to vector<8x128xf32>
    %486 = arith.negf %485 : vector<8x128xf32>
    %487 = math.exp %486 : vector<8x128xf32>
    %cst_389 = arith.constant 1.000000e+00 : f32
    %488 = vector.broadcast %cst_389 : f32 to vector<8x128xf32>
    %489 = arith.addf %488, %487 : vector<8x128xf32>
    %490 = arith.divf %488, %489 : vector<8x128xf32>
    %491 = vector.extract_strided_slice %484 {offsets = [0, 128], sizes = [8, 128], strides = [1, 1]} : vector<8x512xf32> to vector<8x128xf32>
    %492 = arith.negf %491 : vector<8x128xf32>
    %493 = math.exp %492 : vector<8x128xf32>
    %cst_390 = arith.constant 1.000000e+00 : f32
    %494 = vector.broadcast %cst_390 : f32 to vector<8x128xf32>
    %495 = arith.addf %494, %493 : vector<8x128xf32>
    %496 = arith.divf %494, %495 : vector<8x128xf32>
    %497 = vector.extract_strided_slice %484 {offsets = [0, 256], sizes = [8, 128], strides = [1, 1]} : vector<8x512xf32> to vector<8x128xf32>
    %498 = math.tanh %497 : vector<8x128xf32>
    %499 = vector.extract_strided_slice %484 {offsets = [0, 384], sizes = [8, 128], strides = [1, 1]} : vector<8x512xf32> to vector<8x128xf32>
    %500 = arith.negf %499 : vector<8x128xf32>
    %501 = math.exp %500 : vector<8x128xf32>
    %cst_391 = arith.constant 1.000000e+00 : f32
    %502 = vector.broadcast %cst_391 : f32 to vector<8x128xf32>
    %503 = arith.addf %502, %501 : vector<8x128xf32>
    %504 = arith.divf %502, %503 : vector<8x128xf32>
    %505 = arith.mulf %496, %477 : vector<8x128xf32>
    %506 = arith.mulf %490, %498 : vector<8x128xf32>
    %507 = arith.addf %505, %506 : vector<8x128xf32>
    %508 = math.tanh %507 : vector<8x128xf32>
    %509 = arith.mulf %504, %508 : vector<8x128xf32>
    %c40_392 = arith.constant 40 : index
    %c0_393 = arith.constant 0 : index
    %510 = vector.load %arg20[%c40_392, %c0_393] : memref<64x128xf32, #tpu.memory_space<vmem>>, vector<8x128xf32>
    tpu.vector_store %arg20[%c40_392, %c0_393], %509 {strides = array<i32>} : memref<64x128xf32, #tpu.memory_space<vmem>>, vector<8x128xf32>,
    %c48_394 = arith.constant 48 : index
    %c0_395 = arith.constant 0 : index
    %511 = vector.load %arg21[%c48_394, %c0_395] : memref<64x512xf32, #tpu.memory_space<vmem>>, vector<8x512xf32>
    %c0_396 = arith.constant 0 : index
    %c0_397 = arith.constant 0 : index
    %512 = vector.load %arg5[%c0_396, %c0_397] : memref<128x512xf32, #tpu.memory_space<vmem>>, vector<128x512xf32>
    %cst_398 = arith.constant dense<0.000000e+00> : vector<8x512xf32>
    %513 = tpu.matmul %509, %512, %cst_398 {dimension_numbers = #tpu.dot_dimension_numbers<[1], [0], [0], [1], [0, 0, 1, 1], [], []>} : vector<8x128xf32>, vector<128x512xf32>, vector<8x512xf32> -> vector<8x512xf32>
    %514 = arith.addf %511, %513 : vector<8x512xf32>
    %515 = vector.extract_strided_slice %514 {offsets = [0, 0], sizes = [8, 128], strides = [1, 1]} : vector<8x512xf32> to vector<8x128xf32>
    %516 = arith.negf %515 : vector<8x128xf32>
    %517 = math.exp %516 : vector<8x128xf32>
    %cst_399 = arith.constant 1.000000e+00 : f32
    %518 = vector.broadcast %cst_399 : f32 to vector<8x128xf32>
    %519 = arith.addf %518, %517 : vector<8x128xf32>
    %520 = arith.divf %518, %519 : vector<8x128xf32>
    %521 = vector.extract_strided_slice %514 {offsets = [0, 128], sizes = [8, 128], strides = [1, 1]} : vector<8x512xf32> to vector<8x128xf32>
    %522 = arith.negf %521 : vector<8x128xf32>
    %523 = math.exp %522 : vector<8x128xf32>
    %cst_400 = arith.constant 1.000000e+00 : f32
    %524 = vector.broadcast %cst_400 : f32 to vector<8x128xf32>
    %525 = arith.addf %524, %523 : vector<8x128xf32>
    %526 = arith.divf %524, %525 : vector<8x128xf32>
    %527 = vector.extract_strided_slice %514 {offsets = [0, 256], sizes = [8, 128], strides = [1, 1]} : vector<8x512xf32> to vector<8x128xf32>
    %528 = math.tanh %527 : vector<8x128xf32>
    %529 = vector.extract_strided_slice %514 {offsets = [0, 384], sizes = [8, 128], strides = [1, 1]} : vector<8x512xf32> to vector<8x128xf32>
    %530 = arith.negf %529 : vector<8x128xf32>
    %531 = math.exp %530 : vector<8x128xf32>
    %cst_401 = arith.constant 1.000000e+00 : f32
    %532 = vector.broadcast %cst_401 : f32 to vector<8x128xf32>
    %533 = arith.addf %532, %531 : vector<8x128xf32>
    %534 = arith.divf %532, %533 : vector<8x128xf32>
    %535 = arith.mulf %526, %507 : vector<8x128xf32>
    %536 = arith.mulf %520, %528 : vector<8x128xf32>
    %537 = arith.addf %535, %536 : vector<8x128xf32>
    %538 = math.tanh %537 : vector<8x128xf32>
    %539 = arith.mulf %534, %538 : vector<8x128xf32>
    %c48_402 = arith.constant 48 : index
    %c0_403 = arith.constant 0 : index
    %540 = vector.load %arg20[%c48_402, %c0_403] : memref<64x128xf32, #tpu.memory_space<vmem>>, vector<8x128xf32>
    tpu.vector_store %arg20[%c48_402, %c0_403], %539 {strides = array<i32>} : memref<64x128xf32, #tpu.memory_space<vmem>>, vector<8x128xf32>,
    %c56_404 = arith.constant 56 : index
    %c0_405 = arith.constant 0 : index
    %541 = vector.load %arg21[%c56_404, %c0_405] : memref<64x512xf32, #tpu.memory_space<vmem>>, vector<8x512xf32>
    %c0_406 = arith.constant 0 : index
    %c0_407 = arith.constant 0 : index
    %542 = vector.load %arg5[%c0_406, %c0_407] : memref<128x512xf32, #tpu.memory_space<vmem>>, vector<128x512xf32>
    %cst_408 = arith.constant dense<0.000000e+00> : vector<8x512xf32>
    %543 = tpu.matmul %539, %542, %cst_408 {dimension_numbers = #tpu.dot_dimension_numbers<[1], [0], [0], [1], [0, 0, 1, 1], [], []>} : vector<8x128xf32>, vector<128x512xf32>, vector<8x512xf32> -> vector<8x512xf32>
    %544 = arith.addf %541, %543 : vector<8x512xf32>
    %545 = vector.extract_strided_slice %544 {offsets = [0, 0], sizes = [8, 128], strides = [1, 1]} : vector<8x512xf32> to vector<8x128xf32>
    %546 = arith.negf %545 : vector<8x128xf32>
    %547 = math.exp %546 : vector<8x128xf32>
    %cst_409 = arith.constant 1.000000e+00 : f32
    %548 = vector.broadcast %cst_409 : f32 to vector<8x128xf32>
    %549 = arith.addf %548, %547 : vector<8x128xf32>
    %550 = arith.divf %548, %549 : vector<8x128xf32>
    %551 = vector.extract_strided_slice %544 {offsets = [0, 128], sizes = [8, 128], strides = [1, 1]} : vector<8x512xf32> to vector<8x128xf32>
    %552 = arith.negf %551 : vector<8x128xf32>
    %553 = math.exp %552 : vector<8x128xf32>
    %cst_410 = arith.constant 1.000000e+00 : f32
    %554 = vector.broadcast %cst_410 : f32 to vector<8x128xf32>
    %555 = arith.addf %554, %553 : vector<8x128xf32>
    %556 = arith.divf %554, %555 : vector<8x128xf32>
    %557 = vector.extract_strided_slice %544 {offsets = [0, 256], sizes = [8, 128], strides = [1, 1]} : vector<8x512xf32> to vector<8x128xf32>
    %558 = math.tanh %557 : vector<8x128xf32>
    %559 = vector.extract_strided_slice %544 {offsets = [0, 384], sizes = [8, 128], strides = [1, 1]} : vector<8x512xf32> to vector<8x128xf32>
    %560 = arith.negf %559 : vector<8x128xf32>
    %561 = math.exp %560 : vector<8x128xf32>
    %cst_411 = arith.constant 1.000000e+00 : f32
    %562 = vector.broadcast %cst_411 : f32 to vector<8x128xf32>
    %563 = arith.addf %562, %561 : vector<8x128xf32>
    %564 = arith.divf %562, %563 : vector<8x128xf32>
    %565 = arith.mulf %556, %537 : vector<8x128xf32>
    %566 = arith.mulf %550, %558 : vector<8x128xf32>
    %567 = arith.addf %565, %566 : vector<8x128xf32>
    %568 = math.tanh %567 : vector<8x128xf32>
    %569 = arith.mulf %564, %568 : vector<8x128xf32>
    %c56_412 = arith.constant 56 : index
    %c0_413 = arith.constant 0 : index
    %570 = vector.load %arg20[%c56_412, %c0_413] : memref<64x128xf32, #tpu.memory_space<vmem>>, vector<8x128xf32>
    tpu.vector_store %arg20[%c56_412, %c0_413], %569 {strides = array<i32>} : memref<64x128xf32, #tpu.memory_space<vmem>>, vector<8x128xf32>,
    %c0_414 = arith.constant 0 : index
    %c0_415 = arith.constant 0 : index
    %c0_416 = arith.constant 0 : index
    %571 = vector.load %arg17[%c0_414, %c0_415, %c0_416] : memref<2x8x128xf32, #tpu.memory_space<vmem>>, vector<1x8x128xf32>
    %572 = vector.shape_cast %571 : vector<1x8x128xf32> to vector<8x128xf32>
    %573 = vector.shape_cast %569 : vector<8x128xf32> to vector<1x8x128xf32>
    tpu.vector_store %arg17[%c0_414, %c0_415, %c0_416], %573 {strides = array<i32>} : memref<2x8x128xf32, #tpu.memory_space<vmem>>, vector<1x8x128xf32>,
    %c0_417 = arith.constant 0 : index
    %c0_418 = arith.constant 0 : index
    %c0_419 = arith.constant 0 : index
    %574 = vector.load %arg18[%c0_417, %c0_418, %c0_419] : memref<2x8x128xf32, #tpu.memory_space<vmem>>, vector<1x8x128xf32>
    %575 = vector.shape_cast %574 : vector<1x8x128xf32> to vector<8x128xf32>
    %576 = vector.shape_cast %567 : vector<8x128xf32> to vector<1x8x128xf32>
    tpu.vector_store %arg18[%c0_417, %c0_418, %c0_419], %576 {strides = array<i32>} : memref<2x8x128xf32, #tpu.memory_space<vmem>>, vector<1x8x128xf32>,
    %c0_420 = arith.constant 0 : index
    %c0_421 = arith.constant 0 : index
    %577 = vector.load %arg20[%c0_420, %c0_421] : memref<64x128xf32, #tpu.memory_space<vmem>>, vector<64x128xf32>
    %c0_422 = arith.constant 0 : index
    %c0_423 = arith.constant 0 : index
    %578 = vector.load %arg7[%c0_422, %c0_423] : memref<128x512xf32, #tpu.memory_space<vmem>>, vector<128x512xf32>
    %cst_424 = arith.constant dense<0.000000e+00> : vector<64x512xf32>
    %579 = tpu.matmul %577, %578, %cst_424 {dimension_numbers = #tpu.dot_dimension_numbers<[1], [0], [0], [1], [0, 0, 1, 1], [], []>} : vector<64x128xf32>, vector<128x512xf32>, vector<64x512xf32> -> vector<64x512xf32>
    %c0_425 = arith.constant 0 : index
    %c0_426 = arith.constant 0 : index
    %580 = vector.load %arg9[%c0_425, %c0_426] : memref<1x512xf32, #tpu.memory_space<vmem>>, vector<1x512xf32>
    %581 = vector.broadcast %580 : vector<1x512xf32> to vector<64x512xf32>
    %582 = arith.addf %579, %581 : vector<64x512xf32>
    %c0_427 = arith.constant 0 : index
    %c0_428 = arith.constant 0 : index
    %583 = vector.load %arg21[%c0_427, %c0_428] : memref<64x512xf32, #tpu.memory_space<vmem>>, vector<64x512xf32>
    tpu.vector_store %arg21[%c0_427, %c0_428], %582 {strides = array<i32>} : memref<64x512xf32, #tpu.memory_space<vmem>>, vector<64x512xf32>,
    %c1_429 = arith.constant 1 : index
    %c0_430 = arith.constant 0 : index
    %c0_431 = arith.constant 0 : index
    %584 = vector.load %arg2[%c1_429, %c0_430, %c0_431] : memref<2x8x128xf32, #tpu.memory_space<vmem>>, vector<1x8x128xf32>
    %585 = vector.shape_cast %584 : vector<1x8x128xf32> to vector<8x128xf32>
    %c1_432 = arith.constant 1 : index
    %c0_433 = arith.constant 0 : index
    %c0_434 = arith.constant 0 : index
    %586 = vector.load %arg3[%c1_432, %c0_433, %c0_434] : memref<2x8x128xf32, #tpu.memory_space<vmem>>, vector<1x8x128xf32>
    %587 = vector.shape_cast %586 : vector<1x8x128xf32> to vector<8x128xf32>
    %c0_435 = arith.constant 0 : index
    %c0_436 = arith.constant 0 : index
    %588 = vector.load %arg21[%c0_435, %c0_436] : memref<64x512xf32, #tpu.memory_space<vmem>>, vector<8x512xf32>
    %c0_437 = arith.constant 0 : index
    %c0_438 = arith.constant 0 : index
    %589 = vector.load %arg8[%c0_437, %c0_438] : memref<128x512xf32, #tpu.memory_space<vmem>>, vector<128x512xf32>
    %cst_439 = arith.constant dense<0.000000e+00> : vector<8x512xf32>
    %590 = tpu.matmul %585, %589, %cst_439 {dimension_numbers = #tpu.dot_dimension_numbers<[1], [0], [0], [1], [0, 0, 1, 1], [], []>} : vector<8x128xf32>, vector<128x512xf32>, vector<8x512xf32> -> vector<8x512xf32>
    %591 = arith.addf %588, %590 : vector<8x512xf32>
    %592 = vector.extract_strided_slice %591 {offsets = [0, 0], sizes = [8, 128], strides = [1, 1]} : vector<8x512xf32> to vector<8x128xf32>
    %593 = arith.negf %592 : vector<8x128xf32>
    %594 = math.exp %593 : vector<8x128xf32>
    %cst_440 = arith.constant 1.000000e+00 : f32
    %595 = vector.broadcast %cst_440 : f32 to vector<8x128xf32>
    %596 = arith.addf %595, %594 : vector<8x128xf32>
    %597 = arith.divf %595, %596 : vector<8x128xf32>
    %598 = vector.extract_strided_slice %591 {offsets = [0, 128], sizes = [8, 128], strides = [1, 1]} : vector<8x512xf32> to vector<8x128xf32>
    %599 = arith.negf %598 : vector<8x128xf32>
    %600 = math.exp %599 : vector<8x128xf32>
    %cst_441 = arith.constant 1.000000e+00 : f32
    %601 = vector.broadcast %cst_441 : f32 to vector<8x128xf32>
    %602 = arith.addf %601, %600 : vector<8x128xf32>
    %603 = arith.divf %601, %602 : vector<8x128xf32>
    %604 = vector.extract_strided_slice %591 {offsets = [0, 256], sizes = [8, 128], strides = [1, 1]} : vector<8x512xf32> to vector<8x128xf32>
    %605 = math.tanh %604 : vector<8x128xf32>
    %606 = vector.extract_strided_slice %591 {offsets = [0, 384], sizes = [8, 128], strides = [1, 1]} : vector<8x512xf32> to vector<8x128xf32>
    %607 = arith.negf %606 : vector<8x128xf32>
    %608 = math.exp %607 : vector<8x128xf32>
    %cst_442 = arith.constant 1.000000e+00 : f32
    %609 = vector.broadcast %cst_442 : f32 to vector<8x128xf32>
    %610 = arith.addf %609, %608 : vector<8x128xf32>
    %611 = arith.divf %609, %610 : vector<8x128xf32>
    %612 = arith.mulf %603, %587 : vector<8x128xf32>
    %613 = arith.mulf %597, %605 : vector<8x128xf32>
    %614 = arith.addf %612, %613 : vector<8x128xf32>
    %615 = math.tanh %614 : vector<8x128xf32>
    %616 = arith.mulf %611, %615 : vector<8x128xf32>
    %c8_443 = arith.constant 8 : index
    %c0_444 = arith.constant 0 : index
    %617 = vector.load %arg21[%c8_443, %c0_444] : memref<64x512xf32, #tpu.memory_space<vmem>>, vector<8x512xf32>
    %c0_445 = arith.constant 0 : index
    %c0_446 = arith.constant 0 : index
    %618 = vector.load %arg8[%c0_445, %c0_446] : memref<128x512xf32, #tpu.memory_space<vmem>>, vector<128x512xf32>
    %cst_447 = arith.constant dense<0.000000e+00> : vector<8x512xf32>
    %619 = tpu.matmul %616, %618, %cst_447 {dimension_numbers = #tpu.dot_dimension_numbers<[1], [0], [0], [1], [0, 0, 1, 1], [], []>} : vector<8x128xf32>, vector<128x512xf32>, vector<8x512xf32> -> vector<8x512xf32>
    %620 = arith.addf %617, %619 : vector<8x512xf32>
    %621 = vector.extract_strided_slice %620 {offsets = [0, 0], sizes = [8, 128], strides = [1, 1]} : vector<8x512xf32> to vector<8x128xf32>
    %622 = arith.negf %621 : vector<8x128xf32>
    %623 = math.exp %622 : vector<8x128xf32>
    %cst_448 = arith.constant 1.000000e+00 : f32
    %624 = vector.broadcast %cst_448 : f32 to vector<8x128xf32>
    %625 = arith.addf %624, %623 : vector<8x128xf32>
    %626 = arith.divf %624, %625 : vector<8x128xf32>
    %627 = vector.extract_strided_slice %620 {offsets = [0, 128], sizes = [8, 128], strides = [1, 1]} : vector<8x512xf32> to vector<8x128xf32>
    %628 = arith.negf %627 : vector<8x128xf32>
    %629 = math.exp %628 : vector<8x128xf32>
    %cst_449 = arith.constant 1.000000e+00 : f32
    %630 = vector.broadcast %cst_449 : f32 to vector<8x128xf32>
    %631 = arith.addf %630, %629 : vector<8x128xf32>
    %632 = arith.divf %630, %631 : vector<8x128xf32>
    %633 = vector.extract_strided_slice %620 {offsets = [0, 256], sizes = [8, 128], strides = [1, 1]} : vector<8x512xf32> to vector<8x128xf32>
    %634 = math.tanh %633 : vector<8x128xf32>
    %635 = vector.extract_strided_slice %620 {offsets = [0, 384], sizes = [8, 128], strides = [1, 1]} : vector<8x512xf32> to vector<8x128xf32>
    %636 = arith.negf %635 : vector<8x128xf32>
    %637 = math.exp %636 : vector<8x128xf32>
    %cst_450 = arith.constant 1.000000e+00 : f32
    %638 = vector.broadcast %cst_450 : f32 to vector<8x128xf32>
    %639 = arith.addf %638, %637 : vector<8x128xf32>
    %640 = arith.divf %638, %639 : vector<8x128xf32>
    %641 = arith.mulf %632, %614 : vector<8x128xf32>
    %642 = arith.mulf %626, %634 : vector<8x128xf32>
    %643 = arith.addf %641, %642 : vector<8x128xf32>
    %644 = math.tanh %643 : vector<8x128xf32>
    %645 = arith.mulf %640, %644 : vector<8x128xf32>
    %c16_451 = arith.constant 16 : index
    %c0_452 = arith.constant 0 : index
    %646 = vector.load %arg21[%c16_451, %c0_452] : memref<64x512xf32, #tpu.memory_space<vmem>>, vector<8x512xf32>
    %c0_453 = arith.constant 0 : index
    %c0_454 = arith.constant 0 : index
    %647 = vector.load %arg8[%c0_453, %c0_454] : memref<128x512xf32, #tpu.memory_space<vmem>>, vector<128x512xf32>
    %cst_455 = arith.constant dense<0.000000e+00> : vector<8x512xf32>
    %648 = tpu.matmul %645, %647, %cst_455 {dimension_numbers = #tpu.dot_dimension_numbers<[1], [0], [0], [1], [0, 0, 1, 1], [], []>} : vector<8x128xf32>, vector<128x512xf32>, vector<8x512xf32> -> vector<8x512xf32>
    %649 = arith.addf %646, %648 : vector<8x512xf32>
    %650 = vector.extract_strided_slice %649 {offsets = [0, 0], sizes = [8, 128], strides = [1, 1]} : vector<8x512xf32> to vector<8x128xf32>
    %651 = arith.negf %650 : vector<8x128xf32>
    %652 = math.exp %651 : vector<8x128xf32>
    %cst_456 = arith.constant 1.000000e+00 : f32
    %653 = vector.broadcast %cst_456 : f32 to vector<8x128xf32>
    %654 = arith.addf %653, %652 : vector<8x128xf32>
    %655 = arith.divf %653, %654 : vector<8x128xf32>
    %656 = vector.extract_strided_slice %649 {offsets = [0, 128], sizes = [8, 128], strides = [1, 1]} : vector<8x512xf32> to vector<8x128xf32>
    %657 = arith.negf %656 : vector<8x128xf32>
    %658 = math.exp %657 : vector<8x128xf32>
    %cst_457 = arith.constant 1.000000e+00 : f32
    %659 = vector.broadcast %cst_457 : f32 to vector<8x128xf32>
    %660 = arith.addf %659, %658 : vector<8x128xf32>
    %661 = arith.divf %659, %660 : vector<8x128xf32>
    %662 = vector.extract_strided_slice %649 {offsets = [0, 256], sizes = [8, 128], strides = [1, 1]} : vector<8x512xf32> to vector<8x128xf32>
    %663 = math.tanh %662 : vector<8x128xf32>
    %664 = vector.extract_strided_slice %649 {offsets = [0, 384], sizes = [8, 128], strides = [1, 1]} : vector<8x512xf32> to vector<8x128xf32>
    %665 = arith.negf %664 : vector<8x128xf32>
    %666 = math.exp %665 : vector<8x128xf32>
    %cst_458 = arith.constant 1.000000e+00 : f32
    %667 = vector.broadcast %cst_458 : f32 to vector<8x128xf32>
    %668 = arith.addf %667, %666 : vector<8x128xf32>
    %669 = arith.divf %667, %668 : vector<8x128xf32>
    %670 = arith.mulf %661, %643 : vector<8x128xf32>
    %671 = arith.mulf %655, %663 : vector<8x128xf32>
    %672 = arith.addf %670, %671 : vector<8x128xf32>
    %673 = math.tanh %672 : vector<8x128xf32>
    %674 = arith.mulf %669, %673 : vector<8x128xf32>
    %c24_459 = arith.constant 24 : index
    %c0_460 = arith.constant 0 : index
    %675 = vector.load %arg21[%c24_459, %c0_460] : memref<64x512xf32, #tpu.memory_space<vmem>>, vector<8x512xf32>
    %c0_461 = arith.constant 0 : index
    %c0_462 = arith.constant 0 : index
    %676 = vector.load %arg8[%c0_461, %c0_462] : memref<128x512xf32, #tpu.memory_space<vmem>>, vector<128x512xf32>
    %cst_463 = arith.constant dense<0.000000e+00> : vector<8x512xf32>
    %677 = tpu.matmul %674, %676, %cst_463 {dimension_numbers = #tpu.dot_dimension_numbers<[1], [0], [0], [1], [0, 0, 1, 1], [], []>} : vector<8x128xf32>, vector<128x512xf32>, vector<8x512xf32> -> vector<8x512xf32>
    %678 = arith.addf %675, %677 : vector<8x512xf32>
    %679 = vector.extract_strided_slice %678 {offsets = [0, 0], sizes = [8, 128], strides = [1, 1]} : vector<8x512xf32> to vector<8x128xf32>
    %680 = arith.negf %679 : vector<8x128xf32>
    %681 = math.exp %680 : vector<8x128xf32>
    %cst_464 = arith.constant 1.000000e+00 : f32
    %682 = vector.broadcast %cst_464 : f32 to vector<8x128xf32>
    %683 = arith.addf %682, %681 : vector<8x128xf32>
    %684 = arith.divf %682, %683 : vector<8x128xf32>
    %685 = vector.extract_strided_slice %678 {offsets = [0, 128], sizes = [8, 128], strides = [1, 1]} : vector<8x512xf32> to vector<8x128xf32>
    %686 = arith.negf %685 : vector<8x128xf32>
    %687 = math.exp %686 : vector<8x128xf32>
    %cst_465 = arith.constant 1.000000e+00 : f32
    %688 = vector.broadcast %cst_465 : f32 to vector<8x128xf32>
    %689 = arith.addf %688, %687 : vector<8x128xf32>
    %690 = arith.divf %688, %689 : vector<8x128xf32>
    %691 = vector.extract_strided_slice %678 {offsets = [0, 256], sizes = [8, 128], strides = [1, 1]} : vector<8x512xf32> to vector<8x128xf32>
    %692 = math.tanh %691 : vector<8x128xf32>
    %693 = vector.extract_strided_slice %678 {offsets = [0, 384], sizes = [8, 128], strides = [1, 1]} : vector<8x512xf32> to vector<8x128xf32>
    %694 = arith.negf %693 : vector<8x128xf32>
    %695 = math.exp %694 : vector<8x128xf32>
    %cst_466 = arith.constant 1.000000e+00 : f32
    %696 = vector.broadcast %cst_466 : f32 to vector<8x128xf32>
    %697 = arith.addf %696, %695 : vector<8x128xf32>
    %698 = arith.divf %696, %697 : vector<8x128xf32>
    %699 = arith.mulf %690, %672 : vector<8x128xf32>
    %700 = arith.mulf %684, %692 : vector<8x128xf32>
    %701 = arith.addf %699, %700 : vector<8x128xf32>
    %702 = math.tanh %701 : vector<8x128xf32>
    %703 = arith.mulf %698, %702 : vector<8x128xf32>
    %c32_467 = arith.constant 32 : index
    %c0_468 = arith.constant 0 : index
    %704 = vector.load %arg21[%c32_467, %c0_468] : memref<64x512xf32, #tpu.memory_space<vmem>>, vector<8x512xf32>
    %c0_469 = arith.constant 0 : index
    %c0_470 = arith.constant 0 : index
    %705 = vector.load %arg8[%c0_469, %c0_470] : memref<128x512xf32, #tpu.memory_space<vmem>>, vector<128x512xf32>
    %cst_471 = arith.constant dense<0.000000e+00> : vector<8x512xf32>
    %706 = tpu.matmul %703, %705, %cst_471 {dimension_numbers = #tpu.dot_dimension_numbers<[1], [0], [0], [1], [0, 0, 1, 1], [], []>} : vector<8x128xf32>, vector<128x512xf32>, vector<8x512xf32> -> vector<8x512xf32>
    %707 = arith.addf %704, %706 : vector<8x512xf32>
    %708 = vector.extract_strided_slice %707 {offsets = [0, 0], sizes = [8, 128], strides = [1, 1]} : vector<8x512xf32> to vector<8x128xf32>
    %709 = arith.negf %708 : vector<8x128xf32>
    %710 = math.exp %709 : vector<8x128xf32>
    %cst_472 = arith.constant 1.000000e+00 : f32
    %711 = vector.broadcast %cst_472 : f32 to vector<8x128xf32>
    %712 = arith.addf %711, %710 : vector<8x128xf32>
    %713 = arith.divf %711, %712 : vector<8x128xf32>
    %714 = vector.extract_strided_slice %707 {offsets = [0, 128], sizes = [8, 128], strides = [1, 1]} : vector<8x512xf32> to vector<8x128xf32>
    %715 = arith.negf %714 : vector<8x128xf32>
    %716 = math.exp %715 : vector<8x128xf32>
    %cst_473 = arith.constant 1.000000e+00 : f32
    %717 = vector.broadcast %cst_473 : f32 to vector<8x128xf32>
    %718 = arith.addf %717, %716 : vector<8x128xf32>
    %719 = arith.divf %717, %718 : vector<8x128xf32>
    %720 = vector.extract_strided_slice %707 {offsets = [0, 256], sizes = [8, 128], strides = [1, 1]} : vector<8x512xf32> to vector<8x128xf32>
    %721 = math.tanh %720 : vector<8x128xf32>
    %722 = vector.extract_strided_slice %707 {offsets = [0, 384], sizes = [8, 128], strides = [1, 1]} : vector<8x512xf32> to vector<8x128xf32>
    %723 = arith.negf %722 : vector<8x128xf32>
    %724 = math.exp %723 : vector<8x128xf32>
    %cst_474 = arith.constant 1.000000e+00 : f32
    %725 = vector.broadcast %cst_474 : f32 to vector<8x128xf32>
    %726 = arith.addf %725, %724 : vector<8x128xf32>
    %727 = arith.divf %725, %726 : vector<8x128xf32>
    %728 = arith.mulf %719, %701 : vector<8x128xf32>
    %729 = arith.mulf %713, %721 : vector<8x128xf32>
    %730 = arith.addf %728, %729 : vector<8x128xf32>
    %731 = math.tanh %730 : vector<8x128xf32>
    %732 = arith.mulf %727, %731 : vector<8x128xf32>
    %c40_475 = arith.constant 40 : index
    %c0_476 = arith.constant 0 : index
    %733 = vector.load %arg21[%c40_475, %c0_476] : memref<64x512xf32, #tpu.memory_space<vmem>>, vector<8x512xf32>
    %c0_477 = arith.constant 0 : index
    %c0_478 = arith.constant 0 : index
    %734 = vector.load %arg8[%c0_477, %c0_478] : memref<128x512xf32, #tpu.memory_space<vmem>>, vector<128x512xf32>
    %cst_479 = arith.constant dense<0.000000e+00> : vector<8x512xf32>
    %735 = tpu.matmul %732, %734, %cst_479 {dimension_numbers = #tpu.dot_dimension_numbers<[1], [0], [0], [1], [0, 0, 1, 1], [], []>} : vector<8x128xf32>, vector<128x512xf32>, vector<8x512xf32> -> vector<8x512xf32>
    %736 = arith.addf %733, %735 : vector<8x512xf32>
    %737 = vector.extract_strided_slice %736 {offsets = [0, 0], sizes = [8, 128], strides = [1, 1]} : vector<8x512xf32> to vector<8x128xf32>
    %738 = arith.negf %737 : vector<8x128xf32>
    %739 = math.exp %738 : vector<8x128xf32>
    %cst_480 = arith.constant 1.000000e+00 : f32
    %740 = vector.broadcast %cst_480 : f32 to vector<8x128xf32>
    %741 = arith.addf %740, %739 : vector<8x128xf32>
    %742 = arith.divf %740, %741 : vector<8x128xf32>
    %743 = vector.extract_strided_slice %736 {offsets = [0, 128], sizes = [8, 128], strides = [1, 1]} : vector<8x512xf32> to vector<8x128xf32>
    %744 = arith.negf %743 : vector<8x128xf32>
    %745 = math.exp %744 : vector<8x128xf32>
    %cst_481 = arith.constant 1.000000e+00 : f32
    %746 = vector.broadcast %cst_481 : f32 to vector<8x128xf32>
    %747 = arith.addf %746, %745 : vector<8x128xf32>
    %748 = arith.divf %746, %747 : vector<8x128xf32>
    %749 = vector.extract_strided_slice %736 {offsets = [0, 256], sizes = [8, 128], strides = [1, 1]} : vector<8x512xf32> to vector<8x128xf32>
    %750 = math.tanh %749 : vector<8x128xf32>
    %751 = vector.extract_strided_slice %736 {offsets = [0, 384], sizes = [8, 128], strides = [1, 1]} : vector<8x512xf32> to vector<8x128xf32>
    %752 = arith.negf %751 : vector<8x128xf32>
    %753 = math.exp %752 : vector<8x128xf32>
    %cst_482 = arith.constant 1.000000e+00 : f32
    %754 = vector.broadcast %cst_482 : f32 to vector<8x128xf32>
    %755 = arith.addf %754, %753 : vector<8x128xf32>
    %756 = arith.divf %754, %755 : vector<8x128xf32>
    %757 = arith.mulf %748, %730 : vector<8x128xf32>
    %758 = arith.mulf %742, %750 : vector<8x128xf32>
    %759 = arith.addf %757, %758 : vector<8x128xf32>
    %760 = math.tanh %759 : vector<8x128xf32>
    %761 = arith.mulf %756, %760 : vector<8x128xf32>
    %c48_483 = arith.constant 48 : index
    %c0_484 = arith.constant 0 : index
    %762 = vector.load %arg21[%c48_483, %c0_484] : memref<64x512xf32, #tpu.memory_space<vmem>>, vector<8x512xf32>
    %c0_485 = arith.constant 0 : index
    %c0_486 = arith.constant 0 : index
    %763 = vector.load %arg8[%c0_485, %c0_486] : memref<128x512xf32, #tpu.memory_space<vmem>>, vector<128x512xf32>
    %cst_487 = arith.constant dense<0.000000e+00> : vector<8x512xf32>
    %764 = tpu.matmul %761, %763, %cst_487 {dimension_numbers = #tpu.dot_dimension_numbers<[1], [0], [0], [1], [0, 0, 1, 1], [], []>} : vector<8x128xf32>, vector<128x512xf32>, vector<8x512xf32> -> vector<8x512xf32>
    %765 = arith.addf %762, %764 : vector<8x512xf32>
    %766 = vector.extract_strided_slice %765 {offsets = [0, 0], sizes = [8, 128], strides = [1, 1]} : vector<8x512xf32> to vector<8x128xf32>
    %767 = arith.negf %766 : vector<8x128xf32>
    %768 = math.exp %767 : vector<8x128xf32>
    %cst_488 = arith.constant 1.000000e+00 : f32
    %769 = vector.broadcast %cst_488 : f32 to vector<8x128xf32>
    %770 = arith.addf %769, %768 : vector<8x128xf32>
    %771 = arith.divf %769, %770 : vector<8x128xf32>
    %772 = vector.extract_strided_slice %765 {offsets = [0, 128], sizes = [8, 128], strides = [1, 1]} : vector<8x512xf32> to vector<8x128xf32>
    %773 = arith.negf %772 : vector<8x128xf32>
    %774 = math.exp %773 : vector<8x128xf32>
    %cst_489 = arith.constant 1.000000e+00 : f32
    %775 = vector.broadcast %cst_489 : f32 to vector<8x128xf32>
    %776 = arith.addf %775, %774 : vector<8x128xf32>
    %777 = arith.divf %775, %776 : vector<8x128xf32>
    %778 = vector.extract_strided_slice %765 {offsets = [0, 256], sizes = [8, 128], strides = [1, 1]} : vector<8x512xf32> to vector<8x128xf32>
    %779 = math.tanh %778 : vector<8x128xf32>
    %780 = vector.extract_strided_slice %765 {offsets = [0, 384], sizes = [8, 128], strides = [1, 1]} : vector<8x512xf32> to vector<8x128xf32>
    %781 = arith.negf %780 : vector<8x128xf32>
    %782 = math.exp %781 : vector<8x128xf32>
    %cst_490 = arith.constant 1.000000e+00 : f32
    %783 = vector.broadcast %cst_490 : f32 to vector<8x128xf32>
    %784 = arith.addf %783, %782 : vector<8x128xf32>
    %785 = arith.divf %783, %784 : vector<8x128xf32>
    %786 = arith.mulf %777, %759 : vector<8x128xf32>
    %787 = arith.mulf %771, %779 : vector<8x128xf32>
    %788 = arith.addf %786, %787 : vector<8x128xf32>
    %789 = math.tanh %788 : vector<8x128xf32>
    %790 = arith.mulf %785, %789 : vector<8x128xf32>
    %c56_491 = arith.constant 56 : index
    %c0_492 = arith.constant 0 : index
    %791 = vector.load %arg21[%c56_491, %c0_492] : memref<64x512xf32, #tpu.memory_space<vmem>>, vector<8x512xf32>
    %c0_493 = arith.constant 0 : index
    %c0_494 = arith.constant 0 : index
    %792 = vector.load %arg8[%c0_493, %c0_494] : memref<128x512xf32, #tpu.memory_space<vmem>>, vector<128x512xf32>
    %cst_495 = arith.constant dense<0.000000e+00> : vector<8x512xf32>
    %793 = tpu.matmul %790, %792, %cst_495 {dimension_numbers = #tpu.dot_dimension_numbers<[1], [0], [0], [1], [0, 0, 1, 1], [], []>} : vector<8x128xf32>, vector<128x512xf32>, vector<8x512xf32> -> vector<8x512xf32>
    %794 = arith.addf %791, %793 : vector<8x512xf32>
    %795 = vector.extract_strided_slice %794 {offsets = [0, 0], sizes = [8, 128], strides = [1, 1]} : vector<8x512xf32> to vector<8x128xf32>
    %796 = arith.negf %795 : vector<8x128xf32>
    %797 = math.exp %796 : vector<8x128xf32>
    %cst_496 = arith.constant 1.000000e+00 : f32
    %798 = vector.broadcast %cst_496 : f32 to vector<8x128xf32>
    %799 = arith.addf %798, %797 : vector<8x128xf32>
    %800 = arith.divf %798, %799 : vector<8x128xf32>
    %801 = vector.extract_strided_slice %794 {offsets = [0, 128], sizes = [8, 128], strides = [1, 1]} : vector<8x512xf32> to vector<8x128xf32>
    %802 = arith.negf %801 : vector<8x128xf32>
    %803 = math.exp %802 : vector<8x128xf32>
    %cst_497 = arith.constant 1.000000e+00 : f32
    %804 = vector.broadcast %cst_497 : f32 to vector<8x128xf32>
    %805 = arith.addf %804, %803 : vector<8x128xf32>
    %806 = arith.divf %804, %805 : vector<8x128xf32>
    %807 = vector.extract_strided_slice %794 {offsets = [0, 256], sizes = [8, 128], strides = [1, 1]} : vector<8x512xf32> to vector<8x128xf32>
    %808 = math.tanh %807 : vector<8x128xf32>
    %809 = vector.extract_strided_slice %794 {offsets = [0, 384], sizes = [8, 128], strides = [1, 1]} : vector<8x512xf32> to vector<8x128xf32>
    %810 = arith.negf %809 : vector<8x128xf32>
    %811 = math.exp %810 : vector<8x128xf32>
    %cst_498 = arith.constant 1.000000e+00 : f32
    %812 = vector.broadcast %cst_498 : f32 to vector<8x128xf32>
    %813 = arith.addf %812, %811 : vector<8x128xf32>
    %814 = arith.divf %812, %813 : vector<8x128xf32>
    %815 = arith.mulf %806, %788 : vector<8x128xf32>
    %816 = arith.mulf %800, %808 : vector<8x128xf32>
    %817 = arith.addf %815, %816 : vector<8x128xf32>
    %818 = math.tanh %817 : vector<8x128xf32>
    %819 = arith.mulf %814, %818 : vector<8x128xf32>
    %c1_499 = arith.constant 1 : index
    %c0_500 = arith.constant 0 : index
    %c0_501 = arith.constant 0 : index
    %820 = vector.load %arg17[%c1_499, %c0_500, %c0_501] : memref<2x8x128xf32, #tpu.memory_space<vmem>>, vector<1x8x128xf32>
    %821 = vector.shape_cast %820 : vector<1x8x128xf32> to vector<8x128xf32>
    %822 = vector.shape_cast %819 : vector<8x128xf32> to vector<1x8x128xf32>
    tpu.vector_store %arg17[%c1_499, %c0_500, %c0_501], %822 {strides = array<i32>} : memref<2x8x128xf32, #tpu.memory_space<vmem>>, vector<1x8x128xf32>,
    %c1_502 = arith.constant 1 : index
    %c0_503 = arith.constant 0 : index
    %c0_504 = arith.constant 0 : index
    %823 = vector.load %arg18[%c1_502, %c0_503, %c0_504] : memref<2x8x128xf32, #tpu.memory_space<vmem>>, vector<1x8x128xf32>
    %824 = vector.shape_cast %823 : vector<1x8x128xf32> to vector<8x128xf32>
    %825 = vector.shape_cast %817 : vector<8x128xf32> to vector<1x8x128xf32>
    tpu.vector_store %arg18[%c1_502, %c0_503, %c0_504], %825 {strides = array<i32>} : memref<2x8x128xf32, #tpu.memory_space<vmem>>, vector<1x8x128xf32>,
    %c0_505 = arith.constant 0 : index
    %c0_506 = arith.constant 0 : index
    %826 = vector.load %arg10[%c0_505, %c0_506] : memref<128x64xf32, #tpu.memory_space<vmem>>, vector<128x64xf32>
    %cst_507 = arith.constant dense<0.000000e+00> : vector<8x64xf32>
    %827 = tpu.matmul %819, %826, %cst_507 {dimension_numbers = #tpu.dot_dimension_numbers<[1], [0], [0], [1], [0, 0, 1, 1], [], []>} : vector<8x128xf32>, vector<128x64xf32>, vector<8x64xf32> -> vector<8x64xf32>
    %c0_508 = arith.constant 0 : index
    %c0_509 = arith.constant 0 : index
    %828 = vector.load %arg11[%c0_508, %c0_509] : memref<1x64xf32, #tpu.memory_space<vmem>>, vector<1x64xf32>
    %829 = vector.broadcast %828 : vector<1x64xf32> to vector<8x64xf32>
    %830 = arith.addf %827, %829 : vector<8x64xf32>
    %c0_510 = arith.constant 0 : index
    %c0_511 = arith.constant 0 : index
    %831 = vector.load %arg12[%c0_510, %c0_511] : memref<64x16xf32, #tpu.memory_space<vmem>>, vector<64x16xf32>
    %cst_512 = arith.constant dense<0.000000e+00> : vector<8x16xf32>
    %832 = tpu.matmul %830, %831, %cst_512 {dimension_numbers = #tpu.dot_dimension_numbers<[1], [0], [0], [1], [0, 0, 1, 1], [], []>} : vector<8x64xf32>, vector<64x16xf32>, vector<8x16xf32> -> vector<8x16xf32>
    %c0_513 = arith.constant 0 : index
    %c0_514 = arith.constant 0 : index
    %833 = vector.load %arg13[%c0_513, %c0_514] : memref<1x16xf32, #tpu.memory_space<vmem>>, vector<1x16xf32>
    %834 = vector.broadcast %833 : vector<1x16xf32> to vector<8x16xf32>
    %835 = arith.addf %832, %834 : vector<8x16xf32>
    %c0_515 = arith.constant 0 : index
    %c0_516 = arith.constant 0 : index
    %836 = vector.load %arg14[%c0_515, %c0_516] : memref<16x128xf32, #tpu.memory_space<vmem>>, vector<16x128xf32>
    %cst_517 = arith.constant dense<0.000000e+00> : vector<8x128xf32>
    %837 = tpu.matmul %835, %836, %cst_517 {dimension_numbers = #tpu.dot_dimension_numbers<[1], [0], [0], [1], [0, 0, 1, 1], [], []>} : vector<8x16xf32>, vector<16x128xf32>, vector<8x128xf32> -> vector<8x128xf32>
    %c0_518 = arith.constant 0 : index
    %c0_519 = arith.constant 0 : index
    %838 = vector.load %arg15[%c0_518, %c0_519] : memref<1x128xf32, #tpu.memory_space<vmem>>, vector<1x128xf32>
    %839 = vector.broadcast %838 : vector<1x128xf32> to vector<8x128xf32>
    %840 = arith.addf %837, %839 : vector<8x128xf32>
    %841 = arith.negf %840 : vector<8x128xf32>
    %842 = math.exp %841 : vector<8x128xf32>
    %cst_520 = arith.constant 1.000000e+00 : f32
    %843 = vector.broadcast %cst_520 : f32 to vector<8x128xf32>
    %844 = arith.addf %843, %842 : vector<8x128xf32>
    %845 = arith.divf %843, %844 : vector<8x128xf32>
    %c0_521 = arith.constant 0 : index
    %c0_522 = arith.constant 0 : index
    %846 = vector.load %arg16[%c0_521, %c0_522] : memref<8x128xf32, #tpu.memory_space<vmem>>, vector<8x128xf32>
    tpu.vector_store %arg16[%c0_521, %c0_522], %845 {strides = array<i32>} : memref<8x128xf32, #tpu.memory_space<vmem>>, vector<8x128xf32>,
    return
  }
}

</mosaic_0001>

<bundles_post_ra>
// kernel: classifier_forward.1
= control target key start
LH: loop header
LB: loop body
LE: loop exit
PB: predicated region body
PF: predicated region fallthrough
CT: control target
= control target key end

     0   :  { %s8930_s0 = inlined_call_operand.hbm [shape: s32[8,8], index: 0, kind: input, shape index: {}]   ;;  %s8931_s1 = inlined_call_operand.vmem [shape: f32[32,1,128], index: 1, kind: input, shape index: {}]   ;;  %s8932_s2 = inlined_call_operand.hbm [shape: f32[2,8,128], index: 2, kind: input, shape index: {}]   ;;  %s8933_s3 = inlined_call_operand.hbm [shape: f32[2,8,128], index: 3, kind: input, shape index: {}]   ;;  %s8934_s4 = inlined_call_operand.hbm [shape: f32[128,512], index: 4, kind: input, shape index: {}]   ;;  %s8935_s5 = inlined_call_operand.hbm [shape: f32[128,512], index: 5, kind: input, shape index: {}]   ;;  %s8936_s6 = inlined_call_operand.hbm [shape: f32[1,512], index: 6, kind: input, shape index: {}]   ;;  %s8937_s7 = inlined_call_operand.hbm [shape: f32[128,512], index: 7, kind: input, shape index: {}]   ;;  %s8938_s8 = inlined_call_operand.hbm [shape: f32[128,512], index: 8, kind: input, shape index: {}]   ;;  %s8939_s9 = inlined_call_operand.hbm [shape: f32[1,512], index: 9, kind: input, shape index: {}]   ;;  %s8940_s10 = inlined_call_operand.hbm [shape: f32[128,64], index: 10, kind: input, shape index: {}]   ;;  %s8941_s11 = inlined_call_operand.hbm [shape: f32[1,64], index: 11, kind: input, shape index: {}]   ;;  %s8942_s12 = inlined_call_operand.hbm [shape: f32[64,16], index: 12, kind: input, shape index: {}]   ;;  %s8943_s13 = inlined_call_operand.hbm [shape: f32[1,16], index: 13, kind: input, shape index: {}]   ;;  %s8944_s14 = inlined_call_operand.vmem [shape: f32[16,128], index: 14, kind: input, shape index: {}]   ;;  %s8945_s15 = inlined_call_operand.vmem [shape: f32[1,128], index: 15, kind: input, shape index: {}]   ;;  %s8946_s16 = inlined_call_operand.vmem [shape: f32[8,128], index: 16, kind: output, shape index: {0}]   ;;  %s8947_s17 = inlined_call_operand.hbm [shape: f32[2,8,128], index: 17, kind: output, shape index: {1}]   ;;  %s8948_s18 = inlined_call_operand.hbm [shape: f32[2,8,128], index: 18, kind: output, shape index: {2}]  }
   0x1   :  { %8961 = sst [smem:[#allocation43_spill]] %s8930_s0 }
   0x2   :  { %8962 = sst [smem:[#allocation44_spill]] %s8931_s1 }
   0x3   :  { %8963 = sst [smem:[#allocation45_spill]] %s8932_s2 }
   0x4   :  { %8964 = sst [smem:[#allocation46_spill]] %s8944_s14 }
   0x5   :  { %8965 = sst [smem:[#allocation47_spill]] %s8945_s15 }
   0x6   :  { %8966 = sst [smem:[#allocation48_spill]] %s8946_s16 }
   0x7   :  { %8967 = sst [smem:[#allocation49_spill]] %s8947_s17 }
   0x8   :  { %8968 = sst [smem:[#allocation50_spill]] %s8948_s18 }
   0x9   :  { %24 = vsyncpa [#allocation8], 0 }
   0xa   :  { %25 = vsyncpa [#allocation6], 0 }
   0xb   :  { %26 = vsyncpa [#allocation11], 0 }
   0xc   :  { %27 = vsyncpa [#allocation14], 0 }
   0xd   :  { %28 = vsyncpa [#allocation17], 0 }
   0xe   :  { %29 = vsyncpa [#allocation20], 0 }
   0xf   :  { %30 = vsyncpa [#allocation23], 0 }
  0x10   :  { %31 = vsyncpa [#allocation26], 0 }
  0x11   :  { %32 = vsyncpa [#allocation7], 0 }
  0x12   :  { %33 = vsyncpa [#allocation29], 0  ;;  %s7090_s27 = smov [#allocation10]   ;;  %s6752_s0 = scalar_lea.hbm %s8933_s3, 256 }
  0x13   :  { %s61_s28 = sshll.u32 %s7090_s27, 4  ;;  %p6753_p0 = scmp.ne.s32.totalorder %s8933_s3, %s6752_s0  ;;  %s62_s28 = int_to_ptr.vmem [resolvable:$true] %s61_s28 }
  0x14   :  { %p6756_p1 = scmp.lt.u32.totalorder %s6752_s0, %s8933_s3 }
  0x16   :  { %p6758_p2 = pnand %p6756_p1, %p6753_p0 }
  0x18   :  { %6761 = shalt.err (!%p6758_p2)
}
  0x19   :  { %s6762_s22 = scalar_lea.vmem %s62_s28, 256  ;;  %p6767_p4 = scmp.lt.s32.totalorder %s62_s28, %s62_s28 }
  0x1a   :  { %p6763_p3 = scmp.ne.s32.totalorder %s62_s28, %s6762_s22  ;;  %p6768_p5 = scmp.lt.s32.totalorder %s6762_s22, %s6762_s22 }
  0x1c   :  { %p6769_p6 = por %p6768_p5, %p6767_p4 }
  0x1e   :  { %p6770_p7 = pnand %p6769_p6, %p6763_p3 }
  0x20   :  { %6773 = shalt.err (!%p6770_p7)
}
  0x21   :  { %s8952_s2 = smov 128   ;;  %s8954_s23 = smov 8  }
  0x22   :  { %67 = dma.hbm_to_vmem [thread:$0]  %s8933_s3, 256, %s62_s28, [#allocation11], %s8952_s2, %s8952_s2, %s8954_s23  }
  0x23   :  { %s7093_s26 = smov [#allocation13]   ;;  %s7094_s29 = smov [#allocation16]  }
  0x24   :  { %s85_s27 = sshll.u32 %s7093_s26, 4  ;;  %s107_s30 = sshll.u32 %s7094_s29, 4  ;;  %s86_s27 = int_to_ptr.vmem [resolvable:$true] %s85_s27  ;;  %s108_s30 = int_to_ptr.vmem [resolvable:$true] %s107_s30 }
  0x25   :  { %s6774_s1 = scalar_lea.hbm %s8935_s5, 8192 }
  0x26   :  { %p6775_p8 = scmp.ne.s32.totalorder %s8935_s5, %s6774_s1  ;;  %p6778_p9 = scmp.lt.u32.totalorder %s6774_s1, %s8935_s5 }
  0x28   :  { %p6780_p10 = pnand %p6778_p9, %p6775_p8 }
  0x2a   :  { %6783 = shalt.err (!%p6780_p10)
}
  0x2b   :  { %s6784_s3 = scalar_lea.vmem %s86_s27, 8192  ;;  %p6789_p12 = scmp.lt.s32.totalorder %s86_s27, %s86_s27 }
  0x2c   :  { %p6785_p11 = scmp.ne.s32.totalorder %s86_s27, %s6784_s3  ;;  %p6790_p13 = scmp.lt.s32.totalorder %s6784_s3, %s6784_s3 }
  0x2e   :  { %p6791_p0 = por %p6790_p13, %p6789_p12 }
  0x30   :  { %p6792_p1 = pnand %p6791_p0, %p6785_p11 }
  0x32   :  { %6795 = shalt.err (!%p6792_p1)
}
  0x33   :  { %s7095_s28 = smov 512   ;;  %s7096_s24 = smov 32  }
  0x34   :  { %91 = dma.hbm_to_vmem [thread:$0]  %s8935_s5, 8192, %s86_s27, [#allocation14], %s7095_s28, %s7095_s28, %s7096_s24  }
  0x35   :  { %s6796_s0 = scalar_lea.hbm %s8937_s7, 8192 }
  0x36   :  { %p6797_p2 = scmp.ne.s32.totalorder %s8937_s7, %s6796_s0  ;;  %p6800_p3 = scmp.lt.u32.totalorder %s6796_s0, %s8937_s7 }
  0x38   :  { %p6802_p4 = pnand %p6800_p3, %p6797_p2 }
  0x3a   :  { %6805 = shalt.err (!%p6802_p4)
}
  0x3b   :  { %s6806_s22 = scalar_lea.vmem %s108_s30, 8192  ;;  %p6811_p6 = scmp.lt.s32.totalorder %s108_s30, %s108_s30 }
  0x3c   :  { %p6807_p5 = scmp.ne.s32.totalorder %s108_s30, %s6806_s22  ;;  %p6812_p7 = scmp.lt.s32.totalorder %s6806_s22, %s6806_s22 }
  0x3e   :  { %p6813_p8 = por %p6812_p7, %p6811_p6 }
  0x40   :  { %p6814_p9 = pnand %p6813_p8, %p6807_p5 }
  0x42   :  { %6817 = shalt.err (!%p6814_p9)
}
  0x43   :  { %113 = dma.hbm_to_vmem [thread:$0]  %s8937_s7, 8192, %s108_s30, [#allocation17], %s7095_s28, %s7095_s28, %s7096_s24  }
  0x44   :  { %s7097_s3 = smov [#allocation19]   ;;  %s7098_s26 = smov [#allocation22]  }
  0x45   :  { %s132_s25 = sshll.u32 %s7097_s3, 4  ;;  %s154_s16 = sshll.u32 %s7098_s26, 4  ;;  %s133_s25 = int_to_ptr.vmem [resolvable:$true] %s132_s25  ;;  %s155_s16 = int_to_ptr.vmem [resolvable:$true] %s154_s16 }
  0x46   :  { %s6818_s19 = scalar_lea.hbm %s8939_s9, 64 }
  0x47   :  { %p6819_p10 = scmp.ne.s32.totalorder %s8939_s9, %s6818_s19  ;;  %p6822_p11 = scmp.lt.u32.totalorder %s6818_s19, %s8939_s9 }
  0x49   :  { %p6824_p12 = pnand %p6822_p11, %p6819_p10 }
  0x4b   :  { %6827 = shalt.err (!%p6824_p12)
}
  0x4c   :  { %s6828_s7 = scalar_lea.vmem %s133_s25, 64  ;;  %p6833_p0 = scmp.lt.s32.totalorder %s133_s25, %s133_s25 }
  0x4d   :  { %p6829_p13 = scmp.ne.s32.totalorder %s133_s25, %s6828_s7  ;;  %p6834_p1 = scmp.lt.s32.totalorder %s6828_s7, %s6828_s7 }
  0x4f   :  { %p6835_p2 = por %p6834_p1, %p6833_p0 }
  0x51   :  { %p6836_p3 = pnand %p6835_p2, %p6829_p13 }
  0x53   :  { %6839 = shalt.err (!%p6836_p3)
}
  0x54   :  { %135 = dma.hbm_to_vmem [thread:$0]  %s8939_s9, 64, %s133_s25, [#allocation20]  }
  0x55   :  { %s6840_s26 = scalar_lea.hbm %s8941_s11, 16 }
  0x56   :  { %p6841_p4 = scmp.ne.s32.totalorder %s8941_s11, %s6840_s26  ;;  %p6844_p5 = scmp.lt.u32.totalorder %s6840_s26, %s8941_s11 }
  0x58   :  { %p6846_p6 = pnand %p6844_p5, %p6841_p4 }
  0x5a   :  { %6849 = shalt.err (!%p6846_p6)
}
  0x5b   :  { %s6850_s20 = scalar_lea.vmem %s155_s16, 16  ;;  %s6854_s21 = scalar_lea.vmem %s155_s16, 32 }
  0x5c   :  { %p6851_p7 = scmp.ne.s32.totalorder %s155_s16, %s6850_s20  ;;  %p6855_p8 = scmp.lt.s32.totalorder %s155_s16, %s155_s16 }
  0x5d   :  { %p6856_p9 = scmp.lt.s32.totalorder %s6854_s21, %s6850_s20 }
  0x5f   :  { %p6857_p10 = por %p6856_p9, %p6855_p8 }
  0x61   :  { %p6858_p11 = pnand %p6857_p10, %p6851_p7 }
  0x63   :  { %6861 = shalt.err (!%p6858_p11)
}
  0x64   :  { %157 = dma.hbm_to_vmem [thread:$0]  %s8941_s11, 16, %s155_s16, [#allocation23]  }
  0x65   :  { %s8969_s30 = sld [smem:[#allocation43_spill]] }
  0x6b   :  { %s6862_s5 = scalar_lea.hbm %s8969_s30, 128 }
  0x6c   :  { %p6863_p12 = scmp.ne.s32.totalorder %s8969_s30, %s6862_s5  ;;  %p6866_p13 = scmp.lt.u32.totalorder %s6862_s5, %s8969_s30 }
  0x6e   :  { %p6868_p0 = pnand %p6866_p13, %p6863_p12 }
  0x70   :  { %6871 = shalt.err (!%p6868_p0)
}
  0x71   :  { %s7099_s0 = smov [#allocation5]   ;;  %s7100_s11 = smov [#allocation9]  }
  0x72   :  { %41 = dma.hbm_to_smem %s8969_s30, 128, %s7099_s0, [#allocation8]  }
  0x73   :  { %s49_s16 = sshll.u32 %s7100_s11, 4  ;;  %s7101_s20 = smov [#allocation12]   ;;  %s50_s16 = int_to_ptr.vmem [resolvable:$true] %s49_s16 }
  0x74   :  { %s73_s21 = sshll.u32 %s7101_s20, 4  ;;  %s8970_s22 = sld [smem:[#allocation45_spill]]  ;;  %s7288_s21 = int_to_ptr.vmem [resolvable:$true] %s73_s21 }
  0x7a   :  { %s6872_s7 = scalar_lea.hbm %s8970_s22, 256 }
  0x7b   :  { %p6873_p1 = scmp.ne.s32.totalorder %s8970_s22, %s6872_s7  ;;  %p6876_p2 = scmp.lt.u32.totalorder %s6872_s7, %s8970_s22 }
  0x7d   :  { %p6878_p3 = pnand %p6876_p2, %p6873_p1 }
  0x7f   :  { %6881 = shalt.err (!%p6878_p3)
}
  0x80   :  { %s6882_s30 = scalar_lea.vmem %s50_s16, 256  ;;  %p6887_p5 = scmp.lt.s32.totalorder %s50_s16, %s50_s16 }
  0x81   :  { %p6883_p4 = scmp.ne.s32.totalorder %s50_s16, %s6882_s30  ;;  %p6888_p6 = scmp.lt.s32.totalorder %s6882_s30, %s6882_s30 }
  0x83   :  { %p6889_p7 = por %p6888_p6, %p6887_p5 }
  0x85   :  { %p6890_p8 = pnand %p6889_p7, %p6883_p4 }
  0x87   :  { %6893 = shalt.err (!%p6890_p8)
}
  0x88   :  { %55 = dma.hbm_to_vmem [thread:$0]  %s8970_s22, 256, %s50_s16, [#allocation6], %s8952_s2, %s8952_s2, %s8954_s23  }
  0x89   :  { %s6894_s11 = scalar_lea.hbm %s8934_s4, 8192 }
  0x8a   :  { %p6895_p9 = scmp.ne.s32.totalorder %s8934_s4, %s6894_s11  ;;  %p6898_p10 = scmp.lt.u32.totalorder %s6894_s11, %s8934_s4 }
  0x8c   :  { %p6900_p11 = pnand %p6898_p10, %p6895_p9 }
  0x8e   :  { %6903 = shalt.err (!%p6900_p11)
}
  0x8f   :  { %s6904_s27 = scalar_lea.vmem %s7288_s21, 8192  ;;  %p6909_p13 = scmp.lt.s32.totalorder %s7288_s21, %s7288_s21 }
  0x90   :  { %p6905_p12 = scmp.ne.s32.totalorder %s7288_s21, %s6904_s27  ;;  %p6910_p0 = scmp.lt.s32.totalorder %s6904_s27, %s6904_s27 }
  0x92   :  { %p6911_p1 = por %p6910_p0, %p6909_p13 }
  0x94   :  { %p6912_p2 = pnand %p6911_p1, %p6905_p12 }
  0x96   :  { %6915 = shalt.err (!%p6912_p2)
}
  0x97   :  { %79 = dma.hbm_to_vmem [thread:$0]  %s8934_s4, 8192, %s7288_s21, [#allocation11], %s7095_s28, %s7095_s28, %s7096_s24  }
  0x98   :  { %s7102_s5 = smov [#allocation15]   ;;  %s7103_s26 = smov [#allocation18]  }
  0x99   :  { %s98_s3 = sshll.u32 %s7102_s5, 4  ;;  %s119_s30 = sshll.u32 %s7103_s26, 4  ;;  %s99_s3 = int_to_ptr.vmem [resolvable:$true] %s98_s3  ;;  %s7325_s30 = int_to_ptr.vmem [resolvable:$true] %s119_s30 }
  0x9a   :  { %s6916_s19 = scalar_lea.hbm %s8936_s6, 64 }
  0x9b   :  { %p6917_p3 = scmp.ne.s32.totalorder %s8936_s6, %s6916_s19  ;;  %p6920_p4 = scmp.lt.u32.totalorder %s6916_s19, %s8936_s6 }
  0x9d   :  { %p6922_p5 = pnand %p6920_p4, %p6917_p3 }
  0x9f   :  { %6925 = shalt.err (!%p6922_p5)
}
  0xa0   :  { %s6926_s4 = scalar_lea.vmem %s99_s3, 64  ;;  %p6931_p7 = scmp.lt.s32.totalorder %s99_s3, %s99_s3 }
  0xa1   :  { %p6927_p6 = scmp.ne.s32.totalorder %s99_s3, %s6926_s4  ;;  %p6932_p8 = scmp.lt.s32.totalorder %s6926_s4, %s6926_s4 }
  0xa3   :  { %p6933_p9 = por %p6932_p8, %p6931_p7 }
  0xa5   :  { %p6934_p10 = pnand %p6933_p9, %p6927_p6 }
  0xa7   :  { %6937 = shalt.err (!%p6934_p10)
}
  0xa8   :  { %101 = dma.hbm_to_vmem [thread:$0]  %s8936_s6, 64, %s99_s3, [#allocation14]  }
  0xa9   :  { %s6938_s16 = scalar_lea.hbm %s8938_s8, 8192 }
  0xaa   :  { %p6939_p11 = scmp.ne.s32.totalorder %s8938_s8, %s6938_s16  ;;  %p6942_p12 = scmp.lt.u32.totalorder %s6938_s16, %s8938_s8 }
  0xac   :  { %p6944_p13 = pnand %p6942_p12, %p6939_p11 }
  0xae   :  { %6947 = shalt.err (!%p6944_p13)
}
  0xaf   :  { %s6948_s0 = scalar_lea.vmem %s7325_s30, 8192  ;;  %p6953_p1 = scmp.lt.s32.totalorder %s7325_s30, %s7325_s30 }
  0xb0   :  { %p6949_p0 = scmp.ne.s32.totalorder %s7325_s30, %s6948_s0  ;;  %p6954_p2 = scmp.lt.s32.totalorder %s6948_s0, %s6948_s0 }
  0xb2   :  { %p6955_p3 = por %p6954_p2, %p6953_p1 }
  0xb4   :  { %p6956_p4 = pnand %p6955_p3, %p6949_p0 }
  0xb6   :  { %6959 = shalt.err (!%p6956_p4)
}
  0xb7   :  { %125 = dma.hbm_to_vmem [thread:$0]  %s8938_s8, 8192, %s7325_s30, [#allocation17], %s7095_s28, %s7095_s28, %s7096_s24  }
  0xb8   :  { %s7104_s19 = smov [#allocation21]   ;;  %s7105_s11 = smov [#allocation24]  }
  0xb9   :  { %s141_s1 = sshll.u32 %s7104_s19, 4  ;;  %s163_s20 = sshll.u32 %s7105_s11, 4  ;;  %s142_s1 = int_to_ptr.vmem [resolvable:$true] %s141_s1  ;;  %s7359_s20 = int_to_ptr.vmem [resolvable:$true] %s163_s20 }
  0xba   :  { %s6960_s21 = scalar_lea.hbm %s8940_s10, 2048 }
  0xbb   :  { %p6961_p5 = scmp.ne.s32.totalorder %s8940_s10, %s6960_s21  ;;  %p6964_p6 = scmp.lt.u32.totalorder %s6960_s21, %s8940_s10 }
  0xbd   :  { %p6966_p7 = pnand %p6964_p6, %p6961_p5 }
  0xbf   :  { %6969 = shalt.err (!%p6966_p7)
}
  0xc0   :  { %s6970_s8 = scalar_lea.vmem %s142_s1, 2048  ;;  %p6975_p9 = scmp.lt.s32.totalorder %s142_s1, %s142_s1 }
  0xc1   :  { %p6971_p8 = scmp.ne.s32.totalorder %s142_s1, %s6970_s8  ;;  %p6976_p10 = scmp.lt.s32.totalorder %s6970_s8, %s6970_s8 }
  0xc3   :  { %p6977_p11 = por %p6976_p10, %p6975_p9 }
  0xc5   :  { %p6978_p12 = pnand %p6977_p11, %p6971_p8 }
  0xc7   :  { %6981 = shalt.err (!%p6978_p12)
}
  0xc8   :  { %147 = dma.hbm_to_vmem [thread:$0]  %s8940_s10, 2048, %s142_s1, [#allocation20], %s8952_s2, %s8952_s2, %s8954_s23  }
  0xc9   :  { %s6982_s5 = scalar_lea.hbm %s8942_s12, 1024 }
  0xca   :  { %p6983_p13 = scmp.ne.s32.totalorder %s8942_s12, %s6982_s5  ;;  %p6986_p0 = scmp.lt.u32.totalorder %s6982_s5, %s8942_s12 }
  0xcc   :  { %p6988_p1 = pnand %p6986_p0, %p6983_p13 }
  0xce   :  { %6991 = shalt.err (!%p6988_p1)
}
  0xcf   :  { %s6992_s3 = scalar_lea.vmem %s7359_s20, 1024  ;;  %p6997_p3 = scmp.lt.s32.totalorder %s7359_s20, %s7359_s20 }
  0xd0   :  { %p6993_p2 = scmp.ne.s32.totalorder %s7359_s20, %s6992_s3  ;;  %p6998_p4 = scmp.lt.s32.totalorder %s6992_s3, %s6992_s3 }
  0xd2   :  { %p6999_p5 = por %p6998_p4, %p6997_p3 }
  0xd4   :  { %p7000_p6 = pnand %p6999_p5, %p6993_p2 }
  0xd6   :  { %7003 = shalt.err (!%p7000_p6)
}
  0xd7   :  { %169 = dma.hbm_to_vmem [thread:$0]  %s8942_s12, 1024, %s7359_s20, [#allocation23], %s8952_s2, %s8952_s2, %s8954_s23  }
  0xd8   :  { %s7106_s1 = smov [#allocation25]   ;;  %s7004_s21 = scalar_lea.hbm %s8943_s13, 16 }
  0xd9   :  { %s176_s11 = sshll.u32 %s7106_s1, 4  ;;  %p7005_p7 = scmp.ne.s32.totalorder %s8943_s13, %s7004_s21  ;;  %s177_s11 = int_to_ptr.vmem [resolvable:$true] %s176_s11 }
  0xda   :  { %p7008_p8 = scmp.lt.u32.totalorder %s7004_s21, %s8943_s13 }
  0xdc   :  { %p7010_p9 = pnand %p7008_p8, %p7005_p7 }
  0xde   :  { %7013 = shalt.err (!%p7010_p9)
}
  0xdf   :  { %s7014_s8 = scalar_lea.vmem %s177_s11, 16  ;;  %s7018_s12 = scalar_lea.vmem %s177_s11, 32 }
  0xe0   :  { %p7015_p10 = scmp.ne.s32.totalorder %s177_s11, %s7014_s8  ;;  %p7019_p11 = scmp.lt.s32.totalorder %s177_s11, %s177_s11 }
  0xe1   :  { %p7020_p12 = scmp.lt.s32.totalorder %s7018_s12, %s7014_s8 }
  0xe3   :  { %p7021_p13 = por %p7020_p12, %p7019_p11 }
  0xe5   :  { %p7022_p0 = pnand %p7021_p13, %p7015_p10 }
  0xe7   :  { %7025 = shalt.err (!%p7022_p0)
}
  0xe8   :  { %179 = dma.hbm_to_vmem [thread:$0]  %s8943_s13, 16, %s177_s11, [#allocation26]  }
  0xe9   :  { %7070 = dma.done.wait [#allocation8], 128  }
  0xea   :  { %7071 = vsyncadd [#allocation8], 4294967168 }
  0xeb   :  { %7072 = dma.done.wait [#allocation6], 256  }
  0xec   :  { %7073 = vsyncadd [#allocation6], 4294967040 }
  0xed   :  { %7074 = dma.done.wait [#allocation11], 8448  }
  0xee   :  { %7075 = vsyncadd [#allocation11], 4294958848 }
  0xef   :  { %7076 = dma.done.wait [#allocation14], 8256  }
  0xf0   :  { %7077 = vsyncadd [#allocation14], 4294959040 }
  0xf1   :  { %7078 = dma.done.wait [#allocation17], 16384  }
  0xf2   :  { %7079 = vsyncadd [#allocation17], 4294950912 }
  0xf3   :  { %7080 = dma.done.wait [#allocation20], 2112  }
  0xf4   :  { %7081 = vsyncadd [#allocation20], 4294965184 }
  0xf5   :  { %7082 = dma.done.wait [#allocation23], 1040  }
  0xf6   :  { %7083 = vsyncadd [#allocation23], 4294966256 }
  0xf7   :  { %7084 = dma.done.wait [#allocation26], 16  }
  0xf8   :  { %7085 = vsyncadd [#allocation26], 4294967280 }
  0xf9   :  { %223 = sfence }
  0xfa   :  { %v489_v0 = vld [vmem:[#allocation12 + $0x8] sm:$0xff]  ;;  %v491_v2 = vld [vmem:[#allocation12 + $0x18] sm:$0xff]  ;;  %v488_v5 = vld [vmem:[#allocation12] sm:$0xff]  ;;  %v7107_v7 = vmov 0.0   ;;  %s7410_s13 = sld [smem:[#allocation5]]  ;;  %s8971_s6 = sld [smem:[#allocation44_spill]] }
  0xfb   :  { %v493_v1 = vld [vmem:[#allocation12 + $0x28] sm:$0xff]  ;;  %v495_v4 = vld [vmem:[#allocation12 + $0x38] sm:$0xff]  ;;  %v492_v6 = vld [vmem:[#allocation12 + $0x20] sm:$0xff]  ;;  %638 = vmatprep.mubr.f32.mxu0 %v7107_v7  ;;  %751 = vmatprep.mubr.f32.mxu1 %v7107_v7  ;;  %s7412_s24 = sld [smem:[#allocation5 + $0x80]]  ;;  %s7438_s7 = sld [smem:[#allocation5 + $0x1]]  ;;  %vm7109_vm0 = vmmov 0  }
  0xfc   :  { %v5151_v3 = vpack.c.bf16 %v493_v1, %v489_v0  ;;  %v5183_v8 = vpack.c.bf16 %v495_v4, %v491_v2  ;;  %v5153_v9 = vpack.c.bf16 %v492_v6, %v488_v5  ;;  %v490_v10 = vld [vmem:[#allocation12 + $0x10] sm:$0xff]  ;;  %v497_v12 = vld [vmem:[#allocation12 + $0x48] sm:$0xff]  ;;  %v499_v15 = vld [vmem:[#allocation12 + $0x58] sm:$0xff]  ;;  %s7414_s30 = sld [smem:[#allocation5 + $0x100]]  ;;  %s7444_s12 = sld [smem:[#allocation5 + $0x81]]  ;;  %vm4672_vm1 = vcmask 523264  }
  0xfd   :  { %v494_v11 = vld [vmem:[#allocation12 + $0x30] sm:$0xff]  ;;  %v501_v14 = vld [vmem:[#allocation12 + $0x68] sm:$0xff]  ;;  %v503_v16 = vld [vmem:[#allocation12 + $0x78] sm:$0xff]  ;;  %s7416_s22 = sld [smem:[#allocation5 + $0x180]]  ;;  %s7450_s0 = sld [smem:[#allocation5 + $0x101]]  ;;  %vm4755_vm2 = vcmask 130048  }
  0xfe   :  { %5152 = vmatprep.subr.bf16.mxu0 %v5151_v3  ;;  %v5185_v13 = vpack.c.bf16 %v494_v11, %v490_v10  ;;  %5184 = vmatprep.subr.bf16.mxu1 %v5183_v8  ;;  %v5155_v17 = vpack.c.bf16 %v501_v14, %v497_v12  ;;  %v5187_v18 = vpack.c.bf16 %v503_v16, %v499_v15  ;;  %v496_v19 = vld [vmem:[#allocation12 + $0x40] sm:$0xff]  ;;  %v498_v21 = vld [vmem:[#allocation12 + $0x50] sm:$0xff]  ;;  %v505_v24 = vld [vmem:[#allocation12 + $0x88] sm:$0xff]  ;;  %s7418_s5 = sld [smem:[#allocation5 + $0x200]]  ;;  %s7452_s19 = sld [smem:[#allocation5 + $0x181]] }
  0xff   :  { %5154 = vmatpush1.bf16.msra.mxu0 %v5153_v9  ;;  %v500_v20 = vld [vmem:[#allocation12 + $0x60] sm:$0xff]  ;;  %v502_v23 = vld [vmem:[#allocation12 + $0x70] sm:$0xff]  ;;  %v509_v25 = vld [vmem:[#allocation12 + $0xa8] sm:$0xff]  ;;  %s7420_s26 = sld [smem:[#allocation5 + $0x280]]  ;;  %s7454_s1 = sld [smem:[#allocation5 + $0x201]] }
 0x100   :  { %5186 = vmatpush1.bf16.msra.mxu1 %v5185_v13  ;;  %v5157_v22 = vpack.c.bf16 %v500_v20, %v496_v19  ;;  %5156 = vmatprep.subr.bf16.mxu0 %v5155_v17  ;;  %v5189_v26 = vpack.c.bf16 %v502_v23, %v498_v21  ;;  %v5159_v27 = vpack.c.bf16 %v509_v25, %v505_v24  ;;  %v507_v28 = vld [vmem:[#allocation12 + $0x98] sm:$0xff]  ;;  %v504_v30 = vld [vmem:[#allocation12 + $0x80] sm:$0xff]  ;;  %v506_v33 = vld [vmem:[#allocation12 + $0x90] sm:$0xff]  ;;  %s225_s3 = scalar_lea.vmem %s8971_s6, %s7410_s13  ;;  %s7426_s10 = sld [smem:[#allocation5 + $0x300]] }
 0x101   :  { %5188 = vmatprep.subr.bf16.mxu1 %v5187_v18  ;;  %v511_v29 = vld [vmem:[#allocation12 + $0xb8] sm:$0xff]  ;;  %v508_v32 = vld [vmem:[#allocation12 + $0xa0] sm:$0xff]  ;;  %v510_v34 = vld [vmem:[#allocation12 + $0xb0] sm:$0xff]  ;;  %s229_s11 = scalar_lea.vmem %s8971_s6, %s7412_s24  ;;  %s7432_s9 = sld [smem:[#allocation5 + $0x380]] }
 0x102   :  { %v5191_v31 = vpack.c.bf16 %v511_v29, %v507_v28  ;;  %v5161_v35 = vpack.c.bf16 %v508_v32, %v504_v30  ;;  %v513_v36 = vld [vmem:[#allocation12 + $0xc8] sm:$0xff]  ;;  %v515_v38 = vld [vmem:[#allocation12 + $0xd8] sm:$0xff]  ;;  %v5193_v39 = vpack.c.bf16 %v510_v34, %v506_v33  ;;  %v512_v42 = vld [vmem:[#allocation12 + $0xc0] sm:$0xff]  ;;  %s7456_s4 = sld [smem:[#allocation5 + $0x281]]  ;;  %s7470_s8 = sld [smem:[#allocation5 + $0x2]] }
 0x103   :  { %5158 = vmatpush1.bf16.msra.mxu0 %v5157_v22  ;;  %v517_v37 = vld [vmem:[#allocation12 + $0xe8] sm:$0xff]  ;;  %v519_v41 = vld [vmem:[#allocation12 + $0xf8] sm:$0xff]  ;;  %v516_v43 = vld [vmem:[#allocation12 + $0xe0] sm:$0xff]  ;;  %s7458_s21 = sld [smem:[#allocation5 + $0x301]]  ;;  %s7480_s25 = sld [smem:[#allocation5 + $0x82]] }
 0x104   :  { %5190 = vmatpush1.bf16.msra.mxu1 %v5189_v26  ;;  %5160 = vmatprep.subr.bf16.mxu0 %v5159_v27  ;;  %v5163_v40 = vpack.c.bf16 %v517_v37, %v513_v36  ;;  %v5195_v44 = vpack.c.bf16 %v519_v41, %v515_v38  ;;  %v514_v45 = vld [vmem:[#allocation12 + $0xd0] sm:$0xff]  ;;  %v521_v47 = vld [vmem:[#allocation12 + $0x108] sm:$0xff]  ;;  %v523_v49 = vld [vmem:[#allocation12 + $0x118] sm:$0xff]  ;;  %v5165_v51 = vpack.c.bf16 %v516_v43, %v512_v42  ;;  %s7464_s28 = sld [smem:[#allocation5 + $0x381]]  ;;  %s7490_s2 = sld [smem:[#allocation5 + $0x102]] }
 0x105   :  { %5192 = vmatprep.subr.bf16.mxu1 %v5191_v31  ;;  %v518_v46 = vld [vmem:[#allocation12 + $0xf0] sm:$0xff]  ;;  %v525_v48 = vld [vmem:[#allocation12 + $0x128] sm:$0xff]  ;;  %v527_v50 = vld [vmem:[#allocation12 + $0x138] sm:$0xff]  ;;  %s7492_s23 = sld [smem:[#allocation5 + $0x182]]  ;;  %s8975_s24 = scalar_lea.vmem %s8971_s6, %s7414_s30 }
 0x106   :  { %v5197_v52 = vpack.c.bf16 %v518_v46, %v514_v45  ;;  %v5167_v53 = vpack.c.bf16 %v525_v48, %v521_v47  ;;  %v520_v54 = vld [vmem:[#allocation12 + $0x100] sm:$0xff]  ;;  %v522_v56 = vld [vmem:[#allocation12 + $0x110] sm:$0xff]  ;;  %v5199_v57 = vpack.c.bf16 %v527_v50, %v523_v49  ;;  %v529_v59 = vld [vmem:[#allocation12 + $0x148] sm:$0xff]  ;;  %s7512_s14 = sld [smem:[#allocation5 + $0x202]]  ;;  %s8976_s15 = scalar_lea.vmem %s8971_s6, %s7416_s22 }
 0x107   :  { %5162 = vmatpush1.bf16.msra.mxu0 %v5161_v35  ;;  %v524_v55 = vld [vmem:[#allocation12 + $0x120] sm:$0xff]  ;;  %v526_v58 = vld [vmem:[#allocation12 + $0x130] sm:$0xff]  ;;  %v533_v60 = vld [vmem:[#allocation12 + $0x168] sm:$0xff]  ;;  %s8977_s27 = scalar_lea.vmem %s8971_s6, %s7418_s5  ;;  %s265_s13 = scalar_lea.vmem %s8971_s6, %s7450_s0 }
 0x108   :  { %5194 = vmatpush1.bf16.msra.mxu1 %v5193_v39  ;;  %5164 = vmatprep.subr.bf16.mxu0 %v5163_v40  ;;  %v531_v61 = vld [vmem:[#allocation12 + $0x158] sm:$0xff]  ;;  %v5169_v63 = vpack.c.bf16 %v524_v55, %v520_v54  ;;  %v528_v0 = vld [vmem:[#allocation12 + $0x140] sm:$0xff]  ;;  %v5201_v1 = vpack.c.bf16 %v526_v58, %v522_v56  ;;  %v5171_v2 = vpack.c.bf16 %v533_v60, %v529_v59  ;;  %v530_v4 = vld [vmem:[#allocation12 + $0x150] sm:$0xff]  ;;  %s269_s18 = scalar_lea.vmem %s8971_s6, %s7452_s19  ;;  %s273_s16 = scalar_lea.vmem %s8971_s6, %s7454_s1 }
 0x109   :  { %5196 = vmatprep.subr.bf16.mxu1 %v5195_v44  ;;  %v535_v62 = vld [vmem:[#allocation12 + $0x178] sm:$0xff]  ;;  %v532_v3 = vld [vmem:[#allocation12 + $0x160] sm:$0xff]  ;;  %v534_v5 = vld [vmem:[#allocation12 + $0x170] sm:$0xff]  ;;  %s7572_s30 = sld [smem:[#allocation5 + $0x282]]  ;;  %s8981_s29 = scalar_lea.vmem %s8971_s6, %s7438_s7 }
 0x10a   :  { %v5203_v6 = vpack.c.bf16 %v535_v62, %v531_v61  ;;  %v537_v8 = vld [vmem:[#allocation12 + $0x188] sm:$0xff]  ;;  %v539_v10 = vld [vmem:[#allocation12 + $0x198] sm:$0xff]  ;;  %v7472_v12 = vld [vmem:[#allocation12 + $0x180] sm:$0xff]  ;;  %v5173_v14 = vpack.c.bf16 %v532_v3, %v528_v0  ;;  %8972 = sst [smem:[#allocation40_spill]] %s7490_s2  ;;  %v5205_v19 = vpack.c.bf16 %v534_v5, %v530_v4  ;;  %s7584_s5 = sld [smem:[#allocation5 + $0x302]] }
 0x10b   :  { %5166 = vmatpush1.bf16.msra.mxu0 %v5165_v51  ;;  %v541_v9 = vld [vmem:[#allocation12 + $0x1a8] sm:$0xff]  ;;  %v543_v11 = vld [vmem:[#allocation12 + $0x1b8] sm:$0xff]  ;;  %v7474_v13 = vld [vmem:[#allocation12 + $0x1a0] sm:$0xff]  ;;  %8973 = sst [smem:[#allocation41_spill]] %s7492_s23  ;;  %s285_s23 = scalar_lea.vmem %s8971_s6, %s7464_s28 }
 0x10c   :  { %5198 = vmatpush1.bf16.msra.mxu1 %v5197_v52  ;;  %5168 = vmatprep.subr.bf16.mxu0 %v5167_v53  ;;  %v7482_v15 = vld [vmem:[#allocation12 + $0x190] sm:$0xff]  ;;  %v7486_v17 = vld [vmem:[#allocation12 + $0x1c8] sm:$0xff]  ;;  %v5175_v20 = vpack.c.bf16 %v541_v9, %v537_v8  ;;  %v7494_v21 = vld [vmem:[#allocation12 + $0x1d8] sm:$0xff]  ;;  %8974 = sst [smem:[#allocation42_spill]] %s7512_s14  ;;  %v5207_v25 = vpack.c.bf16 %v543_v11, %v539_v10  ;;  %s261_s14 = scalar_lea.vmem %s8971_s6, %s7444_s12  ;;  %v5177_v32 = vpack.c.bf16 %v7474_v13, %v7472_v12 }
 0x10d   :  { %5200 = vmatprep.subr.bf16.mxu1 %v5199_v57  ;;  %v7484_v16 = vld [vmem:[#allocation12 + $0x1b0] sm:$0xff]  ;;  %v7488_v18 = vld [vmem:[#allocation12 + $0x1e8] sm:$0xff]  ;;  %v7496_v22 = vld [vmem:[#allocation12 + $0x1f8] sm:$0xff]  ;;  %s8982_s20 = sld [smem:[#allocation40_spill]]  ;;  %s293_s12 = scalar_lea.vmem %s8971_s6, %s7480_s25 }
 0x10e   :  { %v226_v23 = vld [vmem:[%s225_s3] sm:$0x1]  ;;  %s8978_s3 = scalar_lea.vmem %s8971_s6, %s7420_s26  ;;  %v7562_v33 = vld [vmem:[#allocation12 + $0x1c0] sm:$0xff]  ;;  %v5209_v36 = vpack.c.bf16 %v7484_v16, %v7482_v15  ;;  %v5179_v37 = vpack.c.bf16 %v7488_v18, %v7486_v17  ;;  %v839_v39 = vld [vmem:[#allocation13 + $0x8] sm:$0xff]  ;;  %v5211_v41 = vpack.c.bf16 %v7496_v22, %v7494_v21  ;;  %s8984_s19 = sld [smem:[#allocation42_spill]] }
 0x10f   :  { %5170 = vmatpush1.bf16.msra.mxu0 %v5169_v63  ;;  %v230_v24 = vld [vmem:[%s229_s11] sm:$0x1]  ;;  %227 = vst [vmem:[#allocation2] sm:$0x1] %v226_v23  ;;  %s8979_s11 = scalar_lea.vmem %s8971_s6, %s7426_s10  ;;  %v7564_v34 = vld [vmem:[#allocation12 + $0x1e0] sm:$0xff]  ;;  %v843_v40 = vld [vmem:[#allocation13 + $0x28] sm:$0xff] }
 0x110   :  { %5202 = vmatpush1.bf16.msra.mxu1 %v5201_v1  ;;  %5172 = vmatprep.subr.bf16.mxu0 %v5171_v2  ;;  %231 = vst [vmem:[#allocation2 + $0x1] sm:$0x1] %v230_v24  ;;  %v234_v26 = vld [vmem:[%s8975_s24] sm:$0x1]  ;;  %s281_s24 = scalar_lea.vmem %s8971_s6, %s7458_s21  ;;  %v841_v42 = vld [vmem:[#allocation13 + $0x18] sm:$0xff]  ;;  %s7597_s21 = sld [smem:[#allocation5 + $0x382]]  ;;  %v5181_v50 = vpack.c.bf16 %v7564_v34, %v7562_v33  ;;  %v7644_v56 = vpack.c.bf16 %v843_v40, %v839_v39 }
 0x111   :  { %5204 = vmatprep.subr.bf16.mxu1 %v5203_v6  ;;  %v238_v27 = vld [vmem:[%s8976_s15] sm:$0x1]  ;;  %235 = vst [vmem:[#allocation2 + $0x2] sm:$0x1] %v234_v26  ;;  %s8980_s15 = scalar_lea.vmem %s8971_s6, %s7432_s9  ;;  %s277_s9 = scalar_lea.vmem %s8971_s6, %s7456_s4  ;;  %v845_v43 = vld [vmem:[#allocation13 + $0x38] sm:$0xff]  ;;  %v838_v45 = vld [vmem:[#allocation13] sm:$0xff] }
 0x112   :  { %v242_v28 = vld [vmem:[%s8977_s27] sm:$0x1]  ;;  %239 = vst [vmem:[#allocation2 + $0x3] sm:$0x1] %v238_v27  ;;  %v842_v46 = vld [vmem:[#allocation13 + $0x20] sm:$0xff]  ;;  %s8983_s10 = sld [smem:[#allocation41_spill]]  ;;  %v7652_v60 = vpack.c.bf16 %v845_v43, %v841_v42 }
 0x113   :  { %243 = vst [vmem:[#allocation2 + $0x4] sm:$0x1] %v242_v28  ;;  %v246_v29 = vld [vmem:[%s8978_s3] sm:$0x1]  ;;  %5174 = vmatpush1.bf16.msra.mxu0 %v5173_v14  ;;  %s297_s7 = scalar_lea.vmem %s8971_s6, %s8982_s20  ;;  %v847_v59 = vld [vmem:[#allocation13 + $0x48] sm:$0xff]  ;;  %v849_v62 = vld [vmem:[#allocation13 + $0x58] sm:$0xff]  ;;  %v7666_v3 = vpack.c.bf16 %v842_v46, %v838_v45 }
 0x114   :  { %v250_v30 = vld [vmem:[%s8979_s11] sm:$0x1]  ;;  %247 = vst [vmem:[#allocation2 + $0x5] sm:$0x1] %v246_v29  ;;  %5206 = vmatpush1.bf16.msra.mxu1 %v5205_v19  ;;  %5176 = vmatprep.subr.bf16.mxu0 %v5175_v20  ;;  %v851_v61 = vld [vmem:[#allocation13 + $0x68] sm:$0xff]  ;;  %v853_v63 = vld [vmem:[#allocation13 + $0x78] sm:$0xff] }
 0x115   :  { %v254_v31 = vld [vmem:[%s8980_s15] sm:$0x1]  ;;  %251 = vst [vmem:[#allocation2 + $0x6] sm:$0x1] %v250_v30  ;;  %5208 = vmatprep.subr.bf16.mxu1 %v5207_v25  ;;  %s7658_s17 = sld [smem:[#allocation5 + $0x83]]  ;;  %v846_v1 = vld [vmem:[#allocation13 + $0x40] sm:$0xff]  ;;  %v7696_v13 = vpack.c.bf16 %v851_v61, %v847_v59  ;;  %v7698_v17 = vpack.c.bf16 %v853_v63, %v849_v62 }
 0x116   :  { %v7566_v35 = vld [vmem:[#allocation12 + $0x1d0] sm:$0xff]  ;;  %255 = vst [vmem:[#allocation2 + $0x7] sm:$0x1] %v254_v31  ;;  %v850_v2 = vld [vmem:[#allocation13 + $0x60] sm:$0xff]  ;;  %s7664_s0 = sld [smem:[#allocation5 + $0x103]]  ;;  %v855_v18 = vld [vmem:[#allocation13 + $0x88] sm:$0xff] }
 0x117   :  { %v7578_v38 = vld [vmem:[#allocation12 + $0x1f0] sm:$0xff]  ;;  %5178 = vmatpush1.bf16.msra.mxu0 %v5177_v32  ;;  %v859_v19 = vld [vmem:[#allocation13 + $0xa8] sm:$0xff]  ;;  %v857_v20 = vld [vmem:[#allocation13 + $0x98] sm:$0xff]  ;;  %v7707_v21 = vpack.c.bf16 %v850_v2, %v846_v1  ;;  %s7713_s1 = sld [smem:[#allocation5 + $0x203]]  ;;  %s7768_s22 = sld [smem:[#allocation5 + $0x184]] }
 0x118   :  { %v258_v44 = vld [vmem:[%s8981_s29] sm:$0x1]  ;;  %s289_s29 = scalar_lea.vmem %s8971_s6, %s7470_s8  ;;  %s301_s3 = scalar_lea.vmem %s8971_s6, %s8983_s10  ;;  %5210 = vmatpush1.bf16.msra.mxu1 %v5209_v36  ;;  %5180 = vmatprep.subr.bf16.mxu0 %v5179_v37  ;;  %v5213_v55 = vpack.c.bf16 %v7578_v38, %v7566_v35  ;;  %v861_v22 = vld [vmem:[#allocation13 + $0xb8] sm:$0xff]  ;;  %v854_v23 = vld [vmem:[#allocation13 + $0x80] sm:$0xff]  ;;  %v7727_v29 = vpack.c.bf16 %v859_v19, %v855_v18 }
 0x119   :  { %259 = vst [vmem:[#allocation2 + $0x8] sm:$0x1] %v258_v44  ;;  %v262_v47 = vld [vmem:[%s261_s14] sm:$0x1]  ;;  %5212 = vmatprep.subr.bf16.mxu1 %v5211_v41  ;;  %s313_s14 = scalar_lea.vmem %s8971_s6, %s7584_s5  ;;  %s317_s5 = scalar_lea.vmem %s8971_s6, %s7597_s21  ;;  %v858_v24 = vld [vmem:[#allocation13 + $0xa0] sm:$0xff]  ;;  %v7730_v33 = vpack.c.bf16 %v861_v22, %v857_v20  ;;  %v863_v34 = vld [vmem:[#allocation13 + $0xc8] sm:$0xff] }
 0x11a   :  { %v266_v48 = vld [vmem:[%s265_s13] sm:$0x1]  ;;  %263 = vst [vmem:[#allocation2 + $0x9] sm:$0x1] %v262_v47  ;;  %s7704_s10 = sld [smem:[#allocation5 + $0x183]]  ;;  %v867_v35 = vld [vmem:[#allocation13 + $0xe8] sm:$0xff]  ;;  %v7737_v36 = vpack.c.bf16 %v858_v24, %v854_v23 }
 0x11b   :  { %v270_v49 = vld [vmem:[%s269_s18] sm:$0x1]  ;;  %267 = vst [vmem:[#allocation2 + $0xa] sm:$0x1] %v266_v48  ;;  %5182 = vmatpush1.bf16.msra.mxu0 %v5181_v50  ;;  %s7732_s11 = sld [smem:[#allocation5 + $0x303]]  ;;  %v865_v37 = vld [vmem:[#allocation13 + $0xd8] sm:$0xff]  ;;  %v7757_v46 = vpack.c.bf16 %v867_v35, %v863_v34 }
 0x11c   :  { %v840_v51 = vld [vmem:[#allocation13 + $0x10] sm:$0xff]  ;;  %271 = vst [vmem:[#allocation2 + $0xb] sm:$0x1] %v270_v49  ;;  %5214 = vmatpush1.bf16.msra.mxu1 %v5213_v55  ;;  %5216 = vmatprep.subr.bf16.mxu0 %v7644_v56  ;;  %v869_v38 = vld [vmem:[#allocation13 + $0xf8] sm:$0xff]  ;;  %v862_v39 = vld [vmem:[#allocation13 + $0xc0] sm:$0xff]  ;;  %s7759_s18 = sld [smem:[#allocation5 + $0x104]] }
 0x11d   :  { %v274_v52 = vld [vmem:[%s273_s16] sm:$0x1]  ;;  %s305_s16 = scalar_lea.vmem %s8971_s6, %s8984_s19  ;;  %v480_v0 = vld [vmem:[#allocation2] sm:$0xff]  ;;  %5248 = vmatprep.subr.bf16.mxu1 %v7652_v60  ;;  %s337_s13 = scalar_lea.vmem %s8971_s6, %s7713_s1  ;;  %v871_v47 = vld [vmem:[#allocation13 + $0x108] sm:$0xff]  ;;  %v7766_v49 = vpack.c.bf16 %v869_v38, %v865_v37 }
 0x11e   :  { %v278_v53 = vld [vmem:[%s277_s9] sm:$0x1]  ;;  %275 = vst [vmem:[#allocation2 + $0xc] sm:$0x1] %v274_v52  ;;  %s7650_s9 = sld [smem:[#allocation5 + $0x3]]  ;;  %639 = vmatmul.mubr.f32.vlgmr.msra.gmra.mrb[0].mxu0 %v480_v0  ;;  %v866_v41 = vld [vmem:[#allocation13 + $0xe0] sm:$0xff]  ;;  %s365_s19 = scalar_lea.vmem %s8971_s6, %s7768_s22 }
 0x11f   :  { %v282_v54 = vld [vmem:[%s281_s24] sm:$0x1]  ;;  %279 = vst [vmem:[#allocation2 + $0xd] sm:$0x1] %v278_v53  ;;  %752 = vmatmul.mubr.f32.vlgmr.msra.gmra.mrb[0].mxu1 %v480_v0  ;;  %5218 = vmatpush1.bf16.msra.mxu0 %v7666_v3  ;;  %s7723_s24 = sld [smem:[#allocation5 + $0x283]]  ;;  %v875_v50 = vld [vmem:[#allocation13 + $0x128] sm:$0xff]  ;;  %v7771_v53 = vpack.c.bf16 %v866_v41, %v862_v39 }
 0x120   :  { %v844_v57 = vld [vmem:[#allocation13 + $0x30] sm:$0xff]  ;;  %283 = vst [vmem:[#allocation2 + $0xe] sm:$0x1] %v282_v54  ;;  %644 = vmatprep.mubr.f32.mxu0 %v7107_v7  ;;  %757 = vmatprep.mubr.f32.mxu1 %v7107_v7  ;;  %s7773_s28 = sld [smem:[#allocation5 + $0x204]]  ;;  %v7789_v55 = vpack.c.bf16 %v875_v50, %v871_v47  ;;  %v874_v59 = vld [vmem:[#allocation13 + $0x120] sm:$0xff]  ;;  %s7815_s2 = sld [smem:[#allocation5 + $0x5]] }
 0x121   :  { %v286_v58 = vld [vmem:[%s285_s23] sm:$0x1]  ;;  %s309_s23 = scalar_lea.vmem %s8971_s6, %s7572_s30  ;;  %v7683_v9 = vpack.c.bf16 %v844_v57, %v840_v51  ;;  %5220 = vmatprep.subr.bf16.mxu0 %v7696_v13  ;;  %v873_v51 = vld [vmem:[#allocation13 + $0x118] sm:$0xff]  ;;  %s7775_s8 = sld [smem:[#allocation5 + $0x284]]  ;;  %v878_v19 = vld [vmem:[#allocation13 + $0x140] sm:$0xff] }
 0x122   :  { %287 = vst [vmem:[#allocation2 + $0xf] sm:$0x1] %v286_v58  ;;  %v848_v4 = vld [vmem:[#allocation13 + $0x50] sm:$0xff]  ;;  %s345_s21 = scalar_lea.vmem %s8971_s6, %s7732_s11  ;;  %v877_v57 = vld [vmem:[#allocation13 + $0x138] sm:$0xff]  ;;  %v870_v58 = vld [vmem:[#allocation13 + $0x100] sm:$0xff]  ;;  %s7797_s4 = sld [smem:[#allocation5 + $0x304]] }
 0x123   :  { %v852_v5 = vld [vmem:[#allocation13 + $0x70] sm:$0xff]  ;;  %5250 = vmatpush1.bf16.msra.mxu1 %v7683_v9  ;;  %5222 = vmatpush1.bf16.msra.mxu0 %v7707_v21  ;;  %v7799_v63 = vpack.c.bf16 %v877_v57, %v873_v51  ;;  %s7806_s11 = sld [smem:[#allocation5 + $0x384]]  ;;  %s361_s15 = scalar_lea.vmem %s8971_s6, %s7759_s18  ;;  %v882_v20 = vld [vmem:[#allocation13 + $0x160] sm:$0xff]  ;;  %v889_v34 = vld [vmem:[#allocation13 + $0x198] sm:$0xff] }
 0x124   :  { %v290_v6 = vld [vmem:[%s289_s29] sm:$0x1]  ;;  %s321_s20 = scalar_lea.vmem %s8971_s6, %s7650_s9  ;;  %v7717_v26 = vpack.c.bf16 %v852_v5, %v848_v4  ;;  %s329_s9 = scalar_lea.vmem %s8971_s6, %s7664_s0  ;;  %5252 = vmatprep.subr.bf16.mxu1 %v7698_v17  ;;  %5224 = vmatprep.subr.bf16.mxu0 %v7727_v29  ;;  %v7813_v5 = vpack.c.bf16 %v874_v59, %v870_v58  ;;  %v893_v39 = vld [vmem:[#allocation13 + $0x1b8] sm:$0xff]  ;;  %v895_v51 = vld [vmem:[#allocation13 + $0x1c8] sm:$0xff] }
 0x125   :  { %v294_v8 = vld [vmem:[%s293_s12] sm:$0x1]  ;;  %291 = vst [vmem:[#allocation2 + $0x10] sm:$0x1] %v290_v6  ;;  %s7749_s0 = sld [smem:[#allocation5 + $0x84]]  ;;  %v879_v6 = vld [vmem:[#allocation13 + $0x148] sm:$0xff] }
 0x126   :  { %295 = vst [vmem:[#allocation2 + $0x11] sm:$0x1] %v294_v8  ;;  %v298_v10 = vld [vmem:[%s297_s7] sm:$0x1]  ;;  %v883_v8 = vld [vmem:[#allocation13 + $0x168] sm:$0xff]  ;;  %s7825_s30 = sld [smem:[#allocation5 + $0x85]]  ;;  %s369_s27 = scalar_lea.vmem %s8971_s6, %s7773_s28 }
 0x127   :  { %v302_v11 = vld [vmem:[%s301_s3] sm:$0x1]  ;;  %299 = vst [vmem:[#allocation2 + $0x12] sm:$0x1] %v298_v10  ;;  %s325_s3 = scalar_lea.vmem %s8971_s6, %s7658_s17  ;;  %s7739_s17 = sld [smem:[#allocation5 + $0x4]]  ;;  %5254 = vmatpush1.bf16.msra.mxu1 %v7717_v26  ;;  %5226 = vmatpush1.bf16.msra.mxu0 %v7737_v36  ;;  %v899_v58 = vld [vmem:[#allocation13 + $0x1e8] sm:$0xff] }
 0x128   :  { %v306_v12 = vld [vmem:[%s305_s16] sm:$0x1]  ;;  %303 = vst [vmem:[#allocation2 + $0x13] sm:$0x1] %v302_v11  ;;  %5256 = vmatprep.subr.bf16.mxu1 %v7730_v33  ;;  %5228 = vmatprep.subr.bf16.mxu0 %v7757_v46  ;;  %s373_s22 = scalar_lea.vmem %s8971_s6, %s7775_s8  ;;  %s7840_s29 = sld [smem:[#allocation5 + $0x105]]  ;;  %v897_v59 = vld [vmem:[#allocation13 + $0x1d8] sm:$0xff] }
 0x129   :  { %307 = vst [vmem:[#allocation2 + $0x14] sm:$0x1] %v306_v12  ;;  %v310_v14 = vld [vmem:[%s309_s23] sm:$0x1]  ;;  %v481_v25 = vld [vmem:[#allocation2 + $0x8] sm:$0xff]  ;;  %s7734_s23 = sld [smem:[#allocation5 + $0x383]]  ;;  %v7827_v12 = vpack.c.bf16 %v883_v8, %v879_v6 }
 0x12a   :  { %v314_v15 = vld [vmem:[%s313_s14] sm:$0x1]  ;;  %311 = vst [vmem:[#allocation2 + $0x15] sm:$0x1] %v310_v14  ;;  %645 = vmatmul.mubr.f32.gmra.mrb[2].mxu0 %v481_v25  ;;  %758 = vmatmul.mubr.f32.gmra.mrb[2].mxu1 %v481_v25  ;;  %s333_s14 = scalar_lea.vmem %s8971_s6, %s7704_s10  ;;  %v881_v14 = vld [vmem:[#allocation13 + $0x158] sm:$0xff]  ;;  %s7847_s8 = sld [smem:[#allocation5 + $0x185]] }
 0x12b   :  { %v318_v16 = vld [vmem:[%s317_s5] sm:$0x1]  ;;  %315 = vst [vmem:[#allocation2 + $0x16] sm:$0x1] %v314_v15  ;;  %650 = vmatprep.mubr.f32.mxu0 %v7107_v7  ;;  %763 = vmatprep.mubr.f32.mxu1 %v7107_v7  ;;  %s341_s5 = scalar_lea.vmem %s8971_s6, %s7723_s24  ;;  %s357_s24 = scalar_lea.vmem %s8971_s6, %s7749_s0  ;;  %v885_v15 = vld [vmem:[#allocation13 + $0x178] sm:$0xff]  ;;  %v898_v6 = vld [vmem:[#allocation13 + $0x1e0] sm:$0xff] }
 0x12c   :  { %319 = vst [vmem:[#allocation2 + $0x17] sm:$0x1] %v318_v16  ;;  %v856_v27 = vld [vmem:[#allocation13 + $0x90] sm:$0xff]  ;;  %5230 = vmatpush1.bf16.msra.mxu0 %v7771_v53  ;;  %v7838_v18 = vpack.c.bf16 %v885_v15, %v881_v14  ;;  %s7854_s7 = sld [smem:[#allocation5 + $0x205]]  ;;  %s7960_s26 = sld [smem:[#allocation5 + $0x7]] }
 0x12d   :  { %v860_v28 = vld [vmem:[#allocation13 + $0xb0] sm:$0xff]  ;;  %s353_s1 = scalar_lea.vmem %s8971_s6, %s7739_s17  ;;  %5232 = vmatprep.subr.bf16.mxu0 %v7789_v55  ;;  %s7865_s16 = sld [smem:[#allocation5 + $0x285]] }
 0x12e   :  { %v322_v30 = vld [vmem:[%s321_s20] sm:$0x1]  ;;  %v7743_v40 = vpack.c.bf16 %v860_v28, %v856_v27  ;;  %v887_v27 = vld [vmem:[#allocation13 + $0x188] sm:$0xff]  ;;  %s7880_s17 = sld [smem:[#allocation5 + $0x385]]  ;;  %s393_s0 = scalar_lea.vmem %s8971_s6, %s7840_s29 }
 0x12f   :  { %v326_v31 = vld [vmem:[%s325_s3] sm:$0x1]  ;;  %323 = vst [vmem:[#allocation2 + $0x18] sm:$0x1] %v322_v30  ;;  %s349_s12 = scalar_lea.vmem %s8971_s6, %s7734_s23  ;;  %v7857_v30 = vpack.c.bf16 %v882_v20, %v878_v19  ;;  %s7874_s23 = sld [smem:[#allocation5 + $0x305]] }
 0x130   :  { %v330_v32 = vld [vmem:[%s329_s9] sm:$0x1]  ;;  %327 = vst [vmem:[#allocation2 + $0x19] sm:$0x1] %v326_v31  ;;  %5258 = vmatpush1.bf16.msra.mxu1 %v7743_v40  ;;  %5234 = vmatpush1.bf16.msra.mxu0 %v7813_v5  ;;  %s397_s18 = scalar_lea.vmem %s8971_s6, %s7847_s8  ;;  %s7908_s29 = sld [smem:[#allocation5 + $0x186]] }
 0x131   :  { %331 = vst [vmem:[#allocation2 + $0x1a] sm:$0x1] %v330_v32  ;;  %v864_v42 = vld [vmem:[#allocation13 + $0xd0] sm:$0xff]  ;;  %5260 = vmatprep.subr.bf16.mxu1 %v7766_v49  ;;  %5236 = vmatprep.subr.bf16.mxu0 %v7827_v12  ;;  %v891_v32 = vld [vmem:[#allocation13 + $0x1a8] sm:$0xff]  ;;  %s7916_s8 = sld [smem:[#allocation5 + $0x206]]  ;;  %s7968_s25 = sld [smem:[#allocation5 + $0x87]] }
 0x132   :  { %v868_v43 = vld [vmem:[#allocation13 + $0xf0] sm:$0xff]  ;;  %v7868_v38 = vpack.c.bf16 %v891_v32, %v887_v27  ;;  %s5001_s20 = sld [smem:[#allocation5 + $0x107]] }
 0x133   :  { %v482_v44 = vld [vmem:[#allocation2 + $0x10] sm:$0xff]  ;;  %v7787_v54 = vpack.c.bf16 %v868_v43, %v864_v42  ;;  %v7876_v42 = vpack.c.bf16 %v893_v39, %v889_v34  ;;  %v886_v43 = vld [vmem:[#allocation13 + $0x180] sm:$0xff]  ;;  %s5002_s10 = sld [smem:[#allocation5 + $0x187]] }
 0x134   :  { %v334_v45 = vld [vmem:[%s333_s14] sm:$0x1]  ;;  %651 = vmatmul.mubr.f32.gmra.mrb[4].mxu0 %v482_v44  ;;  %764 = vmatmul.mubr.f32.gmra.mrb[4].mxu1 %v482_v44  ;;  %v890_v44 = vld [vmem:[#allocation13 + $0x1a0] sm:$0xff] }
 0x135   :  { %335 = vst [vmem:[#allocation2 + $0x1b] sm:$0x1] %v334_v45  ;;  %v338_v48 = vld [vmem:[%s337_s13] sm:$0x1]  ;;  %656 = vmatprep.mubr.f32.mxu0 %v7107_v7  ;;  %769 = vmatprep.mubr.f32.mxu1 %v7107_v7  ;;  %v7892_v47 = vpack.c.bf16 %v890_v44, %v886_v43 }
 0x136   :  { %339 = vst [vmem:[#allocation2 + $0x1c] sm:$0x1] %v338_v48  ;;  %v342_v52 = vld [vmem:[%s341_s5] sm:$0x1]  ;;  %5262 = vmatpush1.bf16.msra.mxu1 %v7787_v54  ;;  %5238 = vmatpush1.bf16.msra.mxu0 %v7857_v30 }
 0x137   :  { %343 = vst [vmem:[#allocation2 + $0x1d] sm:$0x1] %v342_v52  ;;  %v346_v61 = vld [vmem:[%s345_s21] sm:$0x1]  ;;  %5264 = vmatprep.subr.bf16.mxu1 %v7799_v63  ;;  %s377_s21 = scalar_lea.vmem %s8971_s6, %s7797_s4  ;;  %s385_s4 = scalar_lea.vmem %s8971_s6, %s7815_s2  ;;  %5240 = vmatprep.subr.bf16.mxu0 %v7868_v38 }
 0x138   :  { %v350_v62 = vld [vmem:[%s349_s12] sm:$0x1]  ;;  %347 = vst [vmem:[#allocation2 + $0x1e] sm:$0x1] %v346_v61  ;;  %s381_s12 = scalar_lea.vmem %s8971_s6, %s7806_s11  ;;  %s389_s11 = scalar_lea.vmem %s8971_s6, %s7825_s30 }
 0x139   :  { %351 = vst [vmem:[#allocation2 + $0x1f] sm:$0x1] %v350_v62  ;;  %v354_v0 = vld [vmem:[%s353_s1] sm:$0x1]  ;;  %v7910_v62 = vpack.c.bf16 %v899_v58, %v895_v51  ;;  %s7946_s2 = sld [smem:[#allocation5 + $0x306]]  ;;  %s457_s13 = scalar_lea.vmem %s8971_s6, %s5001_s20 }
 0x13a   :  { %v872_v1 = vld [vmem:[#allocation13 + $0x110] sm:$0xff]  ;;  %355 = vst [vmem:[#allocation2 + $0x20] sm:$0x1] %v354_v0  ;;  %v901_v0 = vld [vmem:[#allocation13 + $0x1f8] sm:$0xff]  ;;  %5242 = vmatpush1.bf16.msra.mxu0 %v7892_v47  ;;  %s7954_s30 = sld [smem:[#allocation5 + $0x386]]  ;;  %s461_s5 = scalar_lea.vmem %s8971_s6, %s5002_s10 }
 0x13b   :  { %v876_v2 = vld [vmem:[#allocation13 + $0x130] sm:$0xff]  ;;  %5244 = vmatprep.subr.bf16.mxu0 %v7910_v62 }
 0x13c   :  { %v358_v4 = vld [vmem:[%s357_s24] sm:$0x1]  ;;  %v7823_v11 = vpack.c.bf16 %v876_v2, %v872_v1  ;;  %v894_v1 = vld [vmem:[#allocation13 + $0x1c0] sm:$0xff] }
 0x13d   :  { %359 = vst [vmem:[#allocation2 + $0x21] sm:$0x1] %v358_v4  ;;  %v362_v10 = vld [vmem:[%s361_s15] sm:$0x1]  ;;  %s7882_s15 = sld [smem:[#allocation5 + $0x6]]  ;;  %v7918_v4 = vpack.c.bf16 %v901_v0, %v897_v59  ;;  %v7928_v14 = vpack.c.bf16 %v898_v6, %v894_v1 }
 0x13e   :  { %363 = vst [vmem:[#allocation2 + $0x22] sm:$0x1] %v362_v10  ;;  %v366_v16 = vld [vmem:[%s365_s19] sm:$0x1]  ;;  %5266 = vmatpush1.bf16.msra.mxu1 %v7823_v11  ;;  %s7890_s19 = sld [smem:[#allocation5 + $0x86]] }
 0x13f   :  { %367 = vst [vmem:[#allocation2 + $0x23] sm:$0x1] %v366_v16  ;;  %v370_v22 = vld [vmem:[%s369_s27] sm:$0x1]  ;;  %5268 = vmatprep.subr.bf16.mxu1 %v7838_v18  ;;  %s7898_s27 = sld [smem:[#allocation5 + $0x106]]  ;;  %5246 = vmatpush1.bf16.msra.mxu0 %v7928_v14  ;;  %s441_s1 = scalar_lea.vmem %s8971_s6, %s7946_s2 }
 0x140   :  { %v374_v23 = vld [vmem:[%s373_s22] sm:$0x1]  ;;  %371 = vst [vmem:[#allocation2 + $0x24] sm:$0x1] %v370_v22  ;;  %v483_v35 = vld [vmem:[#allocation2 + $0x18] sm:$0xff]  ;;  %s401_s22 = scalar_lea.vmem %s8971_s6, %s7854_s7  ;;  %s7924_s7 = sld [smem:[#allocation5 + $0x286]]  ;;  %5280 = vmatprep.subr.bf16.mxu0 %v7644_v56 }
 0x141   :  { %375 = vst [vmem:[#allocation2 + $0x25] sm:$0x1] %v374_v23  ;;  %v880_v24 = vld [vmem:[#allocation13 + $0x150] sm:$0xff]  ;;  %657 = vmatmul.mubr.f32.gmra.mrb[6].mxu0 %v483_v35  ;;  %770 = vmatmul.mubr.f32.gmra.mrb[6].mxu1 %v483_v35 }
 0x142   :  { %v884_v25 = vld [vmem:[#allocation13 + $0x170] sm:$0xff]  ;;  %662 = vmatprep.mubr.f32.mxu0 %v7107_v7  ;;  %775 = vmatprep.mubr.f32.mxu1 %v7107_v7 }
 0x143   :  { %v378_v28 = vld [vmem:[%s377_s21] sm:$0x1]  ;;  %v7859_v31 = vpack.c.bf16 %v884_v25, %v880_v24  ;;  %s405_s21 = scalar_lea.vmem %s8971_s6, %s7865_s16  ;;  %s417_s24 = scalar_lea.vmem %s8971_s6, %s7882_s15 }
 0x144   :  { %379 = vst [vmem:[#allocation2 + $0x26] sm:$0x1] %v378_v28  ;;  %v382_v37 = vld [vmem:[%s381_s12] sm:$0x1]  ;;  %s409_s12 = scalar_lea.vmem %s8971_s6, %s7874_s23  ;;  %s5006_s15 = sld [smem:[#allocation5 + $0x387]] }
 0x145   :  { %383 = vst [vmem:[#allocation2 + $0x27] sm:$0x1] %v382_v37  ;;  %v386_v41 = vld [vmem:[%s385_s4] sm:$0x1]  ;;  %5270 = vmatpush1.bf16.msra.mxu1 %v7859_v31  ;;  %s413_s4 = scalar_lea.vmem %s8971_s6, %s7880_s17  ;;  %s421_s17 = scalar_lea.vmem %s8971_s6, %s7890_s19 }
 0x146   :  { %387 = vst [vmem:[#allocation2 + $0x28] sm:$0x1] %v386_v41  ;;  %v390_v45 = vld [vmem:[%s389_s11] sm:$0x1]  ;;  %5272 = vmatprep.subr.bf16.mxu1 %v7876_v42  ;;  %s7986_s11 = sld [smem:[#allocation5 + $0x307]]  ;;  %s8985_s16 = sld [smem:[#allocation46_spill]] }
 0x147   :  { %391 = vst [vmem:[#allocation2 + $0x29] sm:$0x1] %v390_v45  ;;  %v888_v48 = vld [vmem:[#allocation13 + $0x190] sm:$0xff]  ;;  %s7111_s23 = smov [#allocation28]  }
 0x148   :  { %v892_v50 = vld [vmem:[#allocation13 + $0x1b0] sm:$0xff] }
 0x149   :  { %v394_v52 = vld [vmem:[%s393_s0] sm:$0x1]  ;;  %v7902_v57 = vpack.c.bf16 %v892_v50, %v888_v48  ;;  %s425_s0 = scalar_lea.vmem %s8971_s6, %s7898_s27 }
 0x14a   :  { %395 = vst [vmem:[#allocation2 + $0x2a] sm:$0x1] %v394_v52  ;;  %v398_v61 = vld [vmem:[%s397_s18] sm:$0x1]  ;;  %s429_s18 = scalar_lea.vmem %s8971_s6, %s7908_s29  ;;  %v832_v52 = vld [vmem:[#allocation9] sm:$0xff] }
 0x14b   :  { %399 = vst [vmem:[#allocation2 + $0x2b] sm:$0x1] %v398_v61  ;;  %v402_v2 = vld [vmem:[%s401_s22] sm:$0x1]  ;;  %5274 = vmatpush1.bf16.msra.mxu1 %v7902_v57  ;;  %s433_s22 = scalar_lea.vmem %s8971_s6, %s7916_s8 }
 0x14c   :  { %v896_v8 = vld [vmem:[#allocation13 + $0x1d0] sm:$0xff]  ;;  %403 = vst [vmem:[#allocation2 + $0x2c] sm:$0x1] %v402_v2  ;;  %v484_v16 = vld [vmem:[#allocation2 + $0x20] sm:$0xff]  ;;  %5276 = vmatprep.subr.bf16.mxu1 %v7918_v4  ;;  %s473_s3 = scalar_lea.vmem %s8971_s6, %s7986_s11  ;;  %s7110_s11 = smov [#allocation27]  }
 0x14d   :  { %v406_v10 = vld [vmem:[%s405_s21] sm:$0x1]  ;;  %663 = vmatmul.mubr.f32.gmra.mrb[8].mxu0 %v484_v16  ;;  %776 = vmatmul.mubr.f32.gmra.mrb[8].mxu1 %v484_v16  ;;  %s437_s21 = scalar_lea.vmem %s8971_s6, %s7924_s7  ;;  %s4843_s7 = sshll.u32 %s7110_s11, 4  ;;  %s4844_s7 = int_to_ptr.vmem [resolvable:$true] %s4843_s7 }
 0x14e   :  { %v900_v15 = vld [vmem:[#allocation13 + $0x1f0] sm:$0xff]  ;;  %407 = vst [vmem:[#allocation2 + $0x2d] sm:$0x1] %v406_v10  ;;  %668 = vmatprep.mubr.f32.mxu0 %v7107_v7  ;;  %781 = vmatprep.mubr.f32.mxu1 %v7107_v7  ;;  %p7031_p2 = scmp.lt.s32.totalorder %s4844_s7, %s4844_s7 }
 0x14f   :  { %v410_v19 = vld [vmem:[%s409_s12] sm:$0x1]  ;;  %v7940_v20 = vpack.c.bf16 %v900_v15, %v896_v8  ;;  %s5003_s12 = sld [smem:[#allocation5 + $0x207]] }
 0x150   :  { %411 = vst [vmem:[#allocation2 + $0x2e] sm:$0x1] %v410_v19  ;;  %v414_v22 = vld [vmem:[%s413_s4] sm:$0x1]  ;;  %s7980_s4 = sld [smem:[#allocation5 + $0x287]] }
 0x151   :  { %v418_v23 = vld [vmem:[%s417_s24] sm:$0x1]  ;;  %415 = vst [vmem:[#allocation2 + $0x2f] sm:$0x1] %v414_v22  ;;  %5278 = vmatpush1.bf16.msra.mxu1 %v7940_v20  ;;  %s445_s24 = scalar_lea.vmem %s8971_s6, %s7954_s30 }
 0x152   :  { %419 = vst [vmem:[#allocation2 + $0x30] sm:$0x1] %v418_v23  ;;  %v422_v24 = vld [vmem:[%s421_s17] sm:$0x1]  ;;  %5312 = vmatprep.subr.bf16.mxu1 %v7652_v60  ;;  %s449_s17 = scalar_lea.vmem %s8971_s6, %s7960_s26 }
 0x153   :  { %423 = vst [vmem:[#allocation2 + $0x31] sm:$0x1] %v422_v24  ;;  %v426_v25 = vld [vmem:[%s425_s0] sm:$0x1]  ;;  %s453_s0 = scalar_lea.vmem %s8971_s6, %s7968_s25 }
 0x154   :  { %427 = vst [vmem:[#allocation2 + $0x32] sm:$0x1] %v426_v25  ;;  %v430_v27 = vld [vmem:[%s429_s18] sm:$0x1] }
 0x155   :  { %431 = vst [vmem:[#allocation2 + $0x33] sm:$0x1] %v430_v27  ;;  %v434_v28 = vld [vmem:[%s433_s22] sm:$0x1]  ;;  %s465_s25 = scalar_lea.vmem %s8971_s6, %s5003_s12  ;;  %s477_s12 = scalar_lea.vmem %s8971_s6, %s5006_s15 }
 0x156   :  { %435 = vst [vmem:[#allocation2 + $0x34] sm:$0x1] %v434_v28  ;;  %v438_v32 = vld [vmem:[%s437_s21] sm:$0x1]  ;;  %s469_s21 = scalar_lea.vmem %s8971_s6, %s7980_s4  ;;  %s7026_s15 = scalar_lea.vmem %s4844_s7, 256 }
 0x157   :  { %439 = vst [vmem:[#allocation2 + $0x35] sm:$0x1] %v438_v32  ;;  %v442_v56 = vld [vmem:[%s441_s1] sm:$0x1]  ;;  %p7027_p1 = scmp.ne.s32.totalorder %s4844_s7, %s7026_s15  ;;  %p7032_p3 = scmp.lt.s32.totalorder %s7026_s15, %s7026_s15 }
 0x158   :  { %v485_v60 = vld [vmem:[#allocation2 + $0x28] sm:$0xff]  ;;  %443 = vst [vmem:[#allocation2 + $0x36] sm:$0x1] %v442_v56  ;;  %v446_v34 = vld [vmem:[%s445_s24] sm:$0x1] }
 0x159   :  { %669 = vmatmul.mubr.f32.gmra.mrb[10].mxu0 %v485_v60  ;;  %782 = vmatmul.mubr.f32.gmra.mrb[10].mxu1 %v485_v60  ;;  %447 = vst [vmem:[#allocation2 + $0x37] sm:$0x1] %v446_v34  ;;  %v450_v35 = vld [vmem:[%s449_s17] sm:$0x1]  ;;  %s4855_s17 = sshll.u32 %s7111_s23, 4  ;;  %p7033_p4 = por %p7032_p3, %p7031_p2  ;;  %s8887_s17 = int_to_ptr.vmem [resolvable:$true] %s4855_s17 }
 0x15a   :  { %674 = vmatprep.mubr.f32.mxu0 %v7107_v7  ;;  %787 = vmatprep.mubr.f32.mxu1 %v7107_v7  ;;  %451 = vst [vmem:[#allocation2 + $0x38] sm:$0x1] %v450_v35  ;;  %v454_v37 = vld [vmem:[%s453_s0] sm:$0x1] }
 0x15b   :  { %455 = vst [vmem:[#allocation2 + $0x39] sm:$0x1] %v454_v37  ;;  %v458_v39 = vld [vmem:[%s457_s13] sm:$0x1]  ;;  %p7034_p5 = pnand %p7033_p4, %p7027_p1 }
 0x15c   :  { %459 = vst [vmem:[#allocation2 + $0x3a] sm:$0x1] %v458_v39  ;;  %v462_v41 = vld [vmem:[%s461_s5] sm:$0x1] }
 0x15d   :  { %v466_v43 = vld [vmem:[%s465_s25] sm:$0x1]  ;;  %463 = vst [vmem:[#allocation2 + $0x3b] sm:$0x1] %v462_v41 }
 0x15e   :  { %467 = vst [vmem:[#allocation2 + $0x3c] sm:$0x1] %v466_v43  ;;  %v470_v44 = vld [vmem:[%s469_s21] sm:$0x1] }
 0x15f   :  { %471 = vst [vmem:[#allocation2 + $0x3d] sm:$0x1] %v470_v44  ;;  %v474_v45 = vld [vmem:[%s473_s3] sm:$0x1] }
 0x160   :  { %475 = vst [vmem:[#allocation2 + $0x3e] sm:$0x1] %v474_v45  ;;  %v478_v48 = vld [vmem:[%s477_s12] sm:$0x1] }
 0x161   :  { %v486_v50 = vld [vmem:[#allocation2 + $0x30] sm:$0xff]  ;;  %479 = vst [vmem:[#allocation2 + $0x3f] sm:$0x1] %v478_v48 }
 0x162   :  { %675 = vmatmul.mubr.f32.gmra.mrb[12].mxu0 %v486_v50  ;;  %788 = vmatmul.mubr.f32.gmra.mrb[12].mxu1 %v486_v50  ;;  %v833_v35 = vld [vmem:[#allocation10] sm:$0xff] }
 0x163   :  { %680 = vmatprep.mubr.f32.mxu0 %v7107_v7  ;;  %793 = vmatprep.mubr.f32.mxu1 %v7107_v7 }
 0x168   :  { %v487_v51 = vld [vmem:[#allocation2 + $0x38] sm:$0xff] }
 0x169   :  { %681 = vmatmul.mubr.f32.gmra.mrb[14].mxu0 %v487_v51  ;;  %794 = vmatmul.mubr.f32.gmra.mrb[14].mxu1 %v487_v51 }
 0x16a   :  { %966 = vmatprep.mubr.f32.mxu0 %v7107_v7  ;;  %1037 = vmatprep.mubr.f32.mxu1 %v7107_v7 }
 0x16d   :  { %967 = vmatmul.mubr.f32.vlgmr.msra.gmra.mrb[0].mxu0 %v832_v52  ;;  %1038 = vmatmul.mubr.f32.vlgmr.msra.gmra.mrb[0].mxu1 %v832_v52  ;;  %v1317_v52 = vld [vmem:[#allocation13 + $0x8] sm:$0xff] }
 0x16e   :  { %5282 = vmatpush1.bf16.msra.mxu0 %v7666_v3  ;;  %5314 = vmatpush1.bf16.msra.mxu1 %v7683_v9  ;;  %v554_v3 = vlaneseq }
 0x16f   :  { %5284 = vmatprep.subr.bf16.mxu0 %v7696_v13  ;;  %5316 = vmatprep.subr.bf16.mxu1 %v7698_v17  ;;  %v552_v17 = vld [vmem:[#allocation15] sm:$0xf] }
 0x170   :  { %1205 = vmatprep.mubr.f32.mxu0 %v7107_v7  ;;  %1276 = vmatprep.mubr.f32.mxu1 %v7107_v7  ;;  %v8054_v9 = vshrl.u32 %v554_v3, 7  ;;  %v1321_v3 = vld [vmem:[#allocation13 + $0x28] sm:$0xff] }
 0x172   :  { %5286 = vmatpush1.bf16.msra.mxu0 %v7707_v21  ;;  %5318 = vmatpush1.bf16.msra.mxu1 %v7717_v26  ;;  %v556_v13 = vsub.s32 0, %v8054_v9  ;;  %v560_v21 = vsub.s32 1, %v8054_v9  ;;  %v568_v0 = vsub.s32 3, %v8054_v9  ;;  %v564_v19 = vsub.s32 2, %v8054_v9 }
 0x173   :  { %5288 = vmatprep.subr.bf16.mxu0 %v7727_v29  ;;  %5320 = vmatprep.subr.bf16.mxu1 %v7730_v33 }
 0x174   :  { %v8060_v26 = vrot.slane %v552_v17, %v556_v13  ;;  %v8064_v58 = vrot.slane %v552_v17, %v560_v21  ;;  %v8071_v16 = vrot.slane %v552_v17, %v568_v0  ;;  %v8077_v23 = vrot.slane %v552_v17, %v564_v19  ;;  %v1319_v17 = vld [vmem:[#allocation13 + $0x18] sm:$0xff] }
 0x176   :  { %5290 = vmatpush1.bf16.msra.mxu0 %v7737_v36  ;;  %5322 = vmatpush1.bf16.msra.mxu1 %v7743_v40 }
 0x177   :  { %5292 = vmatprep.subr.bf16.mxu0 %v7757_v46  ;;  %5324 = vmatprep.subr.bf16.mxu1 %v7766_v49 }
 0x17a   :  { %5294 = vmatpush1.bf16.msra.mxu0 %v7771_v53  ;;  %5326 = vmatpush1.bf16.msra.mxu1 %v7787_v54 }
 0x17b   :  { %5296 = vmatprep.subr.bf16.mxu0 %v7789_v55  ;;  %5328 = vmatprep.subr.bf16.mxu1 %v7799_v63 }
 0x17e   :  { %5298 = vmatpush1.bf16.msra.mxu0 %v7813_v5  ;;  %5330 = vmatpush1.bf16.msra.mxu1 %v7823_v11 }
 0x17f   :  { %5300 = vmatprep.subr.bf16.mxu0 %v7827_v12  ;;  %5332 = vmatprep.subr.bf16.mxu1 %v7838_v18 }
 0x182   :  { %5302 = vmatpush1.bf16.msra.mxu0 %v7857_v30  ;;  %5334 = vmatpush1.bf16.msra.mxu1 %v7859_v31 }
 0x183   :  { %5304 = vmatprep.subr.bf16.mxu0 %v7868_v38  ;;  %5336 = vmatprep.subr.bf16.mxu1 %v7876_v42 }
 0x186   :  { %5306 = vmatpush1.bf16.msra.mxu0 %v7892_v47  ;;  %5338 = vmatpush1.bf16.msra.mxu1 %v7902_v57 }
 0x187   :  { %5308 = vmatprep.subr.bf16.mxu0 %v7910_v62  ;;  %5340 = vmatprep.subr.bf16.mxu1 %v7918_v4 }
 0x18a   :  { %5310 = vmatpush1.bf16.msra.mxu0 %v7928_v14  ;;  %5342 = vmatpush1.bf16.msra.mxu1 %v7940_v20 }
 0x240   :  { %v968_v59 = vpop.f32.mrb[0].mxu0  ;;  %v1039_v61 = vpop.f32.mrb[0].mxu1 }
 0x241   :  { %v6342_v1 = vadd.f32 %v968_v59, %v8060_v26  ;;  %v970_v2 = vpop.f32.mrb[1].mxu0  ;;  %v1041_v6 = vpop.f32.mrb[1].mxu1  ;;  %v6358_v25 = vadd.f32 %v1039_v61, %v8077_v23  ;;  %v8089_v59 = vpack.c.bf16 %v1321_v3, %v1317_v52  ;;  %v1323_v61 = vld [vmem:[#allocation13 + $0x38] sm:$0xff] }
 0x242   :  { %v6343_v8 = vadd.f32 %v970_v2, %v8064_v58  ;;  %v6359_v22 = vadd.f32 %v1041_v6, %v8071_v16  ;;  %v1320_v2 = vld [vmem:[#allocation13 + $0x20] sm:$0xff]  ;;  %v8091_v6 = vpack.c.bf16 %v1323_v61, %v1319_v17  ;;  %v1576_v17 = vld [vmem:[#allocation13 + $0xa8] sm:$0xff]  ;;  %v1574_v61 = vld [vmem:[#allocation13 + $0x98] sm:$0xff] }
 0x243   :  { %v5007_v10 = vmul.f32 -1.442695, %v6342_v1  ;;  %v1316_v1 = vld [vmem:[#allocation13] sm:$0xff]  ;;  %5344 = vmatprep.subr.bf16.mxu0 %v8089_v59 }
 0x244   :  { %v5008_v15 = vmul.f32 -1.442695, %v6343_v8  ;;  %v5009_v24 = vmul.f32 -1.442695, %v6359_v22  ;;  %v8093_v8 = vpack.c.bf16 %v1320_v2, %v1316_v1  ;;  %5376 = vmatprep.subr.bf16.mxu1 %v8091_v6  ;;  %v1578_v2 = vld [vmem:[#allocation13 + $0xb8] sm:$0xff] }
 0x245   :  { %6492 = vpow2.f32 %v5007_v10  ;;  %v1318_v10 = vld [vmem:[#allocation13 + $0x10] sm:$0xff] }
 0x246   :  { %6494 = vpow2.f32 %v5008_v15  ;;  %v1322_v15 = vld [vmem:[#allocation13 + $0x30] sm:$0xff] }
 0x247   :  { %6496 = vpow2.f32 %v5009_v24  ;;  %v8096_v22 = vpack.c.bf16 %v1322_v15, %v1318_v10  ;;  %v1325_v24 = vld [vmem:[#allocation13 + $0x48] sm:$0xff]  ;;  %v1571_v10 = vld [vmem:[#allocation13 + $0x80] sm:$0xff] }
 0x248   :  { %6498 = vtanh.f32 %v6358_v25  ;;  %v1329_v25 = vld [vmem:[#allocation13 + $0x68] sm:$0xff]  ;;  %v1575_v15 = vld [vmem:[#allocation13 + $0xa0] sm:$0xff] }
 0x24f   :  { %v6493_v27 = vpop.eup %6492 }
 0x250   :  { %v6495_v28 = vpop.eup %6494  ;;  %v1051_v32 = vadd.f32 1.0, %v6493_v27  ;;  %v1327_v27 = vld [vmem:[#allocation13 + $0x58] sm:$0xff] }
 0x251   :  { %v1057_v56 = vadd.f32 1.0, %v6495_v28  ;;  %v6497_v60 = vpop.eup %6496  ;;  %v8101_v28 = vpack.c.bf16 %v1329_v25, %v1325_v24  ;;  %v8161_v24 = vpack.c.bf16 %v1578_v2, %v1574_v61  ;;  %v8163_v25 = vpack.c.bf16 %v1575_v15, %v1571_v10  ;;  %v1595_v61 = vld [vmem:[#allocation13 + $0x140] sm:$0xff] }
 0x252   :  { %6500 = vrcp.f32 %v1051_v32  ;;  %v6499_v34 = vpop.eup %6498  ;;  %v1064_v43 = vadd.f32 1.0, %v6497_v60  ;;  %v1331_v32 = vld [vmem:[#allocation13 + $0x78] sm:$0xff]  ;;  %v1328_v60 = vld [vmem:[#allocation13 + $0x60] sm:$0xff] }
 0x253   :  { %6502 = vrcp.f32 %v1057_v56  ;;  %v1324_v56 = vld [vmem:[#allocation13 + $0x40] sm:$0xff] }
 0x254   :  { %6504 = vrcp.f32 %v1064_v43  ;;  %v1599_v2 = vld [vmem:[#allocation13 + $0x160] sm:$0xff] }
 0x255   :  { %v8199_v15 = vpack.c.bf16 %v1599_v2, %v1595_v61 }
 0x25c   :  { %v6501_v37 = vpop.eup %6500 }
 0x25d   :  { %v6503_v39 = vpop.eup %6502  ;;  %v1068_v41 = vmul.f32 %v6501_v37, %v6499_v34  ;;  %v8103_v34 = vpack.c.bf16 %v1331_v32, %v1327_v27  ;;  %v1326_v37 = vld [vmem:[#allocation13 + $0x50] sm:$0xff] }
 0x25e   :  { %v1067_v44 = vmul.f32 %v6503_v39, %v833_v35  ;;  %v6505_v48 = vpop.eup %6504  ;;  %v8105_v35 = vpack.c.bf16 %v1328_v60, %v1324_v56  ;;  %v1330_v39 = vld [vmem:[#allocation13 + $0x70] sm:$0xff]  ;;  %v1580_v60 = vld [vmem:[#allocation13 + $0xc8] sm:$0xff] }
 0x25f   :  { %v1573_v27 = vld [vmem:[#allocation13 + $0x90] sm:$0xff] }
 0x260   :  { %v8080_v45 = vadd.f32 %v1068_v41, %v1067_v44  ;;  %v8108_v41 = vpack.c.bf16 %v1330_v39, %v1326_v37  ;;  %v1577_v32 = vld [vmem:[#allocation13 + $0xb0] sm:$0xff]  ;;  %v1584_v37 = vld [vmem:[#allocation13 + $0xe8] sm:$0xff]  ;;  %v1582_v39 = vld [vmem:[#allocation13 + $0xd8] sm:$0xff] }
 0x261   :  { %v8166_v56 = vpack.c.bf16 %v1577_v32, %v1573_v27  ;;  %v1597_v27 = vld [vmem:[#allocation13 + $0x150] sm:$0xff] }
 0x262   :  { %6506 = vtanh.f32 %v8080_v45  ;;  %v1601_v32 = vld [vmem:[#allocation13 + $0x170] sm:$0xff] }
 0x26c   :  { %v6507_v50 = vpop.eup %6506 }
 0x26d   :  { %v8083_v51 = vmul.f32 %v6507_v50, %v6505_v48 }
 0x26f   :  { %1206 = vmatmul.mubr.f32.vlgmr.msra.gmra.mrb[2].mxu0 %v8083_v51  ;;  %1277 = vmatmul.mubr.f32.vlgmr.msra.gmra.mrb[2].mxu1 %v8083_v51 }
 0x270   :  { %1444 = vmatprep.mubr.f32.mxu0 %v7107_v7  ;;  %1515 = vmatprep.mubr.f32.mxu1 %v7107_v7 }
 0x271   :  { %5346 = vmatpush1.bf16.msra.mxu0 %v8093_v8  ;;  %5378 = vmatpush1.bf16.msra.mxu1 %v8096_v22 }
 0x272   :  { %5348 = vmatprep.subr.bf16.mxu0 %v8101_v28  ;;  %5380 = vmatprep.subr.bf16.mxu1 %v8103_v34 }
 0x275   :  { %5350 = vmatpush1.bf16.msra.mxu0 %v8105_v35  ;;  %5382 = vmatpush1.bf16.msra.mxu1 %v8108_v41 }
 0x276   :  { %5352 = vmatprep.subr.bf16.mxu0 %v7727_v29  ;;  %5384 = vmatprep.subr.bf16.mxu1 %v7730_v33 }
 0x279   :  { %5354 = vmatpush1.bf16.msra.mxu0 %v7737_v36  ;;  %5386 = vmatpush1.bf16.msra.mxu1 %v7743_v40 }
 0x27a   :  { %5356 = vmatprep.subr.bf16.mxu0 %v7757_v46  ;;  %5388 = vmatprep.subr.bf16.mxu1 %v7766_v49 }
 0x27d   :  { %5358 = vmatpush1.bf16.msra.mxu0 %v7771_v53  ;;  %5390 = vmatpush1.bf16.msra.mxu1 %v7787_v54 }
 0x27e   :  { %5360 = vmatprep.subr.bf16.mxu0 %v7789_v55  ;;  %5392 = vmatprep.subr.bf16.mxu1 %v7799_v63 }
 0x281   :  { %5362 = vmatpush1.bf16.msra.mxu0 %v7813_v5  ;;  %5394 = vmatpush1.bf16.msra.mxu1 %v7823_v11 }
 0x282   :  { %5364 = vmatprep.subr.bf16.mxu0 %v7827_v12  ;;  %5396 = vmatprep.subr.bf16.mxu1 %v7838_v18 }
 0x285   :  { %5366 = vmatpush1.bf16.msra.mxu0 %v7857_v30  ;;  %5398 = vmatpush1.bf16.msra.mxu1 %v7859_v31 }
 0x286   :  { %5368 = vmatprep.subr.bf16.mxu0 %v7868_v38  ;;  %5400 = vmatprep.subr.bf16.mxu1 %v7876_v42 }
 0x289   :  { %5370 = vmatpush1.bf16.msra.mxu0 %v7892_v47  ;;  %5402 = vmatpush1.bf16.msra.mxu1 %v7902_v57 }
 0x28a   :  { %5372 = vmatprep.subr.bf16.mxu0 %v7910_v62  ;;  %5404 = vmatprep.subr.bf16.mxu1 %v7918_v4 }
 0x28d   :  { %5374 = vmatpush1.bf16.msra.mxu0 %v7928_v14  ;;  %5406 = vmatpush1.bf16.msra.mxu1 %v7940_v20 }
 0x28e   :  { %5408 = vmatprep.subr.bf16.mxu0 %v8089_v59  ;;  %5440 = vmatprep.subr.bf16.mxu1 %v8091_v6 }
 0x342   :  { %v1207_v29 = vpop.f32.mrb[2].mxu0  ;;  %v1278_v33 = vpop.f32.mrb[2].mxu1 }
 0x343   :  { %v6344_v36 = vadd.f32 %v1207_v29, %v8060_v26  ;;  %v1209_v40 = vpop.f32.mrb[3].mxu0  ;;  %v1280_v46 = vpop.f32.mrb[3].mxu1  ;;  %v6360_v5 = vadd.f32 %v1278_v33, %v8077_v23  ;;  %v8171_v29 = vpack.c.bf16 %v1584_v37, %v1580_v60  ;;  %v1586_v33 = vld [vmem:[#allocation13 + $0xf8] sm:$0xff]  ;;  %v1604_v60 = vld [vmem:[#allocation13 + $0x188] sm:$0xff]  ;;  %v8202_v37 = vpack.c.bf16 %v1601_v32, %v1597_v27 }
 0x344   :  { %v6345_v49 = vadd.f32 %v1209_v40, %v8064_v58  ;;  %v6361_v55 = vadd.f32 %v1280_v46, %v8071_v16  ;;  %v1583_v40 = vld [vmem:[#allocation13 + $0xe0] sm:$0xff]  ;;  %v8173_v46 = vpack.c.bf16 %v1586_v33, %v1582_v39  ;;  %v1608_v39 = vld [vmem:[#allocation13 + $0x1a8] sm:$0xff]  ;;  %v1606_v33 = vld [vmem:[#allocation13 + $0x198] sm:$0xff] }
 0x345   :  { %v5010_v53 = vmul.f32 -1.442695, %v6344_v36  ;;  %v1579_v36 = vld [vmem:[#allocation13 + $0xc0] sm:$0xff] }
 0x346   :  { %v5011_v54 = vmul.f32 -1.442695, %v6345_v49  ;;  %v5012_v63 = vmul.f32 -1.442695, %v6361_v55  ;;  %v8175_v49 = vpack.c.bf16 %v1583_v40, %v1579_v36  ;;  %v1610_v36 = vld [vmem:[#allocation13 + $0x1b8] sm:$0xff]  ;;  %v8205_v40 = vpack.c.bf16 %v1608_v39, %v1604_v60 }
 0x347   :  { %6508 = vpow2.f32 %v5010_v53  ;;  %v1581_v53 = vld [vmem:[#allocation13 + $0xd0] sm:$0xff] }
 0x348   :  { %6510 = vpow2.f32 %v5011_v54  ;;  %v1585_v54 = vld [vmem:[#allocation13 + $0xf0] sm:$0xff] }
 0x349   :  { %6512 = vpow2.f32 %v5012_v63  ;;  %v8178_v55 = vpack.c.bf16 %v1585_v54, %v1581_v53  ;;  %v1588_v63 = vld [vmem:[#allocation13 + $0x108] sm:$0xff]  ;;  %v8207_v53 = vpack.c.bf16 %v1610_v36, %v1606_v33  ;;  %v1603_v54 = vld [vmem:[#allocation13 + $0x180] sm:$0xff] }
 0x34a   :  { %6514 = vtanh.f32 %v6360_v5  ;;  %v1592_v5 = vld [vmem:[#allocation13 + $0x128] sm:$0xff] }
 0x351   :  { %v6509_v11 = vpop.eup %6508 }
 0x352   :  { %v6511_v12 = vpop.eup %6510  ;;  %v1290_v18 = vadd.f32 1.0, %v6509_v11  ;;  %v1590_v11 = vld [vmem:[#allocation13 + $0x118] sm:$0xff] }
 0x353   :  { %v1296_v30 = vadd.f32 1.0, %v6511_v12  ;;  %v6513_v31 = vpop.eup %6512  ;;  %v8183_v12 = vpack.c.bf16 %v1592_v5, %v1588_v63  ;;  %v1607_v63 = vld [vmem:[#allocation13 + $0x1a0] sm:$0xff]  ;;  %v1605_v5 = vld [vmem:[#allocation13 + $0x190] sm:$0xff] }
 0x354   :  { %6516 = vrcp.f32 %v1290_v18  ;;  %v6515_v38 = vpop.eup %6514  ;;  %v1303_v43 = vadd.f32 1.0, %v6513_v31  ;;  %v1594_v18 = vld [vmem:[#allocation13 + $0x138] sm:$0xff]  ;;  %v1591_v31 = vld [vmem:[#allocation13 + $0x120] sm:$0xff] }
 0x355   :  { %6518 = vrcp.f32 %v1296_v30  ;;  %v1587_v30 = vld [vmem:[#allocation13 + $0x100] sm:$0xff] }
 0x356   :  { %6520 = vrcp.f32 %v1303_v43 }
 0x35e   :  { %v6517_v42 = vpop.eup %6516 }
 0x35f   :  { %v6519_v47 = vpop.eup %6518  ;;  %v1307_v57 = vmul.f32 %v6517_v42, %v6515_v38  ;;  %v8185_v38 = vpack.c.bf16 %v1594_v18, %v1590_v11  ;;  %v8187_v42 = vpack.c.bf16 %v1591_v31, %v1587_v30  ;;  %v8210_v11 = vpack.c.bf16 %v1607_v63, %v1603_v54  ;;  %v1609_v18 = vld [vmem:[#allocation13 + $0x1b0] sm:$0xff] }
 0x360   :  { %v1306_v44 = vmul.f32 %v6519_v47, %v8080_v45  ;;  %v6521_v50 = vpop.eup %6520  ;;  %v1572_v45 = vld [vmem:[#allocation13 + $0x88] sm:$0xff]  ;;  %v1589_v47 = vld [vmem:[#allocation13 + $0x110] sm:$0xff]  ;;  %v8214_v30 = vpack.c.bf16 %v1609_v18, %v1605_v5 }
 0x361   :  { %v8159_v1 = vpack.c.bf16 %v1576_v17, %v1572_v45  ;;  %v1602_v17 = vld [vmem:[#allocation13 + $0x178] sm:$0xff] }
 0x362   :  { %v8144_v48 = vadd.f32 %v1307_v57, %v1306_v44  ;;  %v1593_v57 = vld [vmem:[#allocation13 + $0x130] sm:$0xff]  ;;  %v1596_v44 = vld [vmem:[#allocation13 + $0x148] sm:$0xff] }
 0x363   :  { %v8190_v43 = vpack.c.bf16 %v1593_v57, %v1589_v47 }
 0x364   :  { %6522 = vtanh.f32 %v8144_v48 }
 0x36e   :  { %v6523_v52 = vpop.eup %6522 }
 0x36f   :  { %v8147_v3 = vmul.f32 %v6523_v52, %v6521_v50  ;;  %v1600_v50 = vld [vmem:[#allocation13 + $0x168] sm:$0xff]  ;;  %v1598_v52 = vld [vmem:[#allocation13 + $0x158] sm:$0xff] }
 0x370   :  { %v8194_v45 = vpack.c.bf16 %v1600_v50, %v1596_v44  ;;  %v8197_v10 = vpack.c.bf16 %v1602_v17, %v1598_v52 }
 0x371   :  { %1445 = vmatmul.mubr.f32.vlgmr.msra.gmra.mrb[4].mxu0 %v8147_v3  ;;  %1516 = vmatmul.mubr.f32.vlgmr.msra.gmra.mrb[4].mxu1 %v8147_v3 }
 0x372   :  { %5410 = vmatpush1.bf16.msra.mxu0 %v8093_v8  ;;  %5442 = vmatpush1.bf16.msra.mxu1 %v8096_v22 }
 0x373   :  { %5412 = vmatprep.subr.bf16.mxu0 %v8101_v28  ;;  %5444 = vmatprep.subr.bf16.mxu1 %v8103_v34 }
 0x374   :  { %1683 = vmatprep.mubr.f32.mxu0 %v7107_v7  ;;  %1754 = vmatprep.mubr.f32.mxu1 %v7107_v7 }
 0x376   :  { %5414 = vmatpush1.bf16.msra.mxu0 %v8105_v35  ;;  %5446 = vmatpush1.bf16.msra.mxu1 %v8108_v41 }
 0x377   :  { %5416 = vmatprep.subr.bf16.mxu0 %v8159_v1  ;;  %5448 = vmatprep.subr.bf16.mxu1 %v8161_v24 }
 0x37a   :  { %5418 = vmatpush1.bf16.msra.mxu0 %v8163_v25  ;;  %5450 = vmatpush1.bf16.msra.mxu1 %v8166_v56 }
 0x37b   :  { %5420 = vmatprep.subr.bf16.mxu0 %v8171_v29  ;;  %5452 = vmatprep.subr.bf16.mxu1 %v8173_v46 }
 0x37e   :  { %5422 = vmatpush1.bf16.msra.mxu0 %v8175_v49  ;;  %5454 = vmatpush1.bf16.msra.mxu1 %v8178_v55 }
 0x37f   :  { %5424 = vmatprep.subr.bf16.mxu0 %v8183_v12  ;;  %5456 = vmatprep.subr.bf16.mxu1 %v8185_v38 }
 0x382   :  { %5426 = vmatpush1.bf16.msra.mxu0 %v8187_v42  ;;  %5458 = vmatpush1.bf16.msra.mxu1 %v8190_v43 }
 0x383   :  { %5428 = vmatprep.subr.bf16.mxu0 %v8194_v45  ;;  %5460 = vmatprep.subr.bf16.mxu1 %v8197_v10 }
 0x386   :  { %5430 = vmatpush1.bf16.msra.mxu0 %v8199_v15  ;;  %5462 = vmatpush1.bf16.msra.mxu1 %v8202_v37 }
 0x387   :  { %5432 = vmatprep.subr.bf16.mxu0 %v8205_v40  ;;  %5464 = vmatprep.subr.bf16.mxu1 %v8207_v53 }
 0x38a   :  { %5434 = vmatpush1.bf16.msra.mxu0 %v8210_v11  ;;  %5466 = vmatpush1.bf16.msra.mxu1 %v8214_v30 }
 0x38b   :  { %5436 = vmatprep.subr.bf16.mxu0 %v7910_v62  ;;  %5468 = vmatprep.subr.bf16.mxu1 %v7918_v4 }
 0x38e   :  { %5438 = vmatpush1.bf16.msra.mxu0 %v7928_v14  ;;  %5470 = vmatpush1.bf16.msra.mxu1 %v7940_v20 }
 0x38f   :  { %5472 = vmatprep.subr.bf16.mxu0 %v8089_v59  ;;  %5504 = vmatprep.subr.bf16.mxu1 %v8091_v6 }
 0x444   :  { %v1446_v31 = vpop.f32.mrb[4].mxu0  ;;  %v1517_v47 = vpop.f32.mrb[4].mxu1 }
 0x445   :  { %v6346_v57 = vadd.f32 %v1446_v31, %v8060_v26  ;;  %v1448_v44 = vpop.f32.mrb[5].mxu0  ;;  %v1519_v50 = vpop.f32.mrb[5].mxu1  ;;  %v6362_v20 = vadd.f32 %v1517_v47, %v8077_v23 }
 0x446   :  { %v6347_v52 = vadd.f32 %v1448_v44, %v8064_v58  ;;  %v6363_v4 = vadd.f32 %v1519_v50, %v8071_v16  ;;  %v1855_v44 = vld [vmem:[#allocation13 + $0x1e8] sm:$0xff]  ;;  %v1853_v50 = vld [vmem:[#allocation13 + $0x1d8] sm:$0xff] }
 0x447   :  { %v5013_v17 = vmul.f32 -1.442695, %v6346_v57 }
 0x448   :  { %v5014_v62 = vmul.f32 -1.442695, %v6347_v52  ;;  %v5015_v14 = vmul.f32 -1.442695, %v6363_v4  ;;  %v1854_v4 = vld [vmem:[#allocation13 + $0x1e0] sm:$0xff] }
 0x449   :  { %6524 = vpow2.f32 %v5013_v17  ;;  %v1857_v17 = vld [vmem:[#allocation13 + $0x1f8] sm:$0xff] }
 0x44a   :  { %6526 = vpow2.f32 %v5014_v62  ;;  %v1850_v62 = vld [vmem:[#allocation13 + $0x1c0] sm:$0xff] }
 0x44b   :  { %6528 = vpow2.f32 %v5015_v14  ;;  %v8267_v14 = vpack.c.bf16 %v1857_v17, %v1853_v50 }
 0x44c   :  { %6530 = vtanh.f32 %v6362_v20  ;;  %v8269_v20 = vpack.c.bf16 %v1854_v4, %v1850_v62 }
 0x453   :  { %v6525_v61 = vpop.eup %6524 }
 0x454   :  { %v6527_v2 = vpop.eup %6526  ;;  %v1529_v27 = vadd.f32 1.0, %v6525_v61  ;;  %v1852_v61 = vld [vmem:[#allocation13 + $0x1d0] sm:$0xff] }
 0x455   :  { %v1535_v32 = vadd.f32 1.0, %v6527_v2  ;;  %v6529_v60 = vpop.eup %6528  ;;  %v1856_v2 = vld [vmem:[#allocation13 + $0x1f0] sm:$0xff] }
 0x456   :  { %6532 = vrcp.f32 %v1529_v27  ;;  %v6531_v39 = vpop.eup %6530  ;;  %v1542_v63 = vadd.f32 1.0, %v6529_v60  ;;  %v8272_v27 = vpack.c.bf16 %v1856_v2, %v1852_v61 }
 0x457   :  { %6534 = vrcp.f32 %v1535_v32 }
 0x458   :  { %6536 = vrcp.f32 %v1542_v63 }
 0x460   :  { %v6533_v33 = vpop.eup %6532 }
 0x461   :  { %v6535_v36 = vpop.eup %6534  ;;  %v1546_v54 = vmul.f32 %v6533_v33, %v6531_v39 }
 0x462   :  { %v1545_v5 = vmul.f32 %v6535_v36, %v8144_v48  ;;  %v6537_v31 = vpop.eup %6536  ;;  %v1851_v48 = vld [vmem:[#allocation13 + $0x1c8] sm:$0xff] }
 0x463   :  { %v8265_v52 = vpack.c.bf16 %v1855_v44, %v1851_v48 }
 0x464   :  { %v8230_v18 = vadd.f32 %v1546_v54, %v1545_v5 }
 0x466   :  { %6538 = vtanh.f32 %v8230_v18 }
 0x470   :  { %v6539_v47 = vpop.eup %6538 }
 0x471   :  { %v8233_v57 = vmul.f32 %v6539_v47, %v6537_v31 }
 0x473   :  { %1684 = vmatmul.mubr.f32.vlgmr.msra.gmra.mrb[6].mxu0 %v8233_v57  ;;  %1755 = vmatmul.mubr.f32.vlgmr.msra.gmra.mrb[6].mxu1 %v8233_v57 }
 0x474   :  { %5474 = vmatpush1.bf16.msra.mxu0 %v8093_v8  ;;  %5506 = vmatpush1.bf16.msra.mxu1 %v8096_v22 }
 0x475   :  { %5476 = vmatprep.subr.bf16.mxu0 %v8101_v28  ;;  %5508 = vmatprep.subr.bf16.mxu1 %v8103_v34 }
 0x476   :  { %1922 = vmatprep.mubr.f32.mxu0 %v7107_v7  ;;  %1993 = vmatprep.mubr.f32.mxu1 %v7107_v7 }
 0x478   :  { %5478 = vmatpush1.bf16.msra.mxu0 %v8105_v35  ;;  %5510 = vmatpush1.bf16.msra.mxu1 %v8108_v41 }
 0x479   :  { %5480 = vmatprep.subr.bf16.mxu0 %v8159_v1  ;;  %5512 = vmatprep.subr.bf16.mxu1 %v8161_v24 }
 0x47c   :  { %5482 = vmatpush1.bf16.msra.mxu0 %v8163_v25  ;;  %5514 = vmatpush1.bf16.msra.mxu1 %v8166_v56 }
 0x47d   :  { %5484 = vmatprep.subr.bf16.mxu0 %v8171_v29  ;;  %5516 = vmatprep.subr.bf16.mxu1 %v8173_v46 }
 0x480   :  { %5486 = vmatpush1.bf16.msra.mxu0 %v8175_v49  ;;  %5518 = vmatpush1.bf16.msra.mxu1 %v8178_v55 }
 0x481   :  { %5488 = vmatprep.subr.bf16.mxu0 %v8183_v12  ;;  %5520 = vmatprep.subr.bf16.mxu1 %v8185_v38 }
 0x484   :  { %5490 = vmatpush1.bf16.msra.mxu0 %v8187_v42  ;;  %5522 = vmatpush1.bf16.msra.mxu1 %v8190_v43 }
 0x485   :  { %5492 = vmatprep.subr.bf16.mxu0 %v8194_v45  ;;  %5524 = vmatprep.subr.bf16.mxu1 %v8197_v10 }
 0x488   :  { %5494 = vmatpush1.bf16.msra.mxu0 %v8199_v15  ;;  %5526 = vmatpush1.bf16.msra.mxu1 %v8202_v37 }
 0x489   :  { %5496 = vmatprep.subr.bf16.mxu0 %v8205_v40  ;;  %5528 = vmatprep.subr.bf16.mxu1 %v8207_v53 }
 0x48c   :  { %5498 = vmatpush1.bf16.msra.mxu0 %v8210_v11  ;;  %5530 = vmatpush1.bf16.msra.mxu1 %v8214_v30 }
 0x48d   :  { %5500 = vmatprep.subr.bf16.mxu0 %v8265_v52  ;;  %5532 = vmatprep.subr.bf16.mxu1 %v8267_v14 }
 0x490   :  { %5502 = vmatpush1.bf16.msra.mxu0 %v8269_v20  ;;  %5534 = vmatpush1.bf16.msra.mxu1 %v8272_v27 }
 0x491   :  { %5536 = vmatprep.subr.bf16.mxu0 %v8089_v59  ;;  %5568 = vmatprep.subr.bf16.mxu1 %v8091_v6 }
 0x546   :  { %v1685_v32 = vpop.f32.mrb[6].mxu0  ;;  %v1756_v60 = vpop.f32.mrb[6].mxu1 }
 0x547   :  { %v6348_v39 = vadd.f32 %v1685_v32, %v8060_v26  ;;  %v1687_v33 = vpop.f32.mrb[7].mxu0  ;;  %v1758_v36 = vpop.f32.mrb[7].mxu1  ;;  %v6364_v48 = vadd.f32 %v1756_v60, %v8077_v23 }
 0x548   :  { %v6349_v54 = vadd.f32 %v1687_v33, %v8064_v58  ;;  %v6365_v31 = vadd.f32 %v1758_v36, %v8071_v16 }
 0x549   :  { %v5016_v63 = vmul.f32 -1.442695, %v6348_v39 }
 0x54a   :  { %v5017_v5 = vmul.f32 -1.442695, %v6349_v54  ;;  %v5018_v47 = vmul.f32 -1.442695, %v6365_v31 }
 0x54b   :  { %6540 = vpow2.f32 %v5016_v63 }
 0x54c   :  { %6542 = vpow2.f32 %v5017_v5 }
 0x54d   :  { %6544 = vpow2.f32 %v5018_v47 }
 0x54e   :  { %6546 = vtanh.f32 %v6364_v48 }
 0x555   :  { %v6541_v59 = vpop.eup %6540 }
 0x556   :  { %v6543_v44 = vpop.eup %6542  ;;  %v1768_v6 = vadd.f32 1.0, %v6541_v59 }
 0x557   :  { %v1774_v50 = vadd.f32 1.0, %v6543_v44  ;;  %v6545_v17 = vpop.eup %6544 }
 0x558   :  { %6548 = vrcp.f32 %v1768_v6  ;;  %v6547_v62 = vpop.eup %6546  ;;  %v1781_v32 = vadd.f32 1.0, %v6545_v17 }
 0x559   :  { %6550 = vrcp.f32 %v1774_v50 }
 0x55a   :  { %6552 = vrcp.f32 %v1781_v32 }
 0x562   :  { %v6549_v4 = vpop.eup %6548 }
 0x563   :  { %v6551_v61 = vpop.eup %6550  ;;  %v1785_v2 = vmul.f32 %v6549_v4, %v6547_v62 }
 0x564   :  { %v1784_v39 = vmul.f32 %v6551_v61, %v8230_v18  ;;  %v6553_v60 = vpop.eup %6552 }
 0x566   :  { %v8284_v33 = vadd.f32 %v1785_v2, %v1784_v39 }
 0x568   :  { %6554 = vtanh.f32 %v8284_v33 }
 0x572   :  { %v6555_v36 = vpop.eup %6554 }
 0x573   :  { %v8287_v54 = vmul.f32 %v6555_v36, %v6553_v60 }
 0x575   :  { %1923 = vmatmul.mubr.f32.vlgmr.msra.gmra.mrb[8].mxu0 %v8287_v54  ;;  %1994 = vmatmul.mubr.f32.vlgmr.msra.gmra.mrb[8].mxu1 %v8287_v54 }
 0x576   :  { %5538 = vmatpush1.bf16.msra.mxu0 %v8093_v8  ;;  %5570 = vmatpush1.bf16.msra.mxu1 %v8096_v22 }
 0x577   :  { %5540 = vmatprep.subr.bf16.mxu0 %v8101_v28  ;;  %5572 = vmatprep.subr.bf16.mxu1 %v8103_v34 }
 0x578   :  { %2161 = vmatprep.mubr.f32.mxu0 %v7107_v7  ;;  %2232 = vmatprep.mubr.f32.mxu1 %v7107_v7 }
 0x57a   :  { %5542 = vmatpush1.bf16.msra.mxu0 %v8105_v35  ;;  %5574 = vmatpush1.bf16.msra.mxu1 %v8108_v41 }
 0x57b   :  { %5544 = vmatprep.subr.bf16.mxu0 %v8159_v1  ;;  %5576 = vmatprep.subr.bf16.mxu1 %v8161_v24 }
 0x57e   :  { %5546 = vmatpush1.bf16.msra.mxu0 %v8163_v25  ;;  %5578 = vmatpush1.bf16.msra.mxu1 %v8166_v56 }
 0x57f   :  { %5548 = vmatprep.subr.bf16.mxu0 %v8171_v29  ;;  %5580 = vmatprep.subr.bf16.mxu1 %v8173_v46 }
 0x582   :  { %5550 = vmatpush1.bf16.msra.mxu0 %v8175_v49  ;;  %5582 = vmatpush1.bf16.msra.mxu1 %v8178_v55 }
 0x583   :  { %5552 = vmatprep.subr.bf16.mxu0 %v8183_v12  ;;  %5584 = vmatprep.subr.bf16.mxu1 %v8185_v38 }
 0x586   :  { %5554 = vmatpush1.bf16.msra.mxu0 %v8187_v42  ;;  %5586 = vmatpush1.bf16.msra.mxu1 %v8190_v43 }
 0x587   :  { %5556 = vmatprep.subr.bf16.mxu0 %v8194_v45  ;;  %5588 = vmatprep.subr.bf16.mxu1 %v8197_v10 }
 0x58a   :  { %5558 = vmatpush1.bf16.msra.mxu0 %v8199_v15  ;;  %5590 = vmatpush1.bf16.msra.mxu1 %v8202_v37 }
 0x58b   :  { %5560 = vmatprep.subr.bf16.mxu0 %v8205_v40  ;;  %5592 = vmatprep.subr.bf16.mxu1 %v8207_v53 }
 0x58e   :  { %5562 = vmatpush1.bf16.msra.mxu0 %v8210_v11  ;;  %5594 = vmatpush1.bf16.msra.mxu1 %v8214_v30 }
 0x58f   :  { %5564 = vmatprep.subr.bf16.mxu0 %v8265_v52  ;;  %5596 = vmatprep.subr.bf16.mxu1 %v8267_v14 }
 0x592   :  { %5566 = vmatpush1.bf16.msra.mxu0 %v8269_v20  ;;  %5598 = vmatpush1.bf16.msra.mxu1 %v8272_v27 }
 0x648   :  { %v1924_v8 = vpop.f32.mrb[8].mxu0  ;;  %v1995_v22 = vpop.f32.mrb[8].mxu1 }
 0x649   :  { %v6350_v28 = vadd.f32 %v1924_v8, %v8060_v26  ;;  %v1926_v34 = vpop.f32.mrb[9].mxu0  ;;  %v1997_v35 = vpop.f32.mrb[9].mxu1  ;;  %v6366_v47 = vadd.f32 %v1995_v22, %v8077_v23  ;;  %v2273_v22 = vld [vmem:[#allocation13 + $0x8] sm:$0xff] }
 0x64a   :  { %v6351_v41 = vadd.f32 %v1926_v34, %v8064_v58  ;;  %v6367_v5 = vadd.f32 %v1997_v35, %v8071_v16  ;;  %v2279_v35 = vld [vmem:[#allocation13 + $0x38] sm:$0xff] }
 0x64b   :  { %v5019_v18 = vmul.f32 -1.442695, %v6350_v28  ;;  %v2277_v28 = vld [vmem:[#allocation13 + $0x28] sm:$0xff] }
 0x64c   :  { %v5020_v63 = vmul.f32 -1.442695, %v6351_v41  ;;  %v5021_v31 = vmul.f32 -1.442695, %v6367_v5  ;;  %v5599_v34 = vpack.c.bf16 %v2277_v28, %v2273_v22  ;;  %v2272_v41 = vld [vmem:[#allocation13] sm:$0xff] }
 0x64d   :  { %6556 = vpow2.f32 %v5019_v18  ;;  %v2276_v18 = vld [vmem:[#allocation13 + $0x20] sm:$0xff] }
 0x64e   :  { %6558 = vpow2.f32 %v5020_v63  ;;  %v8337_v5 = vpack.c.bf16 %v2276_v18, %v2272_v41  ;;  %5600 = vmatprep.subr.bf16.mxu0 %v5599_v34  ;;  %v2532_v18 = vld [vmem:[#allocation13 + $0xa8] sm:$0xff] }
 0x64f   :  { %6560 = vpow2.f32 %v5021_v31  ;;  %v2274_v31 = vld [vmem:[#allocation13 + $0x10] sm:$0xff] }
 0x650   :  { %6562 = vtanh.f32 %v6366_v47  ;;  %v2278_v47 = vld [vmem:[#allocation13 + $0x30] sm:$0xff] }
 0x657   :  { %v6557_v48 = vpop.eup %6556 }
 0x658   :  { %v6559_v59 = vpop.eup %6558  ;;  %v2007_v44 = vadd.f32 1.0, %v6557_v48  ;;  %v8339_v48 = vpack.c.bf16 %v2278_v47, %v2274_v31  ;;  %v2534_v47 = vld [vmem:[#allocation13 + $0xb8] sm:$0xff] }
 0x659   :  { %v2013_v6 = vadd.f32 1.0, %v6559_v59  ;;  %v6561_v50 = vpop.eup %6560  ;;  %v2281_v59 = vld [vmem:[#allocation13 + $0x48] sm:$0xff] }
 0x65a   :  { %6564 = vrcp.f32 %v2007_v44  ;;  %v6563_v17 = vpop.eup %6562  ;;  %v2020_v2 = vadd.f32 1.0, %v6561_v50  ;;  %v2285_v44 = vld [vmem:[#allocation13 + $0x68] sm:$0xff] }
 0x65b   :  { %6566 = vrcp.f32 %v2013_v6  ;;  %v2283_v6 = vld [vmem:[#allocation13 + $0x58] sm:$0xff]  ;;  %v8343_v50 = vpack.c.bf16 %v2285_v44, %v2281_v59  ;;  %v2531_v59 = vld [vmem:[#allocation13 + $0xa0] sm:$0xff] }
 0x65c   :  { %6568 = vrcp.f32 %v2020_v2 }
 0x664   :  { %v6565_v62 = vpop.eup %6564 }
 0x665   :  { %v6567_v4 = vpop.eup %6566  ;;  %v2024_v61 = vmul.f32 %v6565_v62, %v6563_v17  ;;  %v2287_v17 = vld [vmem:[#allocation13 + $0x78] sm:$0xff]  ;;  %v2280_v62 = vld [vmem:[#allocation13 + $0x40] sm:$0xff] }
 0x666   :  { %v2023_v32 = vmul.f32 %v6567_v4, %v8284_v33  ;;  %v6569_v60 = vpop.eup %6568  ;;  %v2275_v33 = vld [vmem:[#allocation13 + $0x18] sm:$0xff]  ;;  %v2284_v4 = vld [vmem:[#allocation13 + $0x60] sm:$0xff] }
 0x667   :  { %v5631_v63 = vpack.c.bf16 %v2279_v35, %v2275_v33  ;;  %v8347_v2 = vpack.c.bf16 %v2284_v4, %v2280_v62  ;;  %v2536_v62 = vld [vmem:[#allocation13 + $0xc8] sm:$0xff] }
 0x668   :  { %v8328_v39 = vadd.f32 %v2024_v61, %v2023_v32  ;;  %v8345_v61 = vpack.c.bf16 %v2287_v17, %v2283_v6  ;;  %v2282_v32 = vld [vmem:[#allocation13 + $0x50] sm:$0xff]  ;;  %v2540_v4 = vld [vmem:[#allocation13 + $0xe8] sm:$0xff] }
 0x669   :  { %5632 = vmatprep.subr.bf16.mxu1 %v5631_v63  ;;  %v2529_v6 = vld [vmem:[#allocation13 + $0x90] sm:$0xff] }
 0x66a   :  { %6570 = vtanh.f32 %v8328_v39 }
 0x674   :  { %v6571_v36 = vpop.eup %6570 }
 0x675   :  { %v8331_v8 = vmul.f32 %v6571_v36, %v6569_v60  ;;  %v2286_v60 = vld [vmem:[#allocation13 + $0x70] sm:$0xff] }
 0x676   :  { %v8350_v36 = vpack.c.bf16 %v2286_v60, %v2282_v32  ;;  %v2542_v32 = vld [vmem:[#allocation13 + $0xf8] sm:$0xff]  ;;  %v2535_v60 = vld [vmem:[#allocation13 + $0xc0] sm:$0xff] }
 0x677   :  { %2162 = vmatmul.mubr.f32.vlgmr.msra.gmra.mrb[10].mxu0 %v8331_v8  ;;  %2233 = vmatmul.mubr.f32.vlgmr.msra.gmra.mrb[10].mxu1 %v8331_v8 }
 0x678   :  { %2400 = vmatprep.mubr.f32.mxu0 %v7107_v7  ;;  %2471 = vmatprep.mubr.f32.mxu1 %v7107_v7 }
 0x679   :  { %5602 = vmatpush1.bf16.msra.mxu0 %v8337_v5  ;;  %5634 = vmatpush1.bf16.msra.mxu1 %v8339_v48 }
 0x67a   :  { %5604 = vmatprep.subr.bf16.mxu0 %v8343_v50  ;;  %5636 = vmatprep.subr.bf16.mxu1 %v8345_v61 }
 0x67d   :  { %5606 = vmatpush1.bf16.msra.mxu0 %v8347_v2  ;;  %5638 = vmatpush1.bf16.msra.mxu1 %v8350_v36 }
 0x67e   :  { %5608 = vmatprep.subr.bf16.mxu0 %v8159_v1  ;;  %5640 = vmatprep.subr.bf16.mxu1 %v8161_v24 }
 0x681   :  { %5610 = vmatpush1.bf16.msra.mxu0 %v8163_v25  ;;  %5642 = vmatpush1.bf16.msra.mxu1 %v8166_v56 }
 0x682   :  { %5612 = vmatprep.subr.bf16.mxu0 %v8171_v29  ;;  %5644 = vmatprep.subr.bf16.mxu1 %v8173_v46 }
 0x685   :  { %5614 = vmatpush1.bf16.msra.mxu0 %v8175_v49  ;;  %5646 = vmatpush1.bf16.msra.mxu1 %v8178_v55 }
 0x686   :  { %5616 = vmatprep.subr.bf16.mxu0 %v8183_v12  ;;  %5648 = vmatprep.subr.bf16.mxu1 %v8185_v38 }
 0x689   :  { %5618 = vmatpush1.bf16.msra.mxu0 %v8187_v42  ;;  %5650 = vmatpush1.bf16.msra.mxu1 %v8190_v43 }
 0x68a   :  { %5620 = vmatprep.subr.bf16.mxu0 %v8194_v45  ;;  %5652 = vmatprep.subr.bf16.mxu1 %v8197_v10 }
 0x68d   :  { %5622 = vmatpush1.bf16.msra.mxu0 %v8199_v15  ;;  %5654 = vmatpush1.bf16.msra.mxu1 %v8202_v37 }
 0x68e   :  { %5624 = vmatprep.subr.bf16.mxu0 %v8205_v40  ;;  %5656 = vmatprep.subr.bf16.mxu1 %v8207_v53 }
 0x691   :  { %5626 = vmatpush1.bf16.msra.mxu0 %v8210_v11  ;;  %5658 = vmatpush1.bf16.msra.mxu1 %v8214_v30 }
 0x692   :  { %5628 = vmatprep.subr.bf16.mxu0 %v8265_v52  ;;  %5660 = vmatprep.subr.bf16.mxu1 %v8267_v14 }
 0x695   :  { %5630 = vmatpush1.bf16.msra.mxu0 %v8269_v20  ;;  %5662 = vmatpush1.bf16.msra.mxu1 %v8272_v27 }
 0x696   :  { %5664 = vmatprep.subr.bf16.mxu0 %v5599_v34  ;;  %5696 = vmatprep.subr.bf16.mxu1 %v5631_v63  ;;  %v2530_v63 = vld [vmem:[#allocation13 + $0x98] sm:$0xff] }
 0x74a   :  { %v2163_v1 = vpop.f32.mrb[10].mxu0  ;;  %v2234_v24 = vpop.f32.mrb[10].mxu1 }
 0x74b   :  { %v6352_v25 = vadd.f32 %v2163_v1, %v8060_v26  ;;  %v2165_v56 = vpop.f32.mrb[11].mxu0  ;;  %v2236_v29 = vpop.f32.mrb[11].mxu1  ;;  %v6368_v42 = vadd.f32 %v2234_v24, %v8077_v23 }
 0x74c   :  { %v6353_v46 = vadd.f32 %v2165_v56, %v8064_v58  ;;  %v6369_v12 = vadd.f32 %v2236_v29, %v8071_v16  ;;  %v2541_v56 = vld [vmem:[#allocation13 + $0xf0] sm:$0xff] }
 0x74d   :  { %v5022_v49 = vmul.f32 -1.442695, %v6352_v25  ;;  %v2537_v25 = vld [vmem:[#allocation13 + $0xd0] sm:$0xff] }
 0x74e   :  { %v5023_v55 = vmul.f32 -1.442695, %v6353_v46  ;;  %v5024_v38 = vmul.f32 -1.442695, %v6369_v12  ;;  %v5709_v29 = vpack.c.bf16 %v2541_v56, %v2537_v25  ;;  %v2544_v46 = vld [vmem:[#allocation13 + $0x108] sm:$0xff] }
 0x74f   :  { %6572 = vpow2.f32 %v5022_v49  ;;  %v2548_v49 = vld [vmem:[#allocation13 + $0x128] sm:$0xff] }
 0x750   :  { %6574 = vpow2.f32 %v5023_v55  ;;  %v2546_v55 = vld [vmem:[#allocation13 + $0x118] sm:$0xff]  ;;  %v5679_v12 = vpack.c.bf16 %v2548_v49, %v2544_v46 }
 0x751   :  { %6576 = vpow2.f32 %v5024_v38  ;;  %v2550_v38 = vld [vmem:[#allocation13 + $0x138] sm:$0xff] }
 0x752   :  { %6578 = vtanh.f32 %v6368_v42  ;;  %v2543_v42 = vld [vmem:[#allocation13 + $0x100] sm:$0xff] }
 0x759   :  { %v6573_v43 = vpop.eup %6572 }
 0x75a   :  { %v6575_v45 = vpop.eup %6574  ;;  %v2246_v10 = vadd.f32 1.0, %v6573_v43  ;;  %v2547_v43 = vld [vmem:[#allocation13 + $0x120] sm:$0xff] }
 0x75b   :  { %v2252_v15 = vadd.f32 1.0, %v6575_v45  ;;  %v6577_v37 = vpop.eup %6576  ;;  %v5711_v45 = vpack.c.bf16 %v2550_v38, %v2546_v55 }
 0x75c   :  { %6580 = vrcp.f32 %v2246_v10  ;;  %v6579_v40 = vpop.eup %6578  ;;  %v2259_v22 = vadd.f32 1.0, %v6577_v37  ;;  %v5681_v10 = vpack.c.bf16 %v2547_v43, %v2543_v42  ;;  %v2549_v37 = vld [vmem:[#allocation13 + $0x130] sm:$0xff] }
 0x75d   :  { %6582 = vrcp.f32 %v2252_v15  ;;  %v2545_v15 = vld [vmem:[#allocation13 + $0x110] sm:$0xff] }
 0x75e   :  { %6584 = vrcp.f32 %v2259_v22 }
 0x766   :  { %v6581_v53 = vpop.eup %6580 }
 0x767   :  { %v6583_v11 = vpop.eup %6582  ;;  %v2263_v30 = vmul.f32 %v6581_v53, %v6579_v40  ;;  %v5713_v40 = vpack.c.bf16 %v2549_v37, %v2545_v15  ;;  %v2552_v53 = vld [vmem:[#allocation13 + $0x148] sm:$0xff] }
 0x768   :  { %v2262_v28 = vmul.f32 %v6583_v11, %v8328_v39  ;;  %v6585_v34 = vpop.eup %6584  ;;  %v2528_v39 = vld [vmem:[#allocation13 + $0x88] sm:$0xff] }
 0x769   :  { %v5671_v31 = vpack.c.bf16 %v2532_v18, %v2528_v39  ;;  %v2556_v11 = vld [vmem:[#allocation13 + $0x168] sm:$0xff] }
 0x76a   :  { %v8384_v33 = vadd.f32 %v2263_v30, %v2262_v28  ;;  %v2554_v30 = vld [vmem:[#allocation13 + $0x158] sm:$0xff]  ;;  %v5683_v22 = vpack.c.bf16 %v2556_v11, %v2552_v53 }
 0x76b   :  { %v2558_v28 = vld [vmem:[#allocation13 + $0x178] sm:$0xff] }
 0x76c   :  { %6586 = vtanh.f32 %v8384_v33  ;;  %v5715_v39 = vpack.c.bf16 %v2558_v28, %v2554_v30 }
 0x776   :  { %v6587_v35 = vpop.eup %6586 }
 0x777   :  { %v8387_v41 = vmul.f32 %v6587_v35, %v6585_v34  ;;  %v2551_v34 = vld [vmem:[#allocation13 + $0x140] sm:$0xff] }
 0x778   :  { %v2555_v35 = vld [vmem:[#allocation13 + $0x160] sm:$0xff] }
 0x779   :  { %2401 = vmatmul.mubr.f32.vlgmr.msra.gmra.mrb[12].mxu0 %v8387_v41  ;;  %2472 = vmatmul.mubr.f32.vlgmr.msra.gmra.mrb[12].mxu1 %v8387_v41  ;;  %v5685_v18 = vpack.c.bf16 %v2555_v35, %v2551_v34  ;;  %v2756_v35 = vld [vmem:[#allocation16] sm:$0xff] }
 0x77a   :  { %5666 = vmatpush1.bf16.msra.mxu0 %v8337_v5  ;;  %5698 = vmatpush1.bf16.msra.mxu1 %v8339_v48  ;;  %v2527_v5 = vld [vmem:[#allocation13 + $0x80] sm:$0xff]  ;;  %v5703_v48 = vpack.c.bf16 %v2534_v47, %v2530_v63  ;;  %v2553_v63 = vld [vmem:[#allocation13 + $0x150] sm:$0xff]  ;;  %v2560_v47 = vld [vmem:[#allocation13 + $0x188] sm:$0xff] }
 0x77b   :  { %5668 = vmatprep.subr.bf16.mxu0 %v8343_v50  ;;  %5700 = vmatprep.subr.bf16.mxu1 %v8345_v61  ;;  %v5673_v44 = vpack.c.bf16 %v2531_v59, %v2527_v5  ;;  %v2533_v50 = vld [vmem:[#allocation13 + $0xb0] sm:$0xff]  ;;  %v2538_v61 = vld [vmem:[#allocation13 + $0xd8] sm:$0xff]  ;;  %v2564_v59 = vld [vmem:[#allocation13 + $0x1a8] sm:$0xff] }
 0x77c   :  { %2639 = vmatprep.mubr.f32.mxu0 %v7107_v7  ;;  %2710 = vmatprep.mubr.f32.mxu1 %v7107_v7  ;;  %v5705_v17 = vpack.c.bf16 %v2533_v50, %v2529_v6  ;;  %v5707_v1 = vpack.c.bf16 %v2542_v32, %v2538_v61  ;;  %v5687_v6 = vpack.c.bf16 %v2564_v59, %v2560_v47  ;;  %v2769_v47 = vld [vmem:[#allocation16 + $0x68] sm:$0xff]  ;;  %v2771_v59 = vld [vmem:[#allocation16 + $0x78] sm:$0xff] }
 0x77e   :  { %5670 = vmatpush1.bf16.msra.mxu0 %v8347_v2  ;;  %5702 = vmatpush1.bf16.msra.mxu1 %v8350_v36  ;;  %v5675_v2 = vpack.c.bf16 %v2540_v4, %v2536_v62  ;;  %v2539_v36 = vld [vmem:[#allocation13 + $0xe0] sm:$0xff]  ;;  %v2561_v4 = vld [vmem:[#allocation13 + $0x190] sm:$0xff] }
 0x77f   :  { %5672 = vmatprep.subr.bf16.mxu0 %v5671_v31  ;;  %5704 = vmatprep.subr.bf16.mxu1 %v5703_v48  ;;  %v5677_v24 = vpack.c.bf16 %v2539_v36, %v2535_v60  ;;  %v2557_v31 = vld [vmem:[#allocation13 + $0x170] sm:$0xff]  ;;  %v2562_v48 = vld [vmem:[#allocation13 + $0x198] sm:$0xff]  ;;  %v2563_v62 = vld [vmem:[#allocation13 + $0x1a0] sm:$0xff] }
 0x780   :  { %v5717_v5 = vpack.c.bf16 %v2557_v31, %v2553_v63  ;;  %v2757_v60 = vld [vmem:[#allocation16 + $0x8] sm:$0xff]  ;;  %v2762_v63 = vld [vmem:[#allocation16 + $0x30] sm:$0xff] }
 0x781   :  { %v2761_v36 = vld [vmem:[#allocation16 + $0x28] sm:$0xff] }
 0x782   :  { %5674 = vmatpush1.bf16.msra.mxu0 %v5673_v44  ;;  %5706 = vmatpush1.bf16.msra.mxu1 %v5705_v17  ;;  %v2566_v44 = vld [vmem:[#allocation13 + $0x1b8] sm:$0xff]  ;;  %v2559_v17 = vld [vmem:[#allocation13 + $0x180] sm:$0xff]  ;;  %v5727_v25 = vpack.c.bf16 %v2761_v36, %v2757_v60  ;;  %v2765_v31 = vld [vmem:[#allocation16 + $0x48] sm:$0xff] }
 0x783   :  { %5676 = vmatprep.subr.bf16.mxu0 %v5675_v2  ;;  %5708 = vmatprep.subr.bf16.mxu1 %v5707_v1  ;;  %v5719_v50 = vpack.c.bf16 %v2566_v44, %v2562_v48  ;;  %v5689_v61 = vpack.c.bf16 %v2563_v62, %v2559_v17  ;;  %v2565_v2 = vld [vmem:[#allocation13 + $0x1b0] sm:$0xff]  ;;  %v2759_v1 = vld [vmem:[#allocation16 + $0x18] sm:$0xff]  ;;  %v2764_v17 = vld [vmem:[#allocation16 + $0x40] sm:$0xff] }
 0x784   :  { %v5721_v32 = vpack.c.bf16 %v2565_v2, %v2561_v4  ;;  %v2768_v62 = vld [vmem:[#allocation16 + $0x60] sm:$0xff]  ;;  %v5731_v4 = vpack.c.bf16 %v2769_v47, %v2765_v31  ;;  %v2766_v2 = vld [vmem:[#allocation16 + $0x50] sm:$0xff]  ;;  %v2773_v60 = vld [vmem:[#allocation16 + $0x88] sm:$0xff] }
 0x785   :  { %v2777_v36 = vld [vmem:[#allocation16 + $0xa8] sm:$0xff] }
 0x786   :  { %5678 = vmatpush1.bf16.msra.mxu0 %v5677_v24  ;;  %5710 = vmatpush1.bf16.msra.mxu1 %v5709_v29  ;;  %v2763_v24 = vld [vmem:[#allocation16 + $0x38] sm:$0xff] }
 0x787   :  { %5680 = vmatprep.subr.bf16.mxu0 %v5679_v12  ;;  %5712 = vmatprep.subr.bf16.mxu1 %v5711_v45  ;;  %v5759_v56 = vpack.c.bf16 %v2763_v24, %v2759_v1  ;;  %v2775_v1 = vld [vmem:[#allocation16 + $0x98] sm:$0xff] }
 0x788   :  { %v2779_v24 = vld [vmem:[#allocation16 + $0xb8] sm:$0xff] }
 0x78a   :  { %5682 = vmatpush1.bf16.msra.mxu0 %v5681_v10  ;;  %5714 = vmatpush1.bf16.msra.mxu1 %v5713_v40 }
 0x78b   :  { %5684 = vmatprep.subr.bf16.mxu0 %v5683_v22  ;;  %5716 = vmatprep.subr.bf16.mxu1 %v5715_v39  ;;  %v2760_v39 = vld [vmem:[#allocation16 + $0x20] sm:$0xff] }
 0x78e   :  { %5686 = vmatpush1.bf16.msra.mxu0 %v5685_v18  ;;  %5718 = vmatpush1.bf16.msra.mxu1 %v5717_v5  ;;  %v2758_v18 = vld [vmem:[#allocation16 + $0x10] sm:$0xff]  ;;  %v2767_v5 = vld [vmem:[#allocation16 + $0x58] sm:$0xff] }
 0x78f   :  { %5688 = vmatprep.subr.bf16.mxu0 %v5687_v6  ;;  %5720 = vmatprep.subr.bf16.mxu1 %v5719_v50  ;;  %v5729_v6 = vpack.c.bf16 %v2760_v39, %v2756_v35  ;;  %v5761_v50 = vpack.c.bf16 %v2762_v63, %v2758_v18  ;;  %v2788_v18 = vld [vmem:[#allocation16 + $0x100] sm:$0xff] }
 0x790   :  { %v2792_v63 = vld [vmem:[#allocation16 + $0x120] sm:$0xff] }
 0x792   :  { %5690 = vmatpush1.bf16.msra.mxu0 %v5689_v61  ;;  %5722 = vmatpush1.bf16.msra.mxu1 %v5721_v32  ;;  %v5763_v61 = vpack.c.bf16 %v2771_v59, %v2767_v5  ;;  %v2770_v32 = vld [vmem:[#allocation16 + $0x70] sm:$0xff] }
 0x793   :  { %5692 = vmatprep.subr.bf16.mxu0 %v8265_v52  ;;  %5724 = vmatprep.subr.bf16.mxu1 %v8267_v14  ;;  %v2790_v5 = vld [vmem:[#allocation16 + $0x110] sm:$0xff] }
 0x794   :  { %v2794_v59 = vld [vmem:[#allocation16 + $0x130] sm:$0xff] }
 0x796   :  { %5694 = vmatpush1.bf16.msra.mxu0 %v8269_v20  ;;  %5726 = vmatpush1.bf16.msra.mxu1 %v8272_v27 }
 0x797   :  { %5728 = vmatprep.subr.bf16.mxu0 %v5727_v25  ;;  %5760 = vmatprep.subr.bf16.mxu1 %v5759_v56  ;;  %v5733_v25 = vpack.c.bf16 %v2768_v62, %v2764_v17  ;;  %v5765_v56 = vpack.c.bf16 %v2770_v32, %v2766_v2  ;;  %v5745_v17 = vpack.c.bf16 %v2792_v63, %v2788_v18  ;;  %v3110_v63 = vld [vmem:[#allocation18 + $0x10] sm:$0xff] }
 0x798   :  { %v5777_v62 = vpack.c.bf16 %v2794_v59, %v2790_v5  ;;  %v3121_v5 = vld [vmem:[#allocation18 + $0x68] sm:$0xff]  ;;  %v3119_v59 = vld [vmem:[#allocation18 + $0x58] sm:$0xff] }
 0x84c   :  { %v2402_v29 = vpop.f32.mrb[12].mxu0  ;;  %v2473_v46 = vpop.f32.mrb[12].mxu1 }
 0x84d   :  { %v6354_v49 = vadd.f32 %v2402_v29, %v8060_v26  ;;  %v2404_v55 = vpop.f32.mrb[13].mxu0  ;;  %v2475_v12 = vpop.f32.mrb[13].mxu1  ;;  %v6370_v20 = vadd.f32 %v2473_v46, %v8077_v23  ;;  %v2772_v29 = vld [vmem:[#allocation16 + $0x80] sm:$0xff] }
 0x84e   :  { %v6355_v38 = vadd.f32 %v2404_v55, %v8064_v58  ;;  %v6371_v14 = vadd.f32 %v2475_v12, %v8071_v16  ;;  %v2776_v46 = vld [vmem:[#allocation16 + $0xa0] sm:$0xff]  ;;  %v5767_v55 = vpack.c.bf16 %v2779_v24, %v2775_v1  ;;  %v2774_v12 = vld [vmem:[#allocation16 + $0x90] sm:$0xff]  ;;  %v2805_v1 = vld [vmem:[#allocation16 + $0x188] sm:$0xff] }
 0x84f   :  { %v5025_v42 = vmul.f32 -1.442695, %v6354_v49  ;;  %v5735_v49 = vpack.c.bf16 %v2777_v36, %v2773_v60  ;;  %v2798_v60 = vld [vmem:[#allocation16 + $0x150] sm:$0xff]  ;;  %v2809_v24 = vld [vmem:[#allocation16 + $0x1a8] sm:$0xff] }
 0x850   :  { %v5026_v52 = vmul.f32 -1.442695, %v6355_v38  ;;  %v5027_v43 = vmul.f32 -1.442695, %v6371_v14  ;;  %v2778_v38 = vld [vmem:[#allocation16 + $0xb0] sm:$0xff]  ;;  %v2783_v14 = vld [vmem:[#allocation16 + $0xd8] sm:$0xff] }
 0x851   :  { %6588 = vpow2.f32 %v5025_v42  ;;  %v2781_v42 = vld [vmem:[#allocation16 + $0xc8] sm:$0xff]  ;;  %v2802_v36 = vld [vmem:[#allocation16 + $0x170] sm:$0xff] }
 0x852   :  { %6590 = vpow2.f32 %v5026_v52  ;;  %v2785_v52 = vld [vmem:[#allocation16 + $0xe8] sm:$0xff] }
 0x853   :  { %6592 = vpow2.f32 %v5027_v43  ;;  %v2787_v43 = vld [vmem:[#allocation16 + $0xf8] sm:$0xff] }
 0x854   :  { %6594 = vtanh.f32 %v6370_v20  ;;  %v5737_v20 = vpack.c.bf16 %v2776_v46, %v2772_v29  ;;  %v5781_v46 = vpack.c.bf16 %v2802_v36, %v2798_v60  ;;  %v3129_v60 = vld [vmem:[#allocation18 + $0xa8] sm:$0xff]  ;;  %v3127_v36 = vld [vmem:[#allocation18 + $0x98] sm:$0xff] }
 0x85b   :  { %v6589_v27 = vpop.eup %6588 }
 0x85c   :  { %v6591_v45 = vpop.eup %6590  ;;  %v2485_v10 = vadd.f32 1.0, %v6589_v27  ;;  %v5769_v27 = vpack.c.bf16 %v2778_v38, %v2774_v12  ;;  %v5751_v12 = vpack.c.bf16 %v2809_v24, %v2805_v1  ;;  %v3131_v24 = vld [vmem:[#allocation18 + $0xb8] sm:$0xff] }
 0x85d   :  { %v2491_v15 = vadd.f32 1.0, %v6591_v45  ;;  %v6593_v37 = vpop.eup %6592  ;;  %v2780_v45 = vld [vmem:[#allocation16 + $0xc0] sm:$0xff] }
 0x85e   :  { %6596 = vrcp.f32 %v2485_v10  ;;  %v6595_v40 = vpop.eup %6594  ;;  %v2498_v22 = vadd.f32 1.0, %v6593_v37  ;;  %v2784_v10 = vld [vmem:[#allocation16 + $0xe0] sm:$0xff]  ;;  %v5771_v37 = vpack.c.bf16 %v2787_v43, %v2783_v14  ;;  %v2813_v14 = vld [vmem:[#allocation16 + $0x1c8] sm:$0xff] }
 0x85f   :  { %6598 = vrcp.f32 %v2491_v15  ;;  %v5739_v15 = vpack.c.bf16 %v2785_v52, %v2781_v42  ;;  %v5741_v35 = vpack.c.bf16 %v2784_v10, %v2780_v45  ;;  %v2806_v42 = vld [vmem:[#allocation16 + $0x190] sm:$0xff]  ;;  %v2817_v43 = vld [vmem:[#allocation16 + $0x1e8] sm:$0xff] }
 0x860   :  { %6600 = vrcp.f32 %v2498_v22  ;;  %v2791_v22 = vld [vmem:[#allocation16 + $0x118] sm:$0xff]  ;;  %v2810_v52 = vld [vmem:[#allocation16 + $0x1b0] sm:$0xff] }
 0x861   :  { %v5785_v10 = vpack.c.bf16 %v2810_v52, %v2806_v42  ;;  %v3137_v42 = vld [vmem:[#allocation18 + $0xe8] sm:$0xff]  ;;  %v3135_v52 = vld [vmem:[#allocation18 + $0xd8] sm:$0xff] }
 0x868   :  { %v6597_v53 = vpop.eup %6596 }
 0x869   :  { %v6599_v11 = vpop.eup %6598  ;;  %v2502_v30 = vmul.f32 %v6597_v53, %v6595_v40  ;;  %v2782_v40 = vld [vmem:[#allocation16 + $0xd0] sm:$0xff] }
 0x86a   :  { %v2501_v28 = vmul.f32 %v6599_v11, %v8384_v33  ;;  %v6601_v48 = vpop.eup %6600  ;;  %v2786_v53 = vld [vmem:[#allocation16 + $0xf0] sm:$0xff]  ;;  %v2789_v11 = vld [vmem:[#allocation16 + $0x108] sm:$0xff] }
 0x86b   :  { %v5773_v39 = vpack.c.bf16 %v2786_v53, %v2782_v40  ;;  %v2816_v53 = vld [vmem:[#allocation16 + $0x1e0] sm:$0xff] }
 0x86c   :  { %v8408_v34 = vadd.f32 %v2502_v30, %v2501_v28  ;;  %v2793_v30 = vld [vmem:[#allocation16 + $0x128] sm:$0xff]  ;;  %v2795_v28 = vld [vmem:[#allocation16 + $0x138] sm:$0xff] }
 0x86d   :  { %v5743_v31 = vpack.c.bf16 %v2793_v30, %v2789_v11  ;;  %v5775_v47 = vpack.c.bf16 %v2795_v28, %v2791_v22  ;;  %v2814_v11 = vld [vmem:[#allocation16 + $0x1d0] sm:$0xff] }
 0x86e   :  { %6602 = vtanh.f32 %v8408_v34  ;;  %v2818_v30 = vld [vmem:[#allocation16 + $0x1f0] sm:$0xff] }
 0x86f   :  { %v5789_v28 = vpack.c.bf16 %v2818_v30, %v2814_v11  ;;  %v3145_v11 = vld [vmem:[#allocation18 + $0x128] sm:$0xff]  ;;  %v3143_v30 = vld [vmem:[#allocation18 + $0x118] sm:$0xff] }
 0x878   :  { %v6603_v44 = vpop.eup %6602 }
 0x879   :  { %v8411_v33 = vmul.f32 %v6603_v44, %v6601_v48  ;;  %v2797_v48 = vld [vmem:[#allocation16 + $0x148] sm:$0xff] }
 0x87a   :  { %v2801_v44 = vld [vmem:[#allocation16 + $0x168] sm:$0xff] }
 0x87b   :  { %2640 = vmatmul.mubr.f32.vlgmr.msra.gmra.mrb[14].mxu0 %v8411_v33  ;;  %2711 = vmatmul.mubr.f32.vlgmr.msra.gmra.mrb[14].mxu1 %v8411_v33  ;;  %v5747_v2 = vpack.c.bf16 %v2801_v44, %v2797_v48  ;;  %v3123_v44 = vld [vmem:[#allocation18 + $0x78] sm:$0xff] }
 0x87c   :  { %5730 = vmatpush1.bf16.msra.mxu0 %v5729_v6  ;;  %5762 = vmatpush1.bf16.msra.mxu1 %v5761_v50  ;;  %v2799_v6 = vld [vmem:[#allocation16 + $0x158] sm:$0xff] }
 0x87d   :  { %5732 = vmatprep.subr.bf16.mxu0 %v5731_v4  ;;  %5764 = vmatprep.subr.bf16.mxu1 %v5763_v61  ;;  %v2803_v50 = vld [vmem:[#allocation16 + $0x178] sm:$0xff]  ;;  %v2796_v4 = vld [vmem:[#allocation16 + $0x140] sm:$0xff] }
 0x87e   :  { %2906 = vmatprep.mubr.f32.mxu0 %v7107_v7  ;;  %3019 = vmatprep.mubr.f32.mxu1 %v7107_v7  ;;  %v2800_v61 = vld [vmem:[#allocation16 + $0x160] sm:$0xff]  ;;  %v5779_v32 = vpack.c.bf16 %v2803_v50, %v2799_v6 }
 0x87f   :  { %v5749_v29 = vpack.c.bf16 %v2800_v61, %v2796_v4  ;;  %v3116_v6 = vld [vmem:[#allocation18 + $0x40] sm:$0xff]  ;;  %v3118_v4 = vld [vmem:[#allocation18 + $0x50] sm:$0xff] }
 0x880   :  { %5734 = vmatpush1.bf16.msra.mxu0 %v5733_v25  ;;  %5766 = vmatpush1.bf16.msra.mxu1 %v5765_v56  ;;  %v2807_v25 = vld [vmem:[#allocation16 + $0x198] sm:$0xff]  ;;  %v3120_v50 = vld [vmem:[#allocation18 + $0x60] sm:$0xff]  ;;  %v3122_v61 = vld [vmem:[#allocation18 + $0x70] sm:$0xff] }
 0x881   :  { %5736 = vmatprep.subr.bf16.mxu0 %v5735_v49  ;;  %5768 = vmatprep.subr.bf16.mxu1 %v5767_v55  ;;  %v2811_v56 = vld [vmem:[#allocation16 + $0x1b8] sm:$0xff]  ;;  %v2804_v49 = vld [vmem:[#allocation16 + $0x180] sm:$0xff] }
 0x882   :  { %v2808_v55 = vld [vmem:[#allocation16 + $0x1a0] sm:$0xff]  ;;  %v5783_v38 = vpack.c.bf16 %v2811_v56, %v2807_v25 }
 0x883   :  { %v5753_v45 = vpack.c.bf16 %v2808_v55, %v2804_v49  ;;  %v3124_v25 = vld [vmem:[#allocation18 + $0x80] sm:$0xff]  ;;  %v3126_v49 = vld [vmem:[#allocation18 + $0x90] sm:$0xff] }
 0x884   :  { %5738 = vmatpush1.bf16.msra.mxu0 %v5737_v20  ;;  %5770 = vmatpush1.bf16.msra.mxu1 %v5769_v27  ;;  %v2815_v20 = vld [vmem:[#allocation16 + $0x1d8] sm:$0xff]  ;;  %v3128_v56 = vld [vmem:[#allocation18 + $0xa0] sm:$0xff]  ;;  %v3130_v55 = vld [vmem:[#allocation18 + $0xb0] sm:$0xff] }
 0x885   :  { %5740 = vmatprep.subr.bf16.mxu0 %v5739_v15  ;;  %5772 = vmatprep.subr.bf16.mxu1 %v5771_v37  ;;  %v2819_v27 = vld [vmem:[#allocation16 + $0x1f8] sm:$0xff]  ;;  %v2812_v15 = vld [vmem:[#allocation16 + $0x1c0] sm:$0xff]  ;;  %v5755_v37 = vpack.c.bf16 %v2817_v43, %v2813_v14 }
 0x886   :  { %v5787_v40 = vpack.c.bf16 %v2819_v27, %v2815_v20  ;;  %v5757_v22 = vpack.c.bf16 %v2816_v53, %v2812_v15  ;;  %v3139_v43 = vld [vmem:[#allocation18 + $0xf8] sm:$0xff]  ;;  %v3132_v20 = vld [vmem:[#allocation18 + $0xc0] sm:$0xff]  ;;  %v3134_v15 = vld [vmem:[#allocation18 + $0xd0] sm:$0xff] }
 0x887   :  { %v3136_v27 = vld [vmem:[#allocation18 + $0xe0] sm:$0xff] }
 0x888   :  { %5742 = vmatpush1.bf16.msra.mxu0 %v5741_v35  ;;  %5774 = vmatpush1.bf16.msra.mxu1 %v5773_v39  ;;  %v3108_v35 = vld [vmem:[#allocation18] sm:$0xff] }
 0x889   :  { %5744 = vmatprep.subr.bf16.mxu0 %v5743_v31  ;;  %5776 = vmatprep.subr.bf16.mxu1 %v5775_v47  ;;  %v3114_v31 = vld [vmem:[#allocation18 + $0x30] sm:$0xff]  ;;  %v3117_v47 = vld [vmem:[#allocation18 + $0x48] sm:$0xff] }
 0x88a   :  { %v8457_v48 = vpack.c.bf16 %v3121_v5, %v3117_v47 }
 0x88c   :  { %5746 = vmatpush1.bf16.msra.mxu0 %v5745_v17  ;;  %5778 = vmatpush1.bf16.msra.mxu1 %v5777_v62  ;;  %v8459_v17 = vpack.c.bf16 %v3123_v44, %v3119_v59  ;;  %v8461_v62 = vpack.c.bf16 %v3120_v50, %v3116_v6  ;;  %v3151_v59 = vld [vmem:[#allocation18 + $0x158] sm:$0xff]  ;;  %v3148_v6 = vld [vmem:[#allocation18 + $0x140] sm:$0xff] }
 0x88d   :  { %5748 = vmatprep.subr.bf16.mxu0 %v5747_v2  ;;  %5780 = vmatprep.subr.bf16.mxu1 %v5779_v32  ;;  %v8464_v2 = vpack.c.bf16 %v3122_v61, %v3118_v4  ;;  %v3125_v32 = vld [vmem:[#allocation18 + $0x88] sm:$0xff]  ;;  %v3155_v44 = vld [vmem:[#allocation18 + $0x178] sm:$0xff]  ;;  %v3152_v4 = vld [vmem:[#allocation18 + $0x160] sm:$0xff] }
 0x88e   :  { %v8469_v1 = vpack.c.bf16 %v3129_v60, %v3125_v32  ;;  %v8505_v50 = vpack.c.bf16 %v3155_v44, %v3151_v59  ;;  %v3150_v61 = vld [vmem:[#allocation18 + $0x150] sm:$0xff]  ;;  %v8508_v60 = vpack.c.bf16 %v3152_v4, %v3148_v6 }
 0x88f   :  { %v3154_v32 = vld [vmem:[#allocation18 + $0x170] sm:$0xff] }
 0x890   :  { %5750 = vmatpush1.bf16.msra.mxu0 %v5749_v29  ;;  %5782 = vmatpush1.bf16.msra.mxu1 %v5781_v46  ;;  %v8471_v29 = vpack.c.bf16 %v3131_v24, %v3127_v36  ;;  %v8473_v46 = vpack.c.bf16 %v3128_v56, %v3124_v25  ;;  %v3157_v36 = vld [vmem:[#allocation18 + $0x188] sm:$0xff]  ;;  %v3159_v25 = vld [vmem:[#allocation18 + $0x198] sm:$0xff]  ;;  %v8512_v56 = vpack.c.bf16 %v3154_v32, %v3150_v61 }
 0x891   :  { %5752 = vmatprep.subr.bf16.mxu0 %v5751_v12  ;;  %5784 = vmatprep.subr.bf16.mxu1 %v5783_v38  ;;  %v8476_v12 = vpack.c.bf16 %v3130_v55, %v3126_v49  ;;  %v3133_v38 = vld [vmem:[#allocation18 + $0xc8] sm:$0xff]  ;;  %v3163_v55 = vld [vmem:[#allocation18 + $0x1b8] sm:$0xff] }
 0x892   :  { %v8481_v14 = vpack.c.bf16 %v3137_v42, %v3133_v38  ;;  %v3161_v24 = vld [vmem:[#allocation18 + $0x1a8] sm:$0xff]  ;;  %v3156_v38 = vld [vmem:[#allocation18 + $0x180] sm:$0xff] }
 0x893   :  { %v8514_v49 = vpack.c.bf16 %v3161_v24, %v3157_v36  ;;  %v3160_v42 = vld [vmem:[#allocation18 + $0x1a0] sm:$0xff] }
 0x894   :  { %5754 = vmatpush1.bf16.msra.mxu0 %v5753_v45  ;;  %5786 = vmatpush1.bf16.msra.mxu1 %v5785_v10  ;;  %v8483_v45 = vpack.c.bf16 %v3139_v43, %v3135_v52  ;;  %v8485_v10 = vpack.c.bf16 %v3136_v27, %v3132_v20  ;;  %v8517_v52 = vpack.c.bf16 %v3163_v55, %v3159_v25  ;;  %v3158_v43 = vld [vmem:[#allocation18 + $0x190] sm:$0xff] }
 0x895   :  { %5756 = vmatprep.subr.bf16.mxu0 %v5755_v37  ;;  %5788 = vmatprep.subr.bf16.mxu1 %v5787_v40  ;;  %v3138_v37 = vld [vmem:[#allocation18 + $0xf0] sm:$0xff]  ;;  %v3141_v40 = vld [vmem:[#allocation18 + $0x108] sm:$0xff]  ;;  %v8520_v27 = vpack.c.bf16 %v3160_v42, %v3156_v38 }
 0x896   :  { %v8488_v53 = vpack.c.bf16 %v3138_v37, %v3134_v15  ;;  %v3162_v20 = vld [vmem:[#allocation18 + $0x1b0] sm:$0xff]  ;;  %v3165_v37 = vld [vmem:[#allocation18 + $0x1c8] sm:$0xff] }
 0x897   :  { %v8524_v15 = vpack.c.bf16 %v3162_v20, %v3158_v43 }
 0x898   :  { %5758 = vmatpush1.bf16.msra.mxu0 %v5757_v22  ;;  %5790 = vmatpush1.bf16.msra.mxu1 %v5789_v28  ;;  %v3147_v22 = vld [vmem:[#allocation18 + $0x138] sm:$0xff]  ;;  %v8492_v28 = vpack.c.bf16 %v3145_v11, %v3141_v40  ;;  %v3169_v40 = vld [vmem:[#allocation18 + $0x1e8] sm:$0xff] }
 0x899   :  { %v3167_v11 = vld [vmem:[#allocation18 + $0x1d8] sm:$0xff] }
 0x89b   :  { %2907 = vmatmul.mubr.f32.vlgmr.msra.gmra.mrb[16].mxu0 %v8083_v51  ;;  %3020 = vmatmul.mubr.f32.vlgmr.msra.gmra.mrb[16].mxu1 %v8083_v51  ;;  %v3109_v51 = vld [vmem:[#allocation18 + $0x8] sm:$0xff] }
 0x89c   :  { %2912 = vmatprep.mubr.f32.mxu0 %v7107_v7  ;;  %3025 = vmatprep.mubr.f32.mxu1 %v7107_v7 }
 0x89f   :  { %2913 = vmatmul.mubr.f32.gmra.mrb[18].mxu0 %v8147_v3  ;;  %3026 = vmatmul.mubr.f32.gmra.mrb[18].mxu1 %v8147_v3  ;;  %v3113_v3 = vld [vmem:[#allocation18 + $0x28] sm:$0xff] }
 0x8a0   :  { %2918 = vmatprep.mubr.f32.mxu0 %v7107_v7  ;;  %3031 = vmatprep.mubr.f32.mxu1 %v7107_v7 }
 0x8a3   :  { %2919 = vmatmul.mubr.f32.gmra.mrb[20].mxu0 %v8233_v57  ;;  %3032 = vmatmul.mubr.f32.gmra.mrb[20].mxu1 %v8233_v57  ;;  %v3111_v57 = vld [vmem:[#allocation18 + $0x18] sm:$0xff] }
 0x8a4   :  { %2924 = vmatprep.mubr.f32.mxu0 %v7107_v7  ;;  %3037 = vmatprep.mubr.f32.mxu1 %v7107_v7 }
 0x8a7   :  { %2925 = vmatmul.mubr.f32.gmra.mrb[22].mxu0 %v8287_v54  ;;  %3038 = vmatmul.mubr.f32.gmra.mrb[22].mxu1 %v8287_v54  ;;  %v8445_v54 = vpack.c.bf16 %v3113_v3, %v3109_v51  ;;  %v8494_v51 = vpack.c.bf16 %v3147_v22, %v3143_v30  ;;  %v3140_v3 = vld [vmem:[#allocation18 + $0x100] sm:$0xff]  ;;  %v8529_v30 = vpack.c.bf16 %v3169_v40, %v3165_v37  ;;  %v3171_v22 = vld [vmem:[#allocation18 + $0x1f8] sm:$0xff] }
 0x8a8   :  { %2930 = vmatprep.mubr.f32.mxu0 %v7107_v7  ;;  %3043 = vmatprep.mubr.f32.mxu1 %v7107_v7 }
 0x8a9   :  { %5792 = vmatprep.subr.bf16.mxu0 %v8445_v54 }
 0x8ab   :  { %2931 = vmatmul.mubr.f32.gmra.mrb[24].mxu0 %v8331_v8  ;;  %3044 = vmatmul.mubr.f32.gmra.mrb[24].mxu1 %v8331_v8  ;;  %v3115_v8 = vld [vmem:[#allocation18 + $0x38] sm:$0xff] }
 0x8ac   :  { %2936 = vmatprep.mubr.f32.mxu0 %v7107_v7  ;;  %3049 = vmatprep.mubr.f32.mxu1 %v7107_v7  ;;  %v8447_v39 = vpack.c.bf16 %v3115_v8, %v3111_v57  ;;  %v3144_v57 = vld [vmem:[#allocation18 + $0x120] sm:$0xff]  ;;  %v3142_v8 = vld [vmem:[#allocation18 + $0x110] sm:$0xff] }
 0x8ae   :  { %5824 = vmatprep.subr.bf16.mxu1 %v8447_v39 }
 0x8af   :  { %2937 = vmatmul.mubr.f32.gmra.mrb[26].mxu0 %v8387_v41  ;;  %3050 = vmatmul.mubr.f32.gmra.mrb[26].mxu1 %v8387_v41  ;;  %v3112_v41 = vld [vmem:[#allocation18 + $0x20] sm:$0xff] }
 0x8b0   :  { %2942 = vmatprep.mubr.f32.mxu0 %v7107_v7  ;;  %3055 = vmatprep.mubr.f32.mxu1 %v7107_v7  ;;  %v8449_v18 = vpack.c.bf16 %v3112_v41, %v3108_v35  ;;  %v8497_v35 = vpack.c.bf16 %v3144_v57, %v3140_v3  ;;  %v3146_v41 = vld [vmem:[#allocation18 + $0x130] sm:$0xff]  ;;  %v3164_v3 = vld [vmem:[#allocation18 + $0x1c0] sm:$0xff] }
 0x8b1   :  { %v8501_v47 = vpack.c.bf16 %v3146_v41, %v3142_v8  ;;  %v3168_v57 = vld [vmem:[#allocation18 + $0x1e0] sm:$0xff]  ;;  %v8531_v8 = vpack.c.bf16 %v3171_v22, %v3167_v11 }
 0x8b2   :  { %5794 = vmatpush1.bf16.msra.mxu0 %v8449_v18  ;;  %v8533_v41 = vpack.c.bf16 %v3168_v57, %v3164_v3 }
 0x8b3   :  { %2943 = vmatmul.mubr.f32.gmra.mrb[28].mxu0 %v8411_v33  ;;  %3056 = vmatmul.mubr.f32.gmra.mrb[28].mxu1 %v8411_v33  ;;  %v8452_v33 = vpack.c.bf16 %v3114_v31, %v3110_v63  ;;  %v3149_v63 = vld [vmem:[#allocation18 + $0x148] sm:$0xff] }
 0x8b4   :  { %2948 = vmatprep.mubr.f32.mxu0 %v7107_v7  ;;  %3061 = vmatprep.mubr.f32.mxu1 %v7107_v7  ;;  %v3153_v31 = vld [vmem:[#allocation18 + $0x168] sm:$0xff] }
 0x8b5   :  { %5826 = vmatpush1.bf16.msra.mxu1 %v8452_v33  ;;  %5796 = vmatprep.subr.bf16.mxu0 %v8457_v48  ;;  %v8503_v5 = vpack.c.bf16 %v3153_v31, %v3149_v63  ;;  %v3166_v63 = vld [vmem:[#allocation18 + $0x1d0] sm:$0xff] }
 0x8b6   :  { %5828 = vmatprep.subr.bf16.mxu1 %v8459_v17  ;;  %5798 = vmatpush1.bf16.msra.mxu0 %v8461_v62  ;;  %v3170_v31 = vld [vmem:[#allocation18 + $0x1f0] sm:$0xff] }
 0x8b7   :  { %5800 = vmatprep.subr.bf16.mxu0 %v8469_v1  ;;  %v8536_v59 = vpack.c.bf16 %v3170_v31, %v3166_v63 }
 0x8b9   :  { %5830 = vmatpush1.bf16.msra.mxu1 %v8464_v2 }
 0x8ba   :  { %5832 = vmatprep.subr.bf16.mxu1 %v8471_v29  ;;  %5802 = vmatpush1.bf16.msra.mxu0 %v8473_v46 }
 0x8bb   :  { %5804 = vmatprep.subr.bf16.mxu0 %v8481_v14 }
 0x8bd   :  { %5834 = vmatpush1.bf16.msra.mxu1 %v8476_v12 }
 0x8be   :  { %5836 = vmatprep.subr.bf16.mxu1 %v8483_v45  ;;  %5806 = vmatpush1.bf16.msra.mxu0 %v8485_v10 }
 0x8bf   :  { %5808 = vmatprep.subr.bf16.mxu0 %v8492_v28 }
 0x8c1   :  { %5838 = vmatpush1.bf16.msra.mxu1 %v8488_v53 }
 0x8c2   :  { %5840 = vmatprep.subr.bf16.mxu1 %v8494_v51  ;;  %5810 = vmatpush1.bf16.msra.mxu0 %v8497_v35 }
 0x8c3   :  { %5812 = vmatprep.subr.bf16.mxu0 %v8503_v5 }
 0x8c5   :  { %5842 = vmatpush1.bf16.msra.mxu1 %v8501_v47 }
 0x8c6   :  { %5844 = vmatprep.subr.bf16.mxu1 %v8505_v50  ;;  %5814 = vmatpush1.bf16.msra.mxu0 %v8508_v60 }
 0x8c7   :  { %5816 = vmatprep.subr.bf16.mxu0 %v8514_v49 }
 0x8c9   :  { %5846 = vmatpush1.bf16.msra.mxu1 %v8512_v56 }
 0x8ca   :  { %5848 = vmatprep.subr.bf16.mxu1 %v8517_v52  ;;  %5818 = vmatpush1.bf16.msra.mxu0 %v8520_v27 }
 0x8cb   :  { %5820 = vmatprep.subr.bf16.mxu0 %v8529_v30 }
 0x8cd   :  { %5850 = vmatpush1.bf16.msra.mxu1 %v8524_v15 }
 0x8ce   :  { %5852 = vmatprep.subr.bf16.mxu1 %v8531_v8  ;;  %5822 = vmatpush1.bf16.msra.mxu0 %v8533_v41 }
 0x8cf   :  { %5856 = vmatprep.subr.bf16.mxu0 %v8445_v54 }
 0x8d1   :  { %5854 = vmatpush1.bf16.msra.mxu1 %v8536_v59 }
 0x8d2   :  { %5888 = vmatprep.subr.bf16.mxu1 %v8447_v39 }
 0x94e   :  { %v2641_v44 = vpop.f32.mrb[14].mxu0  ;;  %v2712_v6 = vpop.f32.mrb[14].mxu1 }
 0x94f   :  { %v6356_v4 = vadd.f32 %v2641_v44, %v8060_v26  ;;  %v2643_v61 = vpop.f32.mrb[15].mxu0  ;;  %v2714_v32 = vpop.f32.mrb[15].mxu1  ;;  %v6372_v42 = vadd.f32 %v2712_v6, %v8077_v23  ;;  %v3101_v6 = vld [vmem:[#allocation9 + $0x8] sm:$0xff] }
 0x950   :  { %v6357_v36 = vadd.f32 %v2643_v61, %v8064_v58  ;;  %v6373_v55 = vadd.f32 %v2714_v32, %v8071_v16 }
 0x951   :  { %v5028_v24 = vmul.f32 -1.442695, %v6356_v4 }
 0x952   :  { %v5029_v25 = vmul.f32 -1.442695, %v6357_v36  ;;  %v5030_v38 = vmul.f32 -1.442695, %v6373_v55 }
 0x953   :  { %6604 = vpow2.f32 %v5028_v24 }
 0x954   :  { %6606 = vpow2.f32 %v5029_v25 }
 0x955   :  { %6608 = vpow2.f32 %v5030_v38 }
 0x956   :  { %6610 = vtanh.f32 %v6372_v42 }
 0x95d   :  { %v6605_v43 = vpop.eup %6604 }
 0x95e   :  { %v6607_v20 = vpop.eup %6606  ;;  %v2724_v37 = vadd.f32 1.0, %v6605_v43 }
 0x95f   :  { %v2730_v40 = vadd.f32 1.0, %v6607_v20  ;;  %v6609_v26 = vpop.eup %6608 }
 0x960   :  { %6612 = vrcp.f32 %v2724_v37  ;;  %v6611_v11 = vpop.eup %6610  ;;  %v2737_v57 = vadd.f32 1.0, %v6609_v26 }
 0x961   :  { %6614 = vrcp.f32 %v2730_v40 }
 0x962   :  { %6616 = vrcp.f32 %v2737_v57  ;;  %v3103_v57 = vld [vmem:[#allocation10 + $0x8] sm:$0xff] }
 0x96a   :  { %v6613_v58 = vpop.eup %6612 }
 0x96b   :  { %v6615_v22 = vpop.eup %6614  ;;  %v2741_v3 = vmul.f32 %v6613_v58, %v6611_v11 }
 0x96c   :  { %v2740_v63 = vmul.f32 %v6615_v22, %v8408_v34  ;;  %v6617_v23 = vpop.eup %6616  ;;  %v2820_v34 = vld [vmem:[#allocation19] sm:$0xf] }
 0x96d   :  { %v8586_v4 = vrot.slane %v2820_v34, %v556_v13  ;;  %v8590_v61 = vrot.slane %v2820_v34, %v560_v21  ;;  %v8596_v20 = vrot.slane %v2820_v34, %v568_v0  ;;  %v8601_v21 = vrot.slane %v2820_v34, %v564_v19 }
 0x96e   :  { %v2742_v16 = vadd.f32 %v2741_v3, %v2740_v63 }
 0x970   :  { %6618 = vtanh.f32 %v2742_v16  ;;  %2747 = vst [vmem:[#allocation28] sm:$0xff] %v2742_v16 }
 0x97a   :  { %v6619_v31 = vpop.eup %6618 }
 0x97b   :  { %v2744_v44 = vmul.f32 %v6619_v31, %v6617_v23 }
 0x97d   :  { %2949 = vmatmul.mubr.f32.gmra.mrb[30].mxu0 %v2744_v44  ;;  %2746 = vst [vmem:[#allocation27] sm:$0xff] %v2744_v44  ;;  %3062 = vmatmul.mubr.f32.gmra.mrb[30].mxu1 %v2744_v44 }
 0x97e   :  { %3236 = vmatprep.mubr.f32.mxu0 %v7107_v7  ;;  %3307 = vmatprep.mubr.f32.mxu1 %v7107_v7 }
 0x981   :  { %3237 = vmatmul.mubr.f32.vlgmr.msra.gmra.mrb[16].mxu0 %v3101_v6  ;;  %3308 = vmatmul.mubr.f32.vlgmr.msra.gmra.mrb[16].mxu1 %v3101_v6 }
 0x982   :  { %5858 = vmatpush1.bf16.msra.mxu0 %v8449_v18  ;;  %5890 = vmatpush1.bf16.msra.mxu1 %v8452_v33 }
 0x983   :  { %5860 = vmatprep.subr.bf16.mxu0 %v8457_v48  ;;  %5892 = vmatprep.subr.bf16.mxu1 %v8459_v17 }
 0x984   :  { %3410 = vmatprep.mubr.f32.mxu0 %v7107_v7  ;;  %3481 = vmatprep.mubr.f32.mxu1 %v7107_v7 }
 0x986   :  { %5862 = vmatpush1.bf16.msra.mxu0 %v8461_v62  ;;  %5894 = vmatpush1.bf16.msra.mxu1 %v8464_v2 }
 0x987   :  { %5864 = vmatprep.subr.bf16.mxu0 %v8469_v1  ;;  %5896 = vmatprep.subr.bf16.mxu1 %v8471_v29 }
 0x98a   :  { %5866 = vmatpush1.bf16.msra.mxu0 %v8473_v46  ;;  %5898 = vmatpush1.bf16.msra.mxu1 %v8476_v12 }
 0x98b   :  { %5868 = vmatprep.subr.bf16.mxu0 %v8481_v14  ;;  %5900 = vmatprep.subr.bf16.mxu1 %v8483_v45 }
 0x98e   :  { %5870 = vmatpush1.bf16.msra.mxu0 %v8485_v10  ;;  %5902 = vmatpush1.bf16.msra.mxu1 %v8488_v53 }
 0x98f   :  { %5872 = vmatprep.subr.bf16.mxu0 %v8492_v28  ;;  %5904 = vmatprep.subr.bf16.mxu1 %v8494_v51 }
 0x992   :  { %5874 = vmatpush1.bf16.msra.mxu0 %v8497_v35  ;;  %5906 = vmatpush1.bf16.msra.mxu1 %v8501_v47 }
 0x993   :  { %5876 = vmatprep.subr.bf16.mxu0 %v8503_v5  ;;  %5908 = vmatprep.subr.bf16.mxu1 %v8505_v50 }
 0x996   :  { %5878 = vmatpush1.bf16.msra.mxu0 %v8508_v60  ;;  %5910 = vmatpush1.bf16.msra.mxu1 %v8512_v56 }
 0x997   :  { %5880 = vmatprep.subr.bf16.mxu0 %v8514_v49  ;;  %5912 = vmatprep.subr.bf16.mxu1 %v8517_v52 }
 0x99a   :  { %5882 = vmatpush1.bf16.msra.mxu0 %v8520_v27  ;;  %5914 = vmatpush1.bf16.msra.mxu1 %v8524_v15 }
 0x99b   :  { %5884 = vmatprep.subr.bf16.mxu0 %v8529_v30  ;;  %5916 = vmatprep.subr.bf16.mxu1 %v8531_v8 }
 0x99e   :  { %5886 = vmatpush1.bf16.msra.mxu0 %v8533_v41  ;;  %5918 = vmatpush1.bf16.msra.mxu1 %v8536_v59 }
 0x99f   :  { %5920 = vmatprep.subr.bf16.mxu0 %v8445_v54  ;;  %5952 = vmatprep.subr.bf16.mxu1 %v8447_v39 }
 0xa54   :  { %v3238_v32 = vpop.f32.mrb[16].mxu0  ;;  %v3309_v36 = vpop.f32.mrb[16].mxu1 }
 0xa55   :  { %v6374_v24 = vadd.f32 %v3238_v32, %v8586_v4  ;;  %v3240_v25 = vpop.f32.mrb[17].mxu0  ;;  %v3311_v55 = vpop.f32.mrb[17].mxu1  ;;  %v6390_v40 = vadd.f32 %v3309_v36, %v8601_v21 }
 0xa56   :  { %v6375_v38 = vadd.f32 %v3240_v25, %v8590_v61  ;;  %v6391_v13 = vadd.f32 %v3311_v55, %v8596_v20 }
 0xa57   :  { %v5031_v42 = vmul.f32 -1.442695, %v6374_v24 }
 0xa58   :  { %v5032_v43 = vmul.f32 -1.442695, %v6375_v38  ;;  %v5033_v37 = vmul.f32 -1.442695, %v6391_v13 }
 0xa59   :  { %6620 = vpow2.f32 %v5031_v42 }
 0xa5a   :  { %6622 = vpow2.f32 %v5032_v43 }
 0xa5b   :  { %6624 = vpow2.f32 %v5033_v37 }
 0xa5c   :  { %6626 = vtanh.f32 %v6390_v40 }
 0xa63   :  { %v6621_v26 = vpop.eup %6620 }
 0xa64   :  { %v6623_v11 = vpop.eup %6622  ;;  %v3321_v58 = vadd.f32 1.0, %v6621_v26 }
 0xa65   :  { %v3327_v22 = vadd.f32 1.0, %v6623_v11  ;;  %v6625_v0 = vpop.eup %6624 }
 0xa66   :  { %6628 = vrcp.f32 %v3321_v58  ;;  %v6627_v3 = vpop.eup %6626  ;;  %v3334_v9 = vadd.f32 1.0, %v6625_v0 }
 0xa67   :  { %6630 = vrcp.f32 %v3327_v22 }
 0xa68   :  { %6632 = vrcp.f32 %v3334_v9 }
 0xa70   :  { %v6629_v63 = vpop.eup %6628 }
 0xa71   :  { %v6631_v16 = vpop.eup %6630  ;;  %v3338_v23 = vmul.f32 %v6629_v63, %v6627_v3 }
 0xa72   :  { %v3337_v19 = vmul.f32 %v6631_v16, %v3103_v57  ;;  %v6633_v44 = vpop.eup %6632 }
 0xa74   :  { %v8604_v31 = vadd.f32 %v3338_v23, %v3337_v19 }
 0xa76   :  { %6634 = vtanh.f32 %v8604_v31 }
 0xa80   :  { %v6635_v6 = vpop.eup %6634 }
 0xa81   :  { %v3341_v34 = vmul.f32 %v6635_v6, %v6633_v44 }
 0xa83   :  { %3411 = vmatmul.mubr.f32.vlgmr.msra.gmra.mrb[18].mxu0 %v3341_v34  ;;  %3482 = vmatmul.mubr.f32.vlgmr.msra.gmra.mrb[18].mxu1 %v3341_v34 }
 0xa84   :  { %5922 = vmatpush1.bf16.msra.mxu0 %v8449_v18  ;;  %5954 = vmatpush1.bf16.msra.mxu1 %v8452_v33 }
 0xa85   :  { %5924 = vmatprep.subr.bf16.mxu0 %v8457_v48  ;;  %5956 = vmatprep.subr.bf16.mxu1 %v8459_v17 }
 0xa86   :  { %3584 = vmatprep.mubr.f32.mxu0 %v7107_v7  ;;  %3655 = vmatprep.mubr.f32.mxu1 %v7107_v7 }
 0xa88   :  { %5926 = vmatpush1.bf16.msra.mxu0 %v8461_v62  ;;  %5958 = vmatpush1.bf16.msra.mxu1 %v8464_v2 }
 0xa89   :  { %5928 = vmatprep.subr.bf16.mxu0 %v8469_v1  ;;  %5960 = vmatprep.subr.bf16.mxu1 %v8471_v29 }
 0xa8c   :  { %5930 = vmatpush1.bf16.msra.mxu0 %v8473_v46  ;;  %5962 = vmatpush1.bf16.msra.mxu1 %v8476_v12 }
 0xa8d   :  { %5932 = vmatprep.subr.bf16.mxu0 %v8481_v14  ;;  %5964 = vmatprep.subr.bf16.mxu1 %v8483_v45 }
 0xa90   :  { %5934 = vmatpush1.bf16.msra.mxu0 %v8485_v10  ;;  %5966 = vmatpush1.bf16.msra.mxu1 %v8488_v53 }
 0xa91   :  { %5936 = vmatprep.subr.bf16.mxu0 %v8492_v28  ;;  %5968 = vmatprep.subr.bf16.mxu1 %v8494_v51 }
 0xa94   :  { %5938 = vmatpush1.bf16.msra.mxu0 %v8497_v35  ;;  %5970 = vmatpush1.bf16.msra.mxu1 %v8501_v47 }
 0xa95   :  { %5940 = vmatprep.subr.bf16.mxu0 %v8503_v5  ;;  %5972 = vmatprep.subr.bf16.mxu1 %v8505_v50 }
 0xa98   :  { %5942 = vmatpush1.bf16.msra.mxu0 %v8508_v60  ;;  %5974 = vmatpush1.bf16.msra.mxu1 %v8512_v56 }
 0xa99   :  { %5944 = vmatprep.subr.bf16.mxu0 %v8514_v49  ;;  %5976 = vmatprep.subr.bf16.mxu1 %v8517_v52 }
 0xa9c   :  { %5946 = vmatpush1.bf16.msra.mxu0 %v8520_v27  ;;  %5978 = vmatpush1.bf16.msra.mxu1 %v8524_v15 }
 0xa9d   :  { %5948 = vmatprep.subr.bf16.mxu0 %v8529_v30  ;;  %5980 = vmatprep.subr.bf16.mxu1 %v8531_v8 }
 0xaa0   :  { %5950 = vmatpush1.bf16.msra.mxu0 %v8533_v41  ;;  %5982 = vmatpush1.bf16.msra.mxu1 %v8536_v59 }
 0xaa1   :  { %5984 = vmatprep.subr.bf16.mxu0 %v8445_v54  ;;  %6016 = vmatprep.subr.bf16.mxu1 %v8447_v39 }
 0xb56   :  { %v3412_v32 = vpop.f32.mrb[18].mxu0  ;;  %v3483_v36 = vpop.f32.mrb[18].mxu1 }
 0xb57   :  { %v6376_v24 = vadd.f32 %v3412_v32, %v8586_v4  ;;  %v3414_v25 = vpop.f32.mrb[19].mxu0  ;;  %v3485_v55 = vpop.f32.mrb[19].mxu1  ;;  %v6392_v40 = vadd.f32 %v3483_v36, %v8601_v21 }
 0xb58   :  { %v6377_v38 = vadd.f32 %v3414_v25, %v8590_v61  ;;  %v6393_v13 = vadd.f32 %v3485_v55, %v8596_v20 }
 0xb59   :  { %v5034_v42 = vmul.f32 -1.442695, %v6376_v24 }
 0xb5a   :  { %v5035_v43 = vmul.f32 -1.442695, %v6377_v38  ;;  %v5036_v37 = vmul.f32 -1.442695, %v6393_v13 }
 0xb5b   :  { %6636 = vpow2.f32 %v5034_v42 }
 0xb5c   :  { %6638 = vpow2.f32 %v5035_v43 }
 0xb5d   :  { %6640 = vpow2.f32 %v5036_v37 }
 0xb5e   :  { %6642 = vtanh.f32 %v6392_v40 }
 0xb65   :  { %v6637_v26 = vpop.eup %6636 }
 0xb66   :  { %v6639_v11 = vpop.eup %6638  ;;  %v3495_v58 = vadd.f32 1.0, %v6637_v26 }
 0xb67   :  { %v3501_v22 = vadd.f32 1.0, %v6639_v11  ;;  %v6641_v0 = vpop.eup %6640 }
 0xb68   :  { %6644 = vrcp.f32 %v3495_v58  ;;  %v6643_v3 = vpop.eup %6642  ;;  %v3508_v23 = vadd.f32 1.0, %v6641_v0 }
 0xb69   :  { %6646 = vrcp.f32 %v3501_v22 }
 0xb6a   :  { %6648 = vrcp.f32 %v3508_v23 }
 0xb72   :  { %v6645_v57 = vpop.eup %6644 }
 0xb73   :  { %v6647_v63 = vpop.eup %6646  ;;  %v3512_v16 = vmul.f32 %v6645_v57, %v6643_v3 }
 0xb74   :  { %v3511_v9 = vmul.f32 %v6647_v63, %v8604_v31  ;;  %v6649_v44 = vpop.eup %6648 }
 0xb76   :  { %v8646_v19 = vadd.f32 %v3512_v16, %v3511_v9 }
 0xb78   :  { %6650 = vtanh.f32 %v8646_v19 }
 0xb82   :  { %v6651_v6 = vpop.eup %6650 }
 0xb83   :  { %v3515_v34 = vmul.f32 %v6651_v6, %v6649_v44 }
 0xb85   :  { %3585 = vmatmul.mubr.f32.vlgmr.msra.gmra.mrb[20].mxu0 %v3515_v34  ;;  %3656 = vmatmul.mubr.f32.vlgmr.msra.gmra.mrb[20].mxu1 %v3515_v34 }
 0xb86   :  { %5986 = vmatpush1.bf16.msra.mxu0 %v8449_v18  ;;  %6018 = vmatpush1.bf16.msra.mxu1 %v8452_v33 }
 0xb87   :  { %5988 = vmatprep.subr.bf16.mxu0 %v8457_v48  ;;  %6020 = vmatprep.subr.bf16.mxu1 %v8459_v17 }
 0xb88   :  { %3758 = vmatprep.mubr.f32.mxu0 %v7107_v7  ;;  %3829 = vmatprep.mubr.f32.mxu1 %v7107_v7 }
 0xb8a   :  { %5990 = vmatpush1.bf16.msra.mxu0 %v8461_v62  ;;  %6022 = vmatpush1.bf16.msra.mxu1 %v8464_v2 }
 0xb8b   :  { %5992 = vmatprep.subr.bf16.mxu0 %v8469_v1  ;;  %6024 = vmatprep.subr.bf16.mxu1 %v8471_v29 }
 0xb8e   :  { %5994 = vmatpush1.bf16.msra.mxu0 %v8473_v46  ;;  %6026 = vmatpush1.bf16.msra.mxu1 %v8476_v12 }
 0xb8f   :  { %5996 = vmatprep.subr.bf16.mxu0 %v8481_v14  ;;  %6028 = vmatprep.subr.bf16.mxu1 %v8483_v45 }
 0xb92   :  { %5998 = vmatpush1.bf16.msra.mxu0 %v8485_v10  ;;  %6030 = vmatpush1.bf16.msra.mxu1 %v8488_v53 }
 0xb93   :  { %6000 = vmatprep.subr.bf16.mxu0 %v8492_v28  ;;  %6032 = vmatprep.subr.bf16.mxu1 %v8494_v51 }
 0xb96   :  { %6002 = vmatpush1.bf16.msra.mxu0 %v8497_v35  ;;  %6034 = vmatpush1.bf16.msra.mxu1 %v8501_v47 }
 0xb97   :  { %6004 = vmatprep.subr.bf16.mxu0 %v8503_v5  ;;  %6036 = vmatprep.subr.bf16.mxu1 %v8505_v50 }
 0xb9a   :  { %6006 = vmatpush1.bf16.msra.mxu0 %v8508_v60  ;;  %6038 = vmatpush1.bf16.msra.mxu1 %v8512_v56 }
 0xb9b   :  { %6008 = vmatprep.subr.bf16.mxu0 %v8514_v49  ;;  %6040 = vmatprep.subr.bf16.mxu1 %v8517_v52 }
 0xb9e   :  { %6010 = vmatpush1.bf16.msra.mxu0 %v8520_v27  ;;  %6042 = vmatpush1.bf16.msra.mxu1 %v8524_v15 }
 0xb9f   :  { %6012 = vmatprep.subr.bf16.mxu0 %v8529_v30  ;;  %6044 = vmatprep.subr.bf16.mxu1 %v8531_v8 }
 0xba2   :  { %6014 = vmatpush1.bf16.msra.mxu0 %v8533_v41  ;;  %6046 = vmatpush1.bf16.msra.mxu1 %v8536_v59 }
 0xba3   :  { %6048 = vmatprep.subr.bf16.mxu0 %v8445_v54  ;;  %6080 = vmatprep.subr.bf16.mxu1 %v8447_v39 }
 0xc58   :  { %v3586_v31 = vpop.f32.mrb[20].mxu0  ;;  %v3657_v32 = vpop.f32.mrb[20].mxu1 }
 0xc59   :  { %v6378_v36 = vadd.f32 %v3586_v31, %v8586_v4  ;;  %v3588_v24 = vpop.f32.mrb[21].mxu0  ;;  %v3659_v25 = vpop.f32.mrb[21].mxu1  ;;  %v6394_v37 = vadd.f32 %v3657_v32, %v8601_v21 }
 0xc5a   :  { %v6379_v55 = vadd.f32 %v3588_v24, %v8590_v61  ;;  %v6395_v43 = vadd.f32 %v3659_v25, %v8596_v20 }
 0xc5b   :  { %v5037_v38 = vmul.f32 -1.442695, %v6378_v36 }
 0xc5c   :  { %v5038_v42 = vmul.f32 -1.442695, %v6379_v55  ;;  %v5039_v13 = vmul.f32 -1.442695, %v6395_v43 }
 0xc5d   :  { %6652 = vpow2.f32 %v5037_v38 }
 0xc5e   :  { %6654 = vpow2.f32 %v5038_v42 }
 0xc5f   :  { %6656 = vpow2.f32 %v5039_v13 }
 0xc60   :  { %6658 = vtanh.f32 %v6394_v37 }
 0xc67   :  { %v6653_v40 = vpop.eup %6652 }
 0xc68   :  { %v6655_v26 = vpop.eup %6654  ;;  %v3669_v11 = vadd.f32 1.0, %v6653_v40 }
 0xc69   :  { %v3675_v58 = vadd.f32 1.0, %v6655_v26  ;;  %v6657_v22 = vpop.eup %6656 }
 0xc6a   :  { %6660 = vrcp.f32 %v3669_v11  ;;  %v6659_v0 = vpop.eup %6658  ;;  %v3682_v16 = vadd.f32 1.0, %v6657_v22 }
 0xc6b   :  { %6662 = vrcp.f32 %v3675_v58 }
 0xc6c   :  { %6664 = vrcp.f32 %v3682_v16 }
 0xc74   :  { %v6661_v3 = vpop.eup %6660 }
 0xc75   :  { %v6663_v57 = vpop.eup %6662  ;;  %v3686_v63 = vmul.f32 %v6661_v3, %v6659_v0 }
 0xc76   :  { %v3685_v23 = vmul.f32 %v6663_v57, %v8646_v19  ;;  %v6665_v44 = vpop.eup %6664 }
 0xc78   :  { %v8688_v9 = vadd.f32 %v3686_v63, %v3685_v23 }
 0xc7a   :  { %6666 = vtanh.f32 %v8688_v9 }
 0xc84   :  { %v6667_v6 = vpop.eup %6666 }
 0xc85   :  { %v3689_v34 = vmul.f32 %v6667_v6, %v6665_v44 }
 0xc87   :  { %3759 = vmatmul.mubr.f32.vlgmr.msra.gmra.mrb[22].mxu0 %v3689_v34  ;;  %3830 = vmatmul.mubr.f32.vlgmr.msra.gmra.mrb[22].mxu1 %v3689_v34 }
 0xc88   :  { %6050 = vmatpush1.bf16.msra.mxu0 %v8449_v18  ;;  %6082 = vmatpush1.bf16.msra.mxu1 %v8452_v33 }
 0xc89   :  { %6052 = vmatprep.subr.bf16.mxu0 %v8457_v48  ;;  %6084 = vmatprep.subr.bf16.mxu1 %v8459_v17 }
 0xc8a   :  { %3932 = vmatprep.mubr.f32.mxu0 %v7107_v7  ;;  %4003 = vmatprep.mubr.f32.mxu1 %v7107_v7 }
 0xc8c   :  { %6054 = vmatpush1.bf16.msra.mxu0 %v8461_v62  ;;  %6086 = vmatpush1.bf16.msra.mxu1 %v8464_v2 }
 0xc8d   :  { %6056 = vmatprep.subr.bf16.mxu0 %v8469_v1  ;;  %6088 = vmatprep.subr.bf16.mxu1 %v8471_v29 }
 0xc90   :  { %6058 = vmatpush1.bf16.msra.mxu0 %v8473_v46  ;;  %6090 = vmatpush1.bf16.msra.mxu1 %v8476_v12 }
 0xc91   :  { %6060 = vmatprep.subr.bf16.mxu0 %v8481_v14  ;;  %6092 = vmatprep.subr.bf16.mxu1 %v8483_v45 }
 0xc94   :  { %6062 = vmatpush1.bf16.msra.mxu0 %v8485_v10  ;;  %6094 = vmatpush1.bf16.msra.mxu1 %v8488_v53 }
 0xc95   :  { %6064 = vmatprep.subr.bf16.mxu0 %v8492_v28  ;;  %6096 = vmatprep.subr.bf16.mxu1 %v8494_v51 }
 0xc98   :  { %6066 = vmatpush1.bf16.msra.mxu0 %v8497_v35  ;;  %6098 = vmatpush1.bf16.msra.mxu1 %v8501_v47 }
 0xc99   :  { %6068 = vmatprep.subr.bf16.mxu0 %v8503_v5  ;;  %6100 = vmatprep.subr.bf16.mxu1 %v8505_v50 }
 0xc9c   :  { %6070 = vmatpush1.bf16.msra.mxu0 %v8508_v60  ;;  %6102 = vmatpush1.bf16.msra.mxu1 %v8512_v56 }
 0xc9d   :  { %6072 = vmatprep.subr.bf16.mxu0 %v8514_v49  ;;  %6104 = vmatprep.subr.bf16.mxu1 %v8517_v52 }
 0xca0   :  { %6074 = vmatpush1.bf16.msra.mxu0 %v8520_v27  ;;  %6106 = vmatpush1.bf16.msra.mxu1 %v8524_v15 }
 0xca1   :  { %6076 = vmatprep.subr.bf16.mxu0 %v8529_v30  ;;  %6108 = vmatprep.subr.bf16.mxu1 %v8531_v8 }
 0xca4   :  { %6078 = vmatpush1.bf16.msra.mxu0 %v8533_v41  ;;  %6110 = vmatpush1.bf16.msra.mxu1 %v8536_v59 }
 0xca5   :  { %6112 = vmatprep.subr.bf16.mxu0 %v8445_v54  ;;  %6144 = vmatprep.subr.bf16.mxu1 %v8447_v39 }
 0xd5a   :  { %v3760_v19 = vpop.f32.mrb[22].mxu0  ;;  %v3831_v31 = vpop.f32.mrb[22].mxu1 }
 0xd5b   :  { %v6380_v32 = vadd.f32 %v3760_v19, %v8586_v4  ;;  %v3762_v36 = vpop.f32.mrb[23].mxu0  ;;  %v3833_v24 = vpop.f32.mrb[23].mxu1  ;;  %v6396_v13 = vadd.f32 %v3831_v31, %v8601_v21 }
 0xd5c   :  { %v6381_v25 = vadd.f32 %v3762_v36, %v8590_v61  ;;  %v6397_v42 = vadd.f32 %v3833_v24, %v8596_v20 }
 0xd5d   :  { %v5040_v55 = vmul.f32 -1.442695, %v6380_v32 }
 0xd5e   :  { %v5041_v38 = vmul.f32 -1.442695, %v6381_v25  ;;  %v5042_v43 = vmul.f32 -1.442695, %v6397_v42 }
 0xd5f   :  { %6668 = vpow2.f32 %v5040_v55 }
 0xd60   :  { %6670 = vpow2.f32 %v5041_v38 }
 0xd61   :  { %6672 = vpow2.f32 %v5042_v43 }
 0xd62   :  { %6674 = vtanh.f32 %v6396_v13 }
 0xd69   :  { %v6669_v37 = vpop.eup %6668 }
 0xd6a   :  { %v6671_v40 = vpop.eup %6670  ;;  %v3843_v26 = vadd.f32 1.0, %v6669_v37 }
 0xd6b   :  { %v3849_v11 = vadd.f32 1.0, %v6671_v40  ;;  %v6673_v58 = vpop.eup %6672 }
 0xd6c   :  { %6676 = vrcp.f32 %v3843_v26  ;;  %v6675_v22 = vpop.eup %6674  ;;  %v3856_v63 = vadd.f32 1.0, %v6673_v58 }
 0xd6d   :  { %6678 = vrcp.f32 %v3849_v11 }
 0xd6e   :  { %6680 = vrcp.f32 %v3856_v63 }
 0xd76   :  { %v6677_v0 = vpop.eup %6676 }
 0xd77   :  { %v6679_v3 = vpop.eup %6678  ;;  %v3860_v57 = vmul.f32 %v6677_v0, %v6675_v22 }
 0xd78   :  { %v3859_v16 = vmul.f32 %v6679_v3, %v8688_v9  ;;  %v6681_v44 = vpop.eup %6680 }
 0xd7a   :  { %v8730_v23 = vadd.f32 %v3860_v57, %v3859_v16 }
 0xd7c   :  { %6682 = vtanh.f32 %v8730_v23 }
 0xd86   :  { %v6683_v6 = vpop.eup %6682 }
 0xd87   :  { %v3863_v34 = vmul.f32 %v6683_v6, %v6681_v44 }
 0xd89   :  { %3933 = vmatmul.mubr.f32.vlgmr.msra.gmra.mrb[24].mxu0 %v3863_v34  ;;  %4004 = vmatmul.mubr.f32.vlgmr.msra.gmra.mrb[24].mxu1 %v3863_v34 }
 0xd8a   :  { %6114 = vmatpush1.bf16.msra.mxu0 %v8449_v18  ;;  %6146 = vmatpush1.bf16.msra.mxu1 %v8452_v33 }
 0xd8b   :  { %6116 = vmatprep.subr.bf16.mxu0 %v8457_v48  ;;  %6148 = vmatprep.subr.bf16.mxu1 %v8459_v17 }
 0xd8c   :  { %4106 = vmatprep.mubr.f32.mxu0 %v7107_v7  ;;  %4177 = vmatprep.mubr.f32.mxu1 %v7107_v7 }
 0xd8e   :  { %6118 = vmatpush1.bf16.msra.mxu0 %v8461_v62  ;;  %6150 = vmatpush1.bf16.msra.mxu1 %v8464_v2 }
 0xd8f   :  { %6120 = vmatprep.subr.bf16.mxu0 %v8469_v1  ;;  %6152 = vmatprep.subr.bf16.mxu1 %v8471_v29 }
 0xd92   :  { %6122 = vmatpush1.bf16.msra.mxu0 %v8473_v46  ;;  %6154 = vmatpush1.bf16.msra.mxu1 %v8476_v12 }
 0xd93   :  { %6124 = vmatprep.subr.bf16.mxu0 %v8481_v14  ;;  %6156 = vmatprep.subr.bf16.mxu1 %v8483_v45 }
 0xd96   :  { %6126 = vmatpush1.bf16.msra.mxu0 %v8485_v10  ;;  %6158 = vmatpush1.bf16.msra.mxu1 %v8488_v53 }
 0xd97   :  { %6128 = vmatprep.subr.bf16.mxu0 %v8492_v28  ;;  %6160 = vmatprep.subr.bf16.mxu1 %v8494_v51 }
 0xd9a   :  { %6130 = vmatpush1.bf16.msra.mxu0 %v8497_v35  ;;  %6162 = vmatpush1.bf16.msra.mxu1 %v8501_v47 }
 0xd9b   :  { %6132 = vmatprep.subr.bf16.mxu0 %v8503_v5  ;;  %6164 = vmatprep.subr.bf16.mxu1 %v8505_v50 }
 0xd9e   :  { %6134 = vmatpush1.bf16.msra.mxu0 %v8508_v60  ;;  %6166 = vmatpush1.bf16.msra.mxu1 %v8512_v56 }
 0xd9f   :  { %6136 = vmatprep.subr.bf16.mxu0 %v8514_v49  ;;  %6168 = vmatprep.subr.bf16.mxu1 %v8517_v52 }
 0xda2   :  { %6138 = vmatpush1.bf16.msra.mxu0 %v8520_v27  ;;  %6170 = vmatpush1.bf16.msra.mxu1 %v8524_v15 }
 0xda3   :  { %6140 = vmatprep.subr.bf16.mxu0 %v8529_v30  ;;  %6172 = vmatprep.subr.bf16.mxu1 %v8531_v8 }
 0xda6   :  { %6142 = vmatpush1.bf16.msra.mxu0 %v8533_v41  ;;  %6174 = vmatpush1.bf16.msra.mxu1 %v8536_v59 }
 0xda7   :  { %6176 = vmatprep.subr.bf16.mxu0 %v8445_v54  ;;  %6208 = vmatprep.subr.bf16.mxu1 %v8447_v39 }
 0xe5c   :  { %v3934_v9 = vpop.f32.mrb[24].mxu0  ;;  %v4005_v19 = vpop.f32.mrb[24].mxu1 }
 0xe5d   :  { %v6382_v31 = vadd.f32 %v3934_v9, %v8586_v4  ;;  %v3936_v32 = vpop.f32.mrb[25].mxu0  ;;  %v4007_v36 = vpop.f32.mrb[25].mxu1  ;;  %v6398_v43 = vadd.f32 %v4005_v19, %v8601_v21 }
 0xe5e   :  { %v6383_v24 = vadd.f32 %v3936_v32, %v8590_v61  ;;  %v6399_v38 = vadd.f32 %v4007_v36, %v8596_v20 }
 0xe5f   :  { %v5043_v25 = vmul.f32 -1.442695, %v6382_v31 }
 0xe60   :  { %v5044_v55 = vmul.f32 -1.442695, %v6383_v24  ;;  %v5045_v42 = vmul.f32 -1.442695, %v6399_v38 }
 0xe61   :  { %6684 = vpow2.f32 %v5043_v25 }
 0xe62   :  { %6686 = vpow2.f32 %v5044_v55 }
 0xe63   :  { %6688 = vpow2.f32 %v5045_v42 }
 0xe64   :  { %6690 = vtanh.f32 %v6398_v43 }
 0xe6b   :  { %v6685_v13 = vpop.eup %6684 }
 0xe6c   :  { %v6687_v37 = vpop.eup %6686  ;;  %v4017_v40 = vadd.f32 1.0, %v6685_v13 }
 0xe6d   :  { %v4023_v26 = vadd.f32 1.0, %v6687_v37  ;;  %v6689_v11 = vpop.eup %6688 }
 0xe6e   :  { %6692 = vrcp.f32 %v4017_v40  ;;  %v6691_v58 = vpop.eup %6690  ;;  %v4030_v57 = vadd.f32 1.0, %v6689_v11 }
 0xe6f   :  { %6694 = vrcp.f32 %v4023_v26 }
 0xe70   :  { %6696 = vrcp.f32 %v4030_v57 }
 0xe78   :  { %v6693_v22 = vpop.eup %6692 }
 0xe79   :  { %v6695_v0 = vpop.eup %6694  ;;  %v4034_v3 = vmul.f32 %v6693_v22, %v6691_v58 }
 0xe7a   :  { %v4033_v63 = vmul.f32 %v6695_v0, %v8730_v23  ;;  %v6697_v44 = vpop.eup %6696 }
 0xe7c   :  { %v8772_v16 = vadd.f32 %v4034_v3, %v4033_v63 }
 0xe7e   :  { %6698 = vtanh.f32 %v8772_v16 }
 0xe88   :  { %v6699_v6 = vpop.eup %6698 }
 0xe89   :  { %v4037_v34 = vmul.f32 %v6699_v6, %v6697_v44  ;;  %v4567_v6 = vld [vmem:[#allocation21 + $0x18] sm:$0xff] }
 0xe8b   :  { %4107 = vmatmul.mubr.f32.vlgmr.msra.gmra.mrb[26].mxu0 %v4037_v34  ;;  %4178 = vmatmul.mubr.f32.vlgmr.msra.gmra.mrb[26].mxu1 %v4037_v34 }
 0xe8c   :  { %6178 = vmatpush1.bf16.msra.mxu0 %v8449_v18  ;;  %6210 = vmatpush1.bf16.msra.mxu1 %v8452_v33 }
 0xe8d   :  { %6180 = vmatprep.subr.bf16.mxu0 %v8457_v48  ;;  %6212 = vmatprep.subr.bf16.mxu1 %v8459_v17 }
 0xe8e   :  { %4280 = vmatprep.mubr.f32.mxu0 %v7107_v7  ;;  %4351 = vmatprep.mubr.f32.mxu1 %v7107_v7 }
 0xe90   :  { %6182 = vmatpush1.bf16.msra.mxu0 %v8461_v62  ;;  %6214 = vmatpush1.bf16.msra.mxu1 %v8464_v2 }
 0xe91   :  { %6184 = vmatprep.subr.bf16.mxu0 %v8469_v1  ;;  %6216 = vmatprep.subr.bf16.mxu1 %v8471_v29 }
 0xe94   :  { %6186 = vmatpush1.bf16.msra.mxu0 %v8473_v46  ;;  %6218 = vmatpush1.bf16.msra.mxu1 %v8476_v12 }
 0xe95   :  { %6188 = vmatprep.subr.bf16.mxu0 %v8481_v14  ;;  %6220 = vmatprep.subr.bf16.mxu1 %v8483_v45 }
 0xe98   :  { %6190 = vmatpush1.bf16.msra.mxu0 %v8485_v10  ;;  %6222 = vmatpush1.bf16.msra.mxu1 %v8488_v53 }
 0xe99   :  { %6192 = vmatprep.subr.bf16.mxu0 %v8492_v28  ;;  %6224 = vmatprep.subr.bf16.mxu1 %v8494_v51 }
 0xe9c   :  { %6194 = vmatpush1.bf16.msra.mxu0 %v8497_v35  ;;  %6226 = vmatpush1.bf16.msra.mxu1 %v8501_v47 }
 0xe9d   :  { %6196 = vmatprep.subr.bf16.mxu0 %v8503_v5  ;;  %6228 = vmatprep.subr.bf16.mxu1 %v8505_v50 }
 0xea0   :  { %6198 = vmatpush1.bf16.msra.mxu0 %v8508_v60  ;;  %6230 = vmatpush1.bf16.msra.mxu1 %v8512_v56 }
 0xea1   :  { %6200 = vmatprep.subr.bf16.mxu0 %v8514_v49  ;;  %6232 = vmatprep.subr.bf16.mxu1 %v8517_v52 }
 0xea4   :  { %6202 = vmatpush1.bf16.msra.mxu0 %v8520_v27  ;;  %6234 = vmatpush1.bf16.msra.mxu1 %v8524_v15 }
 0xea5   :  { %6204 = vmatprep.subr.bf16.mxu0 %v8529_v30  ;;  %6236 = vmatprep.subr.bf16.mxu1 %v8531_v8 }
 0xea8   :  { %6206 = vmatpush1.bf16.msra.mxu0 %v8533_v41  ;;  %6238 = vmatpush1.bf16.msra.mxu1 %v8536_v59 }
 0xea9   :  { %6240 = vmatprep.subr.bf16.mxu0 %v8445_v54  ;;  %6272 = vmatprep.subr.bf16.mxu1 %v8447_v39 }
 0xf5e   :  { %v4108_v23 = vpop.f32.mrb[26].mxu0  ;;  %v4179_v9 = vpop.f32.mrb[26].mxu1 }
 0xf5f   :  { %v6384_v19 = vadd.f32 %v4108_v23, %v8586_v4  ;;  %v4110_v31 = vpop.f32.mrb[27].mxu0  ;;  %v4181_v32 = vpop.f32.mrb[27].mxu1  ;;  %v6400_v42 = vadd.f32 %v4179_v9, %v8601_v21  ;;  %v4568_v23 = vld [vmem:[#allocation21 + $0x20] sm:$0xff]  ;;  %v4569_v9 = vld [vmem:[#allocation21 + $0x28] sm:$0xff] }
 0xf60   :  { %v6385_v36 = vadd.f32 %v4110_v31, %v8590_v61  ;;  %v6401_v55 = vadd.f32 %v4181_v32, %v8596_v20  ;;  %v4570_v31 = vld [vmem:[#allocation21 + $0x30] sm:$0xff]  ;;  %v4571_v32 = vld [vmem:[#allocation21 + $0x38] sm:$0xff] }
 0xf61   :  { %v5046_v24 = vmul.f32 -1.442695, %v6384_v19  ;;  %v6310_v19 = vpack.c.bf16 %v4569_v9, %v4568_v23 }
 0xf62   :  { %v5047_v25 = vmul.f32 -1.442695, %v6385_v36  ;;  %v5048_v38 = vmul.f32 -1.442695, %v6401_v55  ;;  %v6313_v36 = vpack.c.bf16 %v4571_v32, %v4570_v31 }
 0xf63   :  { %6700 = vpow2.f32 %v5046_v24  ;;  %v4572_v24 = vld [vmem:[#allocation21 + $0x40] sm:$0xff] }
 0xf64   :  { %6702 = vpow2.f32 %v5047_v25  ;;  %v4573_v25 = vld [vmem:[#allocation21 + $0x48] sm:$0xff] }
 0xf65   :  { %6704 = vpow2.f32 %v5048_v38  ;;  %v6316_v55 = vpack.c.bf16 %v4573_v25, %v4572_v24  ;;  %v4574_v38 = vld [vmem:[#allocation21 + $0x50] sm:$0xff] }
 0xf66   :  { %6706 = vtanh.f32 %v6400_v42  ;;  %v4575_v42 = vld [vmem:[#allocation21 + $0x58] sm:$0xff] }
 0xf6d   :  { %v6701_v54 = vpop.eup %6700 }
 0xf6e   :  { %v6703_v43 = vpop.eup %6702  ;;  %v4191_v39 = vadd.f32 1.0, %v6701_v54  ;;  %v4576_v54 = vld [vmem:[#allocation21 + $0x60] sm:$0xff] }
 0xf6f   :  { %v4197_v13 = vadd.f32 1.0, %v6703_v43  ;;  %v6705_v37 = vpop.eup %6704  ;;  %v6319_v43 = vpack.c.bf16 %v4575_v42, %v4574_v38 }
 0xf70   :  { %6708 = vrcp.f32 %v4191_v39  ;;  %v6707_v40 = vpop.eup %6706  ;;  %v4204_v22 = vadd.f32 1.0, %v6705_v37  ;;  %v4577_v39 = vld [vmem:[#allocation21 + $0x68] sm:$0xff]  ;;  %v4578_v37 = vld [vmem:[#allocation21 + $0x70] sm:$0xff] }
 0xf71   :  { %6710 = vrcp.f32 %v4197_v13  ;;  %v6322_v13 = vpack.c.bf16 %v4577_v39, %v4576_v54 }
 0xf72   :  { %6712 = vrcp.f32 %v4204_v22  ;;  %v4659_v22 = vld [vmem:[#allocation24 + $0x10] sm:$0xff] }
 0xf7a   :  { %v6709_v26 = vpop.eup %6708 }
 0xf7b   :  { %v6711_v11 = vpop.eup %6710  ;;  %v4208_v58 = vmul.f32 %v6709_v26, %v6707_v40  ;;  %v4579_v40 = vld [vmem:[#allocation21 + $0x78] sm:$0xff] }
 0xf7c   :  { %v4207_v0 = vmul.f32 %v6711_v11, %v8772_v16  ;;  %v6713_v57 = vpop.eup %6712  ;;  %v4566_v16 = vld [vmem:[#allocation21 + $0x10] sm:$0xff]  ;;  %v6325_v26 = vpack.c.bf16 %v4579_v40, %v4578_v37  ;;  %v4657_v11 = vld [vmem:[#allocation24] sm:$0xff] }
 0xf7d   :  { %v6307_v34 = vpack.c.bf16 %v4567_v6, %v4566_v16  ;;  %v4746_v6 = vld [vmem:[%s8985_s16] sm:$0xff] }
 0xf7e   :  { %v8814_v3 = vadd.f32 %v4208_v58, %v4207_v0  ;;  %v4658_v58 = vld [vmem:[#allocation24 + $0x8] sm:$0xff] }
 0xf7f   :  { %v6328_v0 = vpack.c.bf16 %v4658_v58, %v4657_v11 }
 0xf80   :  { %6714 = vtanh.f32 %v8814_v3 }
 0xf8a   :  { %v6715_v63 = vpop.eup %6714 }
 0xf8b   :  { %v4211_v44 = vmul.f32 %v6715_v63, %v6713_v57  ;;  %v4661_v63 = vld [vmem:[#allocation24 + $0x20] sm:$0xff] }
 0xf8d   :  { %4281 = vmatmul.mubr.f32.vlgmr.msra.gmra.mrb[28].mxu0 %v4211_v44  ;;  %4352 = vmatmul.mubr.f32.vlgmr.msra.gmra.mrb[28].mxu1 %v4211_v44  ;;  %v4662_v44 = vld [vmem:[#allocation24 + $0x28] sm:$0xff] }
 0xf8e   :  { %6242 = vmatpush1.bf16.msra.mxu0 %v8449_v18  ;;  %6274 = vmatpush1.bf16.msra.mxu1 %v8452_v33 }
 0xf8f   :  { %6244 = vmatprep.subr.bf16.mxu0 %v8457_v48  ;;  %6276 = vmatprep.subr.bf16.mxu1 %v8459_v17 }
 0xf90   :  { %4454 = vmatprep.mubr.f32.mxu0 %v7107_v7  ;;  %4525 = vmatprep.mubr.f32.mxu1 %v7107_v7 }
 0xf92   :  { %6246 = vmatpush1.bf16.msra.mxu0 %v8461_v62  ;;  %6278 = vmatpush1.bf16.msra.mxu1 %v8464_v2 }
 0xf93   :  { %6248 = vmatprep.subr.bf16.mxu0 %v8469_v1  ;;  %6280 = vmatprep.subr.bf16.mxu1 %v8471_v29 }
 0xf96   :  { %6250 = vmatpush1.bf16.msra.mxu0 %v8473_v46  ;;  %6282 = vmatpush1.bf16.msra.mxu1 %v8476_v12 }
 0xf97   :  { %6252 = vmatprep.subr.bf16.mxu0 %v8481_v14  ;;  %6284 = vmatprep.subr.bf16.mxu1 %v8483_v45 }
 0xf9a   :  { %6254 = vmatpush1.bf16.msra.mxu0 %v8485_v10  ;;  %6286 = vmatpush1.bf16.msra.mxu1 %v8488_v53 }
 0xf9b   :  { %6256 = vmatprep.subr.bf16.mxu0 %v8492_v28  ;;  %6288 = vmatprep.subr.bf16.mxu1 %v8494_v51 }
 0xf9e   :  { %6258 = vmatpush1.bf16.msra.mxu0 %v8497_v35  ;;  %6290 = vmatpush1.bf16.msra.mxu1 %v8501_v47 }
 0xf9f   :  { %6260 = vmatprep.subr.bf16.mxu0 %v8503_v5  ;;  %6292 = vmatprep.subr.bf16.mxu1 %v8505_v50 }
 0xfa2   :  { %6262 = vmatpush1.bf16.msra.mxu0 %v8508_v60  ;;  %6294 = vmatpush1.bf16.msra.mxu1 %v8512_v56 }
 0xfa3   :  { %6264 = vmatprep.subr.bf16.mxu0 %v8514_v49  ;;  %6296 = vmatprep.subr.bf16.mxu1 %v8517_v52 }
 0xfa6   :  { %6266 = vmatpush1.bf16.msra.mxu0 %v8520_v27  ;;  %6298 = vmatpush1.bf16.msra.mxu1 %v8524_v15 }
 0xfa7   :  { %6268 = vmatprep.subr.bf16.mxu0 %v8529_v30  ;;  %6300 = vmatprep.subr.bf16.mxu1 %v8531_v8  ;;  %v4564_v30 = vld [vmem:[#allocation21] sm:$0xff]  ;;  %v4565_v8 = vld [vmem:[#allocation21 + $0x8] sm:$0xff] }
 0xfaa   :  { %6270 = vmatpush1.bf16.msra.mxu0 %v8533_v41  ;;  %6302 = vmatpush1.bf16.msra.mxu1 %v8536_v59  ;;  %v6304_v41 = vpack.c.bf16 %v4565_v8, %v4564_v30  ;;  %v7108_v59 = vmov 0.0|0.0   ;;  %v5055_v8 = vld [vmem:[#allocation22] ss:$0 sm:$0xff] }
 0xfab   :  { %6303 = vmatprep.subr.bf16.mxu0 %v7108_v59  ;;  %6327 = vmatprep.subr.bf16.mxu1 %v7108_v59 }
0x1060   :  { %v4282_v18 = vpop.f32.mrb[28].mxu0  ;;  %v4353_v33 = vpop.f32.mrb[28].mxu1 }
0x1061   :  { %v6386_v48 = vadd.f32 %v4282_v18, %v8586_v4  ;;  %v4284_v17 = vpop.f32.mrb[29].mxu0  ;;  %v4355_v62 = vpop.f32.mrb[29].mxu1  ;;  %v6402_v14 = vadd.f32 %v4353_v33, %v8601_v21  ;;  %v6334_v18 = vpack.c.bf16 %v4662_v44, %v4661_v63 }
0x1062   :  { %v6387_v2 = vadd.f32 %v4284_v17, %v8590_v61  ;;  %v6403_v46 = vadd.f32 %v4355_v62, %v8596_v20 }
0x1063   :  { %v5049_v1 = vmul.f32 -1.442695, %v6386_v48 }
0x1064   :  { %v5050_v29 = vmul.f32 -1.442695, %v6387_v2  ;;  %v5051_v12 = vmul.f32 -1.442695, %v6403_v46 }
0x1065   :  { %6716 = vpow2.f32 %v5049_v1 }
0x1066   :  { %6718 = vpow2.f32 %v5050_v29 }
0x1067   :  { %6720 = vpow2.f32 %v5051_v12 }
0x1068   :  { %6722 = vtanh.f32 %v6402_v14 }
0x106f   :  { %v6717_v45 = vpop.eup %6716 }
0x1070   :  { %v6719_v10 = vpop.eup %6718  ;;  %v4365_v53 = vadd.f32 1.0, %v6717_v45 }
0x1071   :  { %v4371_v28 = vadd.f32 1.0, %v6719_v10  ;;  %v6721_v51 = vpop.eup %6720 }
0x1072   :  { %6724 = vrcp.f32 %v4365_v53  ;;  %v6723_v35 = vpop.eup %6722  ;;  %v4378_v60 = vadd.f32 1.0, %v6721_v51 }
0x1073   :  { %6726 = vrcp.f32 %v4371_v28 }
0x1074   :  { %6728 = vrcp.f32 %v4378_v60 }
0x107c   :  { %v6725_v47 = vpop.eup %6724 }
0x107d   :  { %v6727_v5 = vpop.eup %6726  ;;  %v4382_v50 = vmul.f32 %v6725_v47, %v6723_v35 }
0x107e   :  { %v4381_v56 = vmul.f32 %v6727_v5, %v8814_v3  ;;  %v6729_v52 = vpop.eup %6728  ;;  %v4660_v3 = vld [vmem:[#allocation24 + $0x18] sm:$0xff] }
0x107f   :  { %v6331_v57 = vpack.c.bf16 %v4660_v3, %v4659_v22 }
0x1080   :  { %v8854_v49 = vadd.f32 %v4382_v50, %v4381_v56 }
0x1082   :  { %6730 = vtanh.f32 %v8854_v49 }
0x108c   :  { %v6731_v27 = vpop.eup %6730 }
0x108d   :  { %v4385_v15 = vmul.f32 %v6731_v27, %v6729_v52  ;;  %v4663_v27 = vld [vmem:[#allocation24 + $0x30] sm:$0xff] }
0x108f   :  { %4455 = vmatmul.mubr.f32.vlgmr.msra.gmra.mrb[30].mxu0 %v4385_v15  ;;  %4526 = vmatmul.mubr.f32.vlgmr.msra.gmra.mrb[30].mxu1 %v4385_v15  ;;  %v4664_v15 = vld [vmem:[#allocation24 + $0x38] sm:$0xff] }
0x1090   :  { %6305 = vmatpush3.bf16.msra.mxu0 %v6304_v41  ;;  %5122 = vmatprep.mubr.msk.f32.mxu0 %vm7109_vm0, %v7107_v7  ;;  %v6337_v30 = vpack.c.bf16 %v4664_v15, %v4663_v27 }
0x1091   :  { %6306 = vmatprep.subr.bf16.mxu0 %v7108_v59  ;;  %5141 = vmatprep.mubr.msk.f32.mxu1 %vm7109_vm0, %v7107_v7 }
0x1092   :  { %6329 = vmatpush3.bf16.msra.mxu1 %v6328_v0 }
0x1093   :  { %6330 = vmatprep.subr.bf16.mxu1 %v7108_v59 }
0x1094   :  { %6308 = vmatpush3.bf16.msra.mxu0 %v6307_v34  ;;  %v4747_v34 = vld [vmem:[%s8985_s16 + $0x8] sm:$0xff] }
0x1095   :  { %6309 = vmatprep.subr.bf16.mxu0 %v7108_v59  ;;  %v6340_v23 = vpack.c.bf16 %v4747_v34, %v4746_v6 }
0x1096   :  { %6332 = vmatpush3.bf16.msra.mxu1 %v6331_v57 }
0x1097   :  { %6333 = vmatprep.subr.bf16.mxu1 %v7108_v59 }
0x1098   :  { %6311 = vmatpush3.bf16.msra.mxu0 %v6310_v19 }
0x1099   :  { %6312 = vmatprep.subr.bf16.mxu0 %v7108_v59 }
0x109a   :  { %6335 = vmatpush3.bf16.msra.mxu1 %v6334_v18 }
0x109b   :  { %6336 = vmatprep.subr.bf16.mxu1 %v7108_v59 }
0x109c   :  { %6314 = vmatpush3.bf16.msra.mxu0 %v6313_v36 }
0x109d   :  { %6315 = vmatprep.subr.bf16.mxu0 %v7108_v59 }
0x109e   :  { %6338 = vmatpush3.bf16.msra.mxu1 %v6337_v30 }
0x109f   :  { %6339 = vmatprep.subr.bf16.mxu1 %v7108_v59 }
0x10a0   :  { %6317 = vmatpush3.bf16.msra.mxu0 %v6316_v55 }
0x10a1   :  { %6318 = vmatprep.subr.bf16.mxu0 %v7108_v59 }
0x10a4   :  { %6320 = vmatpush3.bf16.msra.mxu0 %v6319_v43 }
0x10a5   :  { %6321 = vmatprep.subr.bf16.mxu0 %v7108_v59 }
0x10a8   :  { %6323 = vmatpush3.bf16.msra.mxu0 %v6322_v13 }
0x10a9   :  { %6324 = vmatprep.subr.bf16.mxu0 %v7108_v59  ;;  %v5056_v59 = vld [vmem:[#allocation25] ss:$0 sm:$0xff] }
0x10ac   :  { %6326 = vmatpush3.bf16.msra.mxu0 %v6325_v26 }
0x1162   :  { %v4456_v33 = vpop.f32.mrb[30].mxu0  ;;  %v4527_v48 = vpop.f32.mrb[30].mxu1 }
0x1163   :  { %v6388_v17 = vadd.f32 %v4456_v33, %v8586_v4  ;;  %v4458_v62 = vpop.f32.mrb[31].mxu0  ;;  %v4529_v2 = vpop.f32.mrb[31].mxu1  ;;  %v6404_v45 = vadd.f32 %v4527_v48, %v8601_v21 }
0x1164   :  { %v6389_v1 = vadd.f32 %v4458_v62, %v8590_v61  ;;  %v6405_v12 = vadd.f32 %v4529_v2, %v8596_v20 }
0x1165   :  { %v5052_v29 = vmul.f32 -1.442695, %v6388_v17 }
0x1166   :  { %v5053_v46 = vmul.f32 -1.442695, %v6389_v1  ;;  %v5054_v14 = vmul.f32 -1.442695, %v6405_v12 }
0x1167   :  { %6732 = vpow2.f32 %v5052_v29 }
0x1168   :  { %6734 = vpow2.f32 %v5053_v46 }
0x1169   :  { %6736 = vpow2.f32 %v5054_v14 }
0x116a   :  { %6738 = vtanh.f32 %v6404_v45 }
0x1171   :  { %v6733_v10 = vpop.eup %6732 }
0x1172   :  { %v6735_v53 = vpop.eup %6734  ;;  %v4539_v28 = vadd.f32 1.0, %v6733_v10 }
0x1173   :  { %v4545_v51 = vadd.f32 1.0, %v6735_v53  ;;  %v6737_v4 = vpop.eup %6736 }
0x1174   :  { %6740 = vrcp.f32 %v4539_v28  ;;  %v6739_v35 = vpop.eup %6738  ;;  %v4552_v50 = vadd.f32 1.0, %v6737_v4 }
0x1175   :  { %6742 = vrcp.f32 %v4545_v51 }
0x1176   :  { %6744 = vrcp.f32 %v4552_v50 }
0x117e   :  { %v6741_v61 = vpop.eup %6740 }
0x117f   :  { %v6743_v47 = vpop.eup %6742  ;;  %v4556_v5 = vmul.f32 %v6741_v61, %v6739_v35 }
0x1180   :  { %v4555_v60 = vmul.f32 %v6743_v47, %v8854_v49  ;;  %v6745_v21 = vpop.eup %6744 }
0x1182   :  { %v4557_v20 = vadd.f32 %v4556_v5, %v4555_v60 }
0x1184   :  { %4563 = vst [vmem:[#allocation28 + $0x8] sm:$0xff] %v4557_v20  ;;  %6746 = vtanh.f32 %v4557_v20 }
0x118e   :  { %v6747_v56 = vpop.eup %6746 }
0x118f   :  { %v4559_v52 = vmul.f32 %v6747_v56, %v6745_v21 }
0x1191   :  { %5123 = vmatmul.mubr.f32.vlgmr.msra.gmra.mrb[32].mxu0 %v4559_v52  ;;  %4561 = vst [vmem:[#allocation27 + $0x8] sm:$0xff] %v4559_v52 }
0x1264   :  { %v4653_v41 = vpop.f32.mrb[32].mxu0 }
0x1265   :  { %v4654_v16 = vadd.f32 %v5055_v8, %v4653_v41  ;;  %v5124_v49 = vpop.f32.mrb[33].mxu0 }
0x1267   :  { %5142 = vmatmul.mubr.msk.f32.vlgmr.msra.gmra.mrb[32].mxu1 %vm4672_vm1, %v4654_v16 }
0x1268   :  { %5148 = vmatprep.mubr.msk.f32.mxu1 %vm7109_vm0, %v7107_v7  ;;  %6341 = vmatpush3.bf16.msra.mxu1 %v6340_v23 }
0x133a   :  { %v4742_v9 = vpop.f32.mrb[32].mxu1 }
0x133b   :  { %v4743_v19 = vadd.f32 %v5056_v59, %v4742_v9  ;;  %v5143_v31 = vpop.f32.mrb[33].mxu1 }
0x133d   :  { %5149 = vmatmul.mubr.msk.f32.vlgmr.msra.gmra.mrb[34].mxu1 %vm4755_vm2, %v4743_v19 }
0x133e   :  { %7037 = shalt.err (!%p7034_p5)
}
0x133f   :  { %s8986_s0 = sld [smem:[#allocation49_spill]] }
0x1345   :  { %s7038_s30 = scalar_lea.hbm %s8986_s0, 256 }
0x1346   :  { %p7039_p6 = scmp.ne.s32.totalorder %s8986_s0, %s7038_s30  ;;  %p7042_p7 = scmp.lt.u32.totalorder %s7038_s30, %s8986_s0 }
0x1348   :  { %p7044_p8 = pnand %p7042_p7, %p7039_p6 }
0x134a   :  { %7047 = shalt.err (!%p7044_p8)
}
0x134b   :  { %s8987_s5 = smov 8   ;;  %s8988_s27 = smov 128  }
0x134c   :  { %4849 = dma.vmem_to_hbm [thread:$0]  %s4844_s7, 256, %s8986_s0, [#allocation7], %s8988_s27, %s8988_s27, %s8987_s5  }
0x134d   :  { %s7048_s29 = scalar_lea.vmem %s8887_s17, 256  ;;  %p7053_p10 = scmp.lt.s32.totalorder %s8887_s17, %s8887_s17 }
0x134e   :  { %p7049_p9 = scmp.ne.s32.totalorder %s8887_s17, %s7048_s29  ;;  %p7054_p11 = scmp.lt.s32.totalorder %s7048_s29, %s7048_s29 }
0x1350   :  { %p7055_p12 = por %p7054_p11, %p7053_p10 }
0x1352   :  { %p7056_p13 = pnand %p7055_p12, %p7049_p9 }
0x1354   :  { %7059 = shalt.err (!%p7056_p13)
}
0x1355   :  { %s8989_s20 = sld [smem:[#allocation50_spill]] }
0x135b   :  { %s7060_s8 = scalar_lea.hbm %s8989_s20, 256 }
0x135c   :  { %p7061_p0 = scmp.ne.s32.totalorder %s8989_s20, %s7060_s8  ;;  %p7064_p1 = scmp.lt.u32.totalorder %s7060_s8, %s8989_s20 }
0x135e   :  { %p7066_p2 = pnand %p7064_p1, %p7061_p0 }
0x1360   :  { %7069 = shalt.err (!%p7066_p2)
}
0x1361   :  { %4861 = dma.vmem_to_hbm [thread:$0]  %s8887_s17, 256, %s8989_s20, [#allocation29], %s8988_s27, %s8988_s27, %s8987_s5  }
0x1362   :  { %s8990_s24 = sld [smem:[#allocation47_spill]]  ;;  %s8991_s23 = sld [smem:[#allocation48_spill]] }
0x1368   :  { %v5058_v7 = vld [vmem:[%s8990_s24] ss:$0 sm:$0xff] }
0x1410   :  { %v4825_v32 = vpop.f32.mrb[34].mxu1 }
0x1411   :  { %v4826_v36 = vadd.f32 %v5058_v7, %v4825_v32  ;;  %v5150_v24 = vpop.f32.mrb[35].mxu1 }
0x1413   :  { %v5060_v25 = vmul.f32 -1.442695, %v4826_v36 }
0x1415   :  { %6748 = vpow2.f32 %v5060_v25 }
0x141f   :  { %v6749_v55 = vpop.eup %6748 }
0x1420   :  { %v4832_v38 = vadd.f32 1.0, %v6749_v55 }
0x1422   :  { %6750 = vrcp.f32 %v4832_v38 }
0x142c   :  { %v6751_v42 = vpop.eup %6750 }
0x142d   :  { %4835 = vst [vmem:[%s8991_s23] sm:$0xff] %v6751_v42 }
0x142e   :  { %7086 = dma.done.wait [#allocation7], 256  }
0x142f   :  { %7087 = vsyncadd [#allocation7], 4294967040 }
0x1430   :  { %7088 = dma.done.wait [#allocation29], 256  }
0x1431   :  { %7089 = vsyncadd [#allocation29], 4294967040 }
0x1432   :  { %4870 = vsyncpa [#allocation6], 1 }
0x1433   :  { %4871 = vsyncpa [#allocation11], 1 }
0x1434   :  { %4872 = vsyncpa [#allocation14], 1 }
0x1435   :  { %4873 = vsyncpa [#allocation17], 1 }
0x1436   :  { %4874 = vsyncpa [#allocation20], 1 }
0x1437   :  { %4875 = vsyncpa [#allocation23], 1 }
0x1438   :  { %4876 = vsyncpa [#allocation26], 1 }
0x1439   :  { %4877 = vsyncpa [#allocation7], 1 }
0x143a   :  { %4878 = vsyncpa [#allocation29], 1 }
0x143b   :  { %4879 = vsyncpa [#allocation8], 1 }

</bundles_post_ra>
